<compile_context>
chip_gen: v7x
topology: tpu7x:2x2x1
jax: 0.10.0
libtpu: 0.0.40
codegen_flags: <defaults>
</compile_context>

<pallas_src>
import math
from functools import partial

import numpy as np
import jax
import jax.numpy as jnp
from jax.experimental import pallas as pl
from jax.experimental.pallas import tpu as pltpu

TILE = 128                                  # row tile (MXU-friendly; sweep 128/256/512)
BN_SCALE = 1.0 / math.sqrt(1.0 + 1e-5)      # eval-mode BatchNorm1d w/ default running stats
FEAT = 512                                  # feature_size
W2V = 300                                   # word2vec size
W2VP = 384                                  # word2vec width padded to lane-aligned 384
SPA = 16                                    # spatial feature size
OUT = 13                                    # readout classes
OUTP = 128                                  # lane-dense padded readout width
ATTN_PAD = 128                              # lane-dense packed attention output width


# ----------------------------- small helpers -----------------------------

def _row_spec(cols, tile=TILE):
    return pl.BlockSpec((tile, cols), lambda i: (i, 0))


def _const_spec(arr):
    return pl.BlockSpec(arr.shape, lambda i: (0,) * arr.ndim)


def _pad(x, mult):
    r = x.shape[0]
    rp = -(-r // mult) * mult
    if rp == r:
        return x
    return jnp.pad(x, [(0, rp - r)] + [(0, 0)] * (x.ndim - 1))


def _agg_tile(deg):
    # keep double-buffered bf16 mailbox blocks comfortably inside scoped VMEM
    t = TILE
    while t > 8 and 2 * 2 * t * deg * (FEAT + W2VP) > 8 * 1024 * 1024:
        t //= 2
    return t


# ----------------------------- Pallas kernels -----------------------------

def _edge_kernel(fs_ref, sp_ref, fd_ref, ws_ref, wd_ref,
                 we1, we2, we3, be, wel1, wel2, bel, wa, ba, wal, bal,
                 ef_ref, attn_ref):
    # H_H_EdgeApplyModule + E_AttentionModule1 fused; split matmuls (no concat)
    f32 = jnp.float32
    ef = jnp.dot(fs_ref[...], we1[...], preferred_element_type=f32)
    ef = ef + jnp.dot(sp_ref[...], we2[...], preferred_element_type=f32)
    ef = ef + jnp.dot(fd_ref[...], we3[...], preferred_element_type=f32)
    ef = jnp.maximum(ef + be[...], 0.0)
    efl = jnp.dot(ws_ref[...], wel1[...], preferred_element_type=f32)
    efl = efl + jnp.dot(wd_ref[...], wel2[...], preferred_element_type=f32)
    efl = jnp.maximum(efl + bel[...], 0.0)
    ef_ref[...] = ef.astype(ef_ref.dtype)

    # 512 -> 1 attention heads on VPU (mul) + XLU (lane reduce), LeakyReLU(0.2)
    a = jnp.sum(ef * wa[...], axis=1, keepdims=True) + ba[...]
    al = jnp.sum(efl * wal[...], axis=1, keepdims=True) + bal[...]
    a = jnp.where(a > 0, a, 0.2 * a)
    al = jnp.where(al > 0, al, 0.2 * al)

    # lane-dense packed output: lane 0 = a_feat, lane 1 = a_feat_lang
    lane = jax.lax.broadcasted_iota(jnp.int32, attn_ref.shape, 1)
    attn_ref[...] = jnp.where(lane == 0, a, jnp.where(lane == 1, al, 0.0))


def _agg_kernel(a_ref, al_ref, mask_ref, zraw_ref, w2v_ref, zf_ref, zfl_ref, *, deg):
    # GNN._reduce_func : masked softmax over incoming edges + attention-weighted sum
    mask = mask_ref[...]                                      # [T, deg]
    a = jnp.where(mask > 0, a_ref[...], -1e30)
    al = jnp.where(mask > 0, al_ref[...], -1e30)
    a = a - jnp.max(a, axis=1, keepdims=True)
    al = al - jnp.max(al, axis=1, keepdims=True)
    ea = jnp.exp(a) * mask
    eal = jnp.exp(al) * mask
    sa = jnp.sum(ea, axis=1, keepdims=True)
    sal = jnp.sum(eal, axis=1, keepdims=True)
    # guard zero-in-degree / padded rows (alpha -> 0); approx recip goes to the EUP
    alpha = ea * pl.reciprocal(jnp.where(sa > 0, sa, 1.0), approx=True)
    alpha_l = eal * pl.reciprocal(jnp.where(sal > 0, sal, 1.0), approx=True)

    zf = jnp.zeros((mask.shape[0], FEAT), jnp.float32)
    zfl = jnp.zeros((mask.shape[0], W2VP), jnp.float32)
    # TODO(synk): for very dense graphs (large deg) move this gather in-kernel via
    # PrefetchScalarGridSpec + make_async_copy instead of the wrapper-side mailbox.
    for k in range(deg):                     # static unroll; lane-aligned 512/384 chunks
        zf = zf + alpha[:, k:k + 1] * zraw_ref[:, k * FEAT:(k + 1) * FEAT].astype(jnp.float32)
        zfl = zfl + alpha_l[:, k:k + 1] * w2v_ref[:, k * W2VP:(k + 1) * W2VP].astype(jnp.float32)
    zf_ref[...] = zf.astype(zf_ref.dtype)
    zfl_ref[...] = zfl.astype(zfl_ref.dtype)


def _node_kernel(nf_ref, zf_ref, wv_ref, zfl_ref,
                 wn1, wn2, bnode, wnl1, wnl2, bnl,
                 onf_ref, onfl_ref):
    # H_NodeApplyModule; split matmuls (no concat)
    f32 = jnp.float32
    nf = jnp.dot(nf_ref[...], wn1[...], preferred_element_type=f32)
    nf = nf + jnp.dot(zf_ref[...], wn2[...], preferred_element_type=f32)
    nf = jnp.maximum(nf + bnode[...], 0.0)
    nfl = jnp.dot(wv_ref[...], wnl1[...], preferred_element_type=f32)
    nfl = nfl + jnp.dot(zfl_ref[...], wnl2[...], preferred_element_type=f32)
    nfl = jnp.maximum(nfl + bnl[...], 0.0)
    onf_ref[...] = nf.astype(onf_ref.dtype)
    onfl_ref[...] = nfl.astype(onfl_ref.dtype)


def _readout_kernel(nfd_ref, nfld_ref, sp_ref, nfls_ref, nfs_ref,
                    wr0a, wr0b, wr0c, wr0d, wr0e, br0, wr1, br1, pred_ref):
    # Predictor.classifier : 1640 -> 512 (ReLU) -> 13 (Identity), lane-padded to 128
    f32 = jnp.float32
    h = jnp.dot(nfd_ref[...], wr0a[...], preferred_element_type=f32)
    h = h + jnp.dot(nfld_ref[...], wr0b[...], preferred_element_type=f32)
    h = h + jnp.dot(sp_ref[...], wr0c[...], preferred_element_type=f32)
    h = h + jnp.dot(nfls_ref[...], wr0d[...], preferred_element_type=f32)
    h = h + jnp.dot(nfs_ref[...], wr0e[...], preferred_element_type=f32)
    h = jnp.maximum(h + br0[...], 0.0)
    pred_ref[...] = jnp.dot(h.astype(jnp.bfloat16), wr1[...],
                            preferred_element_type=f32) + br1[...]


# ----------------------------- pallas_call wrappers -----------------------------

def edge_stage(fs, sp, fd, ws, wd, p):
    E = fs.shape[0]
    fs, sp, fd, ws, wd = (_pad(x, TILE) for x in (fs, sp, fd, ws, wd))
    Ep = fs.shape[0]
    consts = [p['We1'], p['We2'], p['We3'], p['be'],
              p['Wel1'], p['Wel2'], p['bel'],
              p['wa'], p['ba'], p['wal'], p['bal']]
    ef, attn = pl.pallas_call(
        _edge_kernel, grid=(Ep // TILE,),
        in_specs=[_row_spec(FEAT), _row_spec(SPA), _row_spec(FEAT),
                  _row_spec(W2VP), _row_spec(W2VP)] + [_const_spec(c) for c in consts],
        out_specs=[_row_spec(FEAT), _row_spec(ATTN_PAD)],
        out_shape=[jax.ShapeDtypeStruct((Ep, FEAT), jnp.bfloat16),
                   jax.ShapeDtypeStruct((Ep, ATTN_PAD), jnp.float32)],
        compiler_params=pltpu.CompilerParams(dimension_semantics=("parallel",)),
    )(fs, sp, fd, ws, wd, *consts)
    return ef[:E], attn[:E]


def agg_stage(a_mb, al_mb, mask, zraw2, w2v2, deg):
    N = a_mb.shape[0]
    t = _agg_tile(deg)
    a_mb, al_mb, mask, zraw2, w2v2 = (_pad(x, t) for x in (a_mb, al_mb, mask, zraw2, w2v2))
    Np = a_mb.shape[0]

    def rs(cols):
        return _row_spec(cols, tile=t)

    z_f, z_fl = pl.pallas_call(
        partial(_agg_kernel, deg=deg), grid=(Np // t,),
        in_specs=[rs(deg), rs(deg), rs(deg), rs(deg * FEAT), rs(deg * W2VP)],
        out_specs=[rs(FEAT), rs(W2VP)],
        out_shape=[jax.ShapeDtypeStruct((Np, FEAT), jnp.bfloat16),
                   jax.ShapeDtypeStruct((Np, W2VP), jnp.bfloat16)],
        compiler_params=pltpu.CompilerParams(dimension_semantics=("parallel",)),
    )(a_mb, al_mb, mask, zraw2, w2v2)
    return z_f[:N], z_fl[:N]


def node_stage(nf, zf, wv, zfl, p):
    N = nf.shape[0]
    nf, zf, wv, zfl = (_pad(x, TILE) for x in (nf, zf, wv, zfl))
    Np = nf.shape[0]
    consts = [p['Wn1'], p['Wn2'], p['bn'], p['Wnl1'], p['Wnl2'], p['bnl']]
    onf, onfl = pl.pallas_call(
        _node_kernel, grid=(Np // TILE,),
        in_specs=[_row_spec(FEAT), _row_spec(FEAT), _row_spec(W2VP), _row_spec(W2VP)]
                 + [_const_spec(c) for c in consts],
        out_specs=[_row_spec(FEAT), _row_spec(W2VP)],
        out_shape=[jax.ShapeDtypeStruct((Np, FEAT), jnp.bfloat16),
                   jax.ShapeDtypeStruct((Np, W2VP), jnp.bfloat16)],
        compiler_params=pltpu.CompilerParams(dimension_semantics=("parallel",)),
    )(nf, zf, wv, zfl, *consts)
    return onf[:N], onfl[:N]


def readout_stage(nfd, nfld, sp, nfls, nfs, p):
    R = nfd.shape[0]
    nfd, nfld, sp, nfls, nfs = (_pad(x, TILE) for x in (nfd, nfld, sp, nfls, nfs))
    Rp = nfd.shape[0]
    consts = [p['Wr0a'], p['Wr0b'], p['Wr0c'], p['Wr0d'], p['Wr0e'],
              p['br0'], p['Wr1'], p['br1']]
    pred = pl.pallas_call(
        _readout_kernel, grid=(Rp // TILE,),
        in_specs=[_row_spec(FEAT), _row_spec(W2VP), _row_spec(SPA),
                  _row_spec(W2VP), _row_spec(FEAT)] + [_const_spec(c) for c in consts],
        out_specs=_row_spec(OUTP),
        out_shape=jax.ShapeDtypeStruct((Rp, OUTP), jnp.float32),
        compiler_params=pltpu.CompilerParams(dimension_semantics=("parallel",)),
    )(nfd, nfld, sp, nfls, nfs, *consts)
    return pred[:R, :OUT]


# ----------------------------- parameters -----------------------------

def init_params(key):
    """Deterministic init matching PyTorch Linear shapes (stored as [in, out]).
    Eval-mode BN scale is folded into W/b; big matmul weights cast to bf16."""
    def linear(k, fan_in, fan_out):
        kw, kb = jax.random.split(k)
        lim = 1.0 / math.sqrt(fan_in)
        w = jax.random.uniform(kw, (fan_in, fan_out), jnp.float32, -lim, lim)
        b = jax.random.uniform(kb, (1, fan_out), jnp.float32, -lim, lim)
        return w * BN_SCALE, b * BN_SCALE           # fold BatchNorm (eval, default stats)

    keys = jax.random.split(key, 8)
    W_e, b_e = linear(keys[0], 2 * FEAT + SPA, FEAT)                # G_E_L_S  [1040, 512]
    W_el, b_el = linear(keys[1], 2 * W2V, FEAT)                     # G_E_L_S2 [600, 512]
    W_a, b_a = linear(keys[2], FEAT, 1)                             # G_A_L_S  [512, 1]
    W_al, b_al = linear(keys[3], FEAT, 1)                           # G_A_L_S2 [512, 1]
    W_n, b_n = linear(keys[4], 2 * FEAT, FEAT)                      # G_N_L_S  [1024, 512]
    W_nl, b_nl = linear(keys[5], 2 * W2V, W2V)                      # G_N_L_S2 [600, 300]
    W_r0, b_r0 = linear(keys[6], 2 * FEAT + 2 * W2V + SPA, FEAT)    # G_ER     [1640, 512]
    W_r1, b_r1 = linear(keys[7], FEAT, OUT)                         # G_ER     [512, 13]

    def padK(w, k):       # zero-pad input rows to k (padded activation cols are zero)
        return jnp.pad(w, ((0, k - w.shape[0]), (0, 0)))

    def padN(w, n):       # zero-pad output cols to n
        return jnp.pad(w, ((0, 0), (0, n - w.shape[1])))

    bf = lambda w: w.astype(jnp.bfloat16)
    p = {
        # edge MLP, split of [src n_f | s_f | dst n_f] @ W_e
        'We1': bf(W_e[:FEAT]), 'We2': bf(W_e[FEAT:FEAT + SPA]), 'We3': bf(W_e[FEAT + SPA:]),
        'be': b_e,
        # edge lang MLP, split of [src w2v | dst w2v] @ W_el, K padded 300 -> 384
        'Wel1': bf(padK(W_el[:W2V], W2VP)), 'Wel2': bf(padK(W_el[W2V:], W2VP)),
        'bel': b_el,
        # 512 -> 1 attention heads as f32 row vectors (VPU+XLU path)
        'wa': W_a.T, 'ba': b_a, 'wal': W_al.T, 'bal': b_al,
        # node MLPs, split of [n_f | z_f] and [w2v | z_f_lang]
        'Wn1': bf(W_n[:FEAT]), 'Wn2': bf(W_n[FEAT:]), 'bn': b_n,
        'Wnl1': bf(padN(padK(W_nl[:W2V], W2VP), W2VP)),
        'Wnl2': bf(padN(padK(W_nl[W2V:], W2VP), W2VP)),
        'bnl': padN(b_nl, W2VP),
        # readout, split of [dst nf | dst nfl | s_f | src nfl | src nf]
        'Wr0a': bf(W_r0[:FEAT]),
        'Wr0b': bf(padK(W_r0[FEAT:FEAT + W2V], W2VP)),
        'Wr0c': bf(W_r0[FEAT + W2V:FEAT + W2V + SPA]),
        'Wr0d': bf(padK(W_r0[FEAT + W2V + SPA:FEAT + 2 * W2V + SPA], W2VP)),
        'Wr0e': bf(W_r0[FEAT + 2 * W2V + SPA:]),
        'br0': b_r0,
        'Wr1': bf(padN(W_r1, OUTP)), 'br1': padN(b_r1, OUTP),
    }
    return p


# ----------------------------- AGRNN forward -----------------------------

def agrnn_forward(params, node_num, feat, spatial_feat, word2vec, roi_label):
    node_num = [int(n) for n in node_num]
    N = int(sum(node_num))
    offsets = np.cumsum([0] + node_num[:-1])

    # ---- host-side graph construction (mirrors AGRNN._build_graph / dgl.batch) ----
    src_list, dst_list = [], []
    edge_id = {}
    for i, n in enumerate(node_num):
        off = int(offsets[i])
        for s in range(n):
            for d in range(n):
                if s == d:
                    continue
                edge_id[(s + off, d + off)] = len(src_list)
                src_list.append(s + off)
                dst_list.append(d + off)
    E = len(src_list)
    assert spatial_feat.shape[0] == E, "spatial_feat must have one row per graph edge"
    src = np.asarray(src_list, np.int32)
    dst = np.asarray(dst_list, np.int32)

    # incoming-edge mailbox per destination node (DGL update_all mailbox)
    in_e = [[] for _ in range(N)]
    for e in range(E):
        in_e[dst[e]].append(e)
    deg = max(1, max(len(v) for v in in_e))
    mb_edge = np.zeros((N, deg), np.int32)
    mb_src = np.zeros((N, deg), np.int32)
    mb_mask = np.zeros((N, deg), np.float32)
    for d_, lst in enumerate(in_e):
        for k, e in enumerate(lst):
            mb_edge[d_, k] = e
            mb_src[d_, k] = src[e]
            mb_mask[d_, k] = 1.0

    # readout edges (obj -> human), mirrors AGRNN._collect_edge readout_edge_list
    ro_src, ro_dst, ro_eid = [], [], []
    for i, n in enumerate(node_num):
        off = int(offsets[i])
        rl = np.asarray(roi_label[i])
        h_nodes = set(np.where(rl == 0)[0].tolist())
        for d_ in sorted(h_nodes):
            for s_ in range(rl.shape[0]):
                if s_ not in h_nodes:
                    ro_src.append(s_ + off)
                    ro_dst.append(d_ + off)
                    ro_eid.append(edge_id[(s_ + off, d_ + off)])
    ro_src_j = jnp.asarray(ro_src, jnp.int32)
    ro_dst_j = jnp.asarray(ro_dst, jnp.int32)
    ro_eid_j = jnp.asarray(ro_eid, jnp.int32)

    src_j = jnp.asarray(src)
    dst_j = jnp.asarray(dst)
    bf16 = jnp.bfloat16

    # lane-align language features 300 -> 384 (zero cols; exact, weights zero there)
    w2v_pad = jnp.pad(word2vec, ((0, 0), (0, W2VP - W2V)))

    # ---- stage 1: edge MLPs + attention scores (Pallas, split matmuls) ----
    e_f, attn = edge_stage(feat[src_j].astype(bf16), spatial_feat.astype(bf16),
                           feat[dst_j].astype(bf16),
                           w2v_pad[src_j].astype(bf16), w2v_pad[dst_j].astype(bf16),
                           params)
    a_feat = attn[:, 0:1]            # [E, 1]
    a_feat_lang = attn[:, 1:2]       # [E, 1]

    # ---- stage 2: per-node softmax aggregation over incoming edges (Pallas) ----
    mb_edge_j = jnp.asarray(mb_edge)
    mb_src_j = jnp.asarray(mb_src)
    zraw = (feat[mb_src_j] + e_f[mb_edge_j]).astype(bf16)       # [N, deg, 512] nei_n_f + e_f
    w2v_mb = w2v_pad[mb_src_j].astype(bf16)                     # [N, deg, 384]
    af_mb = a_feat[mb_edge_j][..., 0]                           # [N, deg]
    afl_mb = a_feat_lang[mb_edge_j][..., 0]                     # [N, deg]
    z_f, z_f_lang = agg_stage(af_mb, afl_mb, jnp.asarray(mb_mask),
                              zraw.reshape(N, deg * FEAT),
                              w2v_mb.reshape(N, deg * W2VP), deg)

    # ---- stage 3: node MLPs (Pallas, split matmuls) ----
    new_n_f, new_n_f_lang = node_stage(feat.astype(bf16), z_f,
                                       w2v_pad.astype(bf16), z_f_lang, params)

    # ---- stage 4: readout (Predictor) on obj->human edges (Pallas) ----
    pred = readout_stage(new_n_f[ro_dst_j], new_n_f_lang[ro_dst_j],
                         spatial_feat[ro_eid_j].astype(bf16),
                         new_n_f_lang[ro_src_j], new_n_f[ro_src_j], params)
    return pred


# ----------------------------- demo -----------------------------

if __name__ == "__main__":
    key = jax.random.PRNGKey(0)
    k_p, k_f, k_s, k_w = jax.random.split(key, 4)
    params = init_params(k_p)

    # two images, 4 ROIs each; label 0 = human, nonzero = object
    node_num = [4, 4]
    roi_label = [np.array([0, 1, 2, 0]), np.array([0, 3, 0, 5])]
    N = sum(node_num)
    E = sum(n * (n - 1) for n in node_num)      # fully connected (no self loops)

    feat = jax.random.normal(k_f, (N, FEAT), jnp.float32)            # visual node feats
    spatial_feat = jax.random.normal(k_s, (E, SPA), jnp.float32)     # per-edge spatial feats
    word2vec = jax.random.normal(k_w, (N, W2V), jnp.float32)         # language node feats

    pred = agrnn_forward(params, node_num, feat, spatial_feat, word2vec, roi_label)
    pred = jax.block_until_ready(pred)

    assert pred.shape == (8, OUT)               # 8 obj->human readout edges, 13 classes
    assert bool(jnp.all(jnp.isfinite(pred)))
    print("KERNEL_OK")
</pallas_src>

<mosaic_0001>
module attributes {stable_mosaic.version = 11 : i64} {
  func.func @_edge_kernel(%arg0: i32, %arg1: memref<128x512xbf16, #tpu.memory_space<vmem>>, %arg2: memref<128x16xbf16, #tpu.memory_space<vmem>>, %arg3: memref<128x512xbf16, #tpu.memory_space<vmem>>, %arg4: memref<128x384xbf16, #tpu.memory_space<vmem>>, %arg5: memref<128x384xbf16, #tpu.memory_space<vmem>>, %arg6: memref<512x512xbf16, #tpu.memory_space<vmem>>, %arg7: memref<16x512xbf16, #tpu.memory_space<vmem>>, %arg8: memref<512x512xbf16, #tpu.memory_space<vmem>>, %arg9: memref<1x512xf32, #tpu.memory_space<vmem>>, %arg10: memref<384x512xbf16, #tpu.memory_space<vmem>>, %arg11: memref<384x512xbf16, #tpu.memory_space<vmem>>, %arg12: memref<1x512xf32, #tpu.memory_space<vmem>>, %arg13: memref<1x512xf32, #tpu.memory_space<vmem>>, %arg14: memref<1x1xf32, #tpu.memory_space<vmem>>, %arg15: memref<1x512xf32, #tpu.memory_space<vmem>>, %arg16: memref<1x1xf32, #tpu.memory_space<vmem>>, %arg17: memref<128x512xbf16, #tpu.memory_space<vmem>>, %arg18: memref<128x128xf32, #tpu.memory_space<vmem>>) attributes {dimension_semantics = [#tpu.dimension_semantics<parallel>], iteration_bounds = array<i64: 1>, scalar_prefetch = 0 : i64, scratch_operands = 0 : i64, tpu.core_type = #tpu.core_type<tc>, window_params = [{transform_indices = @transform_0, window_bounds = array<i64: 128, 512>}, {transform_indices = @transform_1, window_bounds = array<i64: 128, 16>}, {transform_indices = @transform_2, window_bounds = array<i64: 128, 512>}, {transform_indices = @transform_3, window_bounds = array<i64: 128, 384>}, {transform_indices = @transform_4, window_bounds = array<i64: 128, 384>}, {pipeline_mode = #tpu.pipeline_mode<synchronous>, transform_indices = @transform_5, window_bounds = array<i64: 512, 512>}, {pipeline_mode = #tpu.pipeline_mode<synchronous>, transform_indices = @transform_6, window_bounds = array<i64: 16, 512>}, {pipeline_mode = #tpu.pipeline_mode<synchronous>, transform_indices = @transform_7, window_bounds = array<i64: 512, 512>}, {pipeline_mode = #tpu.pipeline_mode<synchronous>, transform_indices = @transform_8, window_bounds = array<i64: 1, 512>}, {pipeline_mode = #tpu.pipeline_mode<synchronous>, transform_indices = @transform_9, window_bounds = array<i64: 384, 512>}, {pipeline_mode = #tpu.pipeline_mode<synchronous>, transform_indices = @transform_10, window_bounds = array<i64: 384, 512>}, {pipeline_mode = #tpu.pipeline_mode<synchronous>, transform_indices = @transform_11, window_bounds = array<i64: 1, 512>}, {pipeline_mode = #tpu.pipeline_mode<synchronous>, transform_indices = @transform_12, window_bounds = array<i64: 1, 512>}, {pipeline_mode = #tpu.pipeline_mode<synchronous>, transform_indices = @transform_13, window_bounds = array<i64: 1, 1>}, {pipeline_mode = #tpu.pipeline_mode<synchronous>, transform_indices = @transform_14, window_bounds = array<i64: 1, 512>}, {pipeline_mode = #tpu.pipeline_mode<synchronous>, transform_indices = @transform_15, window_bounds = array<i64: 1, 1>}, {transform_indices = @transform_16, window_bounds = array<i64: 128, 512>}, {transform_indices = @transform_17, window_bounds = array<i64: 128, 128>}]} {
    %c0 = arith.constant 0 : index
    %c0_0 = arith.constant 0 : index
    %0 = vector.load %arg1[%c0, %c0_0] : memref<128x512xbf16, #tpu.memory_space<vmem>>, vector<128x512xbf16>
    %c0_1 = arith.constant 0 : index
    %c0_2 = arith.constant 0 : index
    %1 = vector.load %arg6[%c0_1, %c0_2] : memref<512x512xbf16, #tpu.memory_space<vmem>>, vector<512x512xbf16>
    %cst = arith.constant dense<0.000000e+00> : vector<128x512xf32>
    %2 = tpu.matmul %0, %1, %cst {dimension_numbers = #tpu.dot_dimension_numbers<[1], [0], [0], [1], [0, 0, 1, 1], [], []>} : vector<128x512xbf16>, vector<512x512xbf16>, vector<128x512xf32> -> vector<128x512xf32>
    %c0_3 = arith.constant 0 : index
    %c0_4 = arith.constant 0 : index
    %3 = vector.load %arg2[%c0_3, %c0_4] : memref<128x16xbf16, #tpu.memory_space<vmem>>, vector<128x16xbf16>
    %c0_5 = arith.constant 0 : index
    %c0_6 = arith.constant 0 : index
    %4 = vector.load %arg7[%c0_5, %c0_6] : memref<16x512xbf16, #tpu.memory_space<vmem>>, vector<16x512xbf16>
    %cst_7 = arith.constant dense<0.000000e+00> : vector<128x512xf32>
    %5 = tpu.matmul %3, %4, %cst_7 {dimension_numbers = #tpu.dot_dimension_numbers<[1], [0], [0], [1], [0, 0, 1, 1], [], []>} : vector<128x16xbf16>, vector<16x512xbf16>, vector<128x512xf32> -> vector<128x512xf32>
    %6 = arith.addf %2, %5 : vector<128x512xf32>
    %c0_8 = arith.constant 0 : index
    %c0_9 = arith.constant 0 : index
    %7 = vector.load %arg3[%c0_8, %c0_9] : memref<128x512xbf16, #tpu.memory_space<vmem>>, vector<128x512xbf16>
    %c0_10 = arith.constant 0 : index
    %c0_11 = arith.constant 0 : index
    %8 = vector.load %arg8[%c0_10, %c0_11] : memref<512x512xbf16, #tpu.memory_space<vmem>>, vector<512x512xbf16>
    %cst_12 = arith.constant dense<0.000000e+00> : vector<128x512xf32>
    %9 = tpu.matmul %7, %8, %cst_12 {dimension_numbers = #tpu.dot_dimension_numbers<[1], [0], [0], [1], [0, 0, 1, 1], [], []>} : vector<128x512xbf16>, vector<512x512xbf16>, vector<128x512xf32> -> vector<128x512xf32>
    %10 = arith.addf %6, %9 : vector<128x512xf32>
    %c0_13 = arith.constant 0 : index
    %c0_14 = arith.constant 0 : index
    %11 = vector.load %arg9[%c0_13, %c0_14] : memref<1x512xf32, #tpu.memory_space<vmem>>, vector<1x512xf32>
    %12 = vector.broadcast %11 : vector<1x512xf32> to vector<128x512xf32>
    %13 = arith.addf %10, %12 : vector<128x512xf32>
    %cst_15 = arith.constant 0.000000e+00 : f32
    %14 = vector.broadcast %cst_15 : f32 to vector<128x512xf32>
    %15 = arith.maximumf %13, %14 : vector<128x512xf32>
    %c0_16 = arith.constant 0 : index
    %c0_17 = arith.constant 0 : index
    %16 = vector.load %arg4[%c0_16, %c0_17] : memref<128x384xbf16, #tpu.memory_space<vmem>>, vector<128x384xbf16>
    %c0_18 = arith.constant 0 : index
    %c0_19 = arith.constant 0 : index
    %17 = vector.load %arg10[%c0_18, %c0_19] : memref<384x512xbf16, #tpu.memory_space<vmem>>, vector<384x512xbf16>
    %cst_20 = arith.constant dense<0.000000e+00> : vector<128x512xf32>
    %18 = tpu.matmul %16, %17, %cst_20 {dimension_numbers = #tpu.dot_dimension_numbers<[1], [0], [0], [1], [0, 0, 1, 1], [], []>} : vector<128x384xbf16>, vector<384x512xbf16>, vector<128x512xf32> -> vector<128x512xf32>
    %c0_21 = arith.constant 0 : index
    %c0_22 = arith.constant 0 : index
    %19 = vector.load %arg5[%c0_21, %c0_22] : memref<128x384xbf16, #tpu.memory_space<vmem>>, vector<128x384xbf16>
    %c0_23 = arith.constant 0 : index
    %c0_24 = arith.constant 0 : index
    %20 = vector.load %arg11[%c0_23, %c0_24] : memref<384x512xbf16, #tpu.memory_space<vmem>>, vector<384x512xbf16>
    %cst_25 = arith.constant dense<0.000000e+00> : vector<128x512xf32>
    %21 = tpu.matmul %19, %20, %cst_25 {dimension_numbers = #tpu.dot_dimension_numbers<[1], [0], [0], [1], [0, 0, 1, 1], [], []>} : vector<128x384xbf16>, vector<384x512xbf16>, vector<128x512xf32> -> vector<128x512xf32>
    %22 = arith.addf %18, %21 : vector<128x512xf32>
    %c0_26 = arith.constant 0 : index
    %c0_27 = arith.constant 0 : index
    %23 = vector.load %arg12[%c0_26, %c0_27] : memref<1x512xf32, #tpu.memory_space<vmem>>, vector<1x512xf32>
    %24 = vector.broadcast %23 : vector<1x512xf32> to vector<128x512xf32>
    %25 = arith.addf %22, %24 : vector<128x512xf32>
    %cst_28 = arith.constant 0.000000e+00 : f32
    %26 = vector.broadcast %cst_28 : f32 to vector<128x512xf32>
    %27 = arith.maximumf %25, %26 : vector<128x512xf32>
    %28 = arith.truncf %15 : vector<128x512xf32> to vector<128x512xbf16>
    %c0_29 = arith.constant 0 : index
    %c0_30 = arith.constant 0 : index
    %29 = vector.load %arg17[%c0_29, %c0_30] : memref<128x512xbf16, #tpu.memory_space<vmem>>, vector<128x512xbf16>
    tpu.vector_store %arg17[%c0_29, %c0_30], %28 {strides = array<i32>} : memref<128x512xbf16, #tpu.memory_space<vmem>>, vector<128x512xbf16>,
    %c0_31 = arith.constant 0 : index
    %c0_32 = arith.constant 0 : index
    %30 = vector.load %arg13[%c0_31, %c0_32] : memref<1x512xf32, #tpu.memory_space<vmem>>, vector<1x512xf32>
    %31 = vector.broadcast %30 : vector<1x512xf32> to vector<128x512xf32>
    %32 = arith.mulf %15, %31 : vector<128x512xf32>
    %cst_33 = arith.constant dense<0.000000e+00> : vector<128xf32>
    %33 = vector.multi_reduction <add>, %32, %cst_33 [1] : vector<128x512xf32> to vector<128xf32>
    %34 = vector.shape_cast %33 : vector<128xf32> to vector<128x1xf32>
    %c0_34 = arith.constant 0 : index
    %c0_35 = arith.constant 0 : index
    %35 = vector.load %arg14[%c0_34, %c0_35] : memref<1x1xf32, #tpu.memory_space<vmem>>, vector<1x1xf32>
    %36 = vector.broadcast %35 : vector<1x1xf32> to vector<128x1xf32>
    %37 = arith.addf %34, %36 : vector<128x1xf32>
    %c0_36 = arith.constant 0 : index
    %c0_37 = arith.constant 0 : index
    %38 = vector.load %arg15[%c0_36, %c0_37] : memref<1x512xf32, #tpu.memory_space<vmem>>, vector<1x512xf32>
    %39 = vector.broadcast %38 : vector<1x512xf32> to vector<128x512xf32>
    %40 = arith.mulf %27, %39 : vector<128x512xf32>
    %cst_38 = arith.constant dense<0.000000e+00> : vector<128xf32>
    %41 = vector.multi_reduction <add>, %40, %cst_38 [1] : vector<128x512xf32> to vector<128xf32>
    %42 = vector.shape_cast %41 : vector<128xf32> to vector<128x1xf32>
    %c0_39 = arith.constant 0 : index
    %c0_40 = arith.constant 0 : index
    %43 = vector.load %arg16[%c0_39, %c0_40] : memref<1x1xf32, #tpu.memory_space<vmem>>, vector<1x1xf32>
    %44 = vector.broadcast %43 : vector<1x1xf32> to vector<128x1xf32>
    %45 = arith.addf %42, %44 : vector<128x1xf32>
    %cst_41 = arith.constant 0.000000e+00 : f32
    %46 = vector.broadcast %cst_41 : f32 to vector<128x1xf32>
    %47 = arith.cmpf ogt, %37, %46 : vector<128x1xf32>
    %cst_42 = arith.constant 2.000000e-01 : f32
    %48 = vector.broadcast %cst_42 : f32 to vector<128x1xf32>
    %49 = arith.mulf %48, %37 : vector<128x1xf32>
    %50 = arith.select %47, %37, %49 : vector<128x1xi1>, vector<128x1xf32>
    %cst_43 = arith.constant 0.000000e+00 : f32
    %51 = vector.broadcast %cst_43 : f32 to vector<128x1xf32>
    %52 = arith.cmpf ogt, %45, %51 : vector<128x1xf32>
    %cst_44 = arith.constant 2.000000e-01 : f32
    %53 = vector.broadcast %cst_44 : f32 to vector<128x1xf32>
    %54 = arith.mulf %53, %45 : vector<128x1xf32>
    %55 = arith.select %52, %45, %54 : vector<128x1xi1>, vector<128x1xf32>
    %56 = tpu.iota {dimensions = array<i32: 1>} : vector<128x128xi32>
    %c0_i32 = arith.constant 0 : i32
    %57 = vector.broadcast %c0_i32 : i32 to vector<128x128xi32>
    %58 = arith.cmpi eq, %56, %57 : vector<128x128xi32>
    %c1_i32 = arith.constant 1 : i32
    %59 = vector.broadcast %c1_i32 : i32 to vector<128x128xi32>
    %60 = arith.cmpi eq, %56, %59 : vector<128x128xi32>
    %cst_45 = arith.constant 0.000000e+00 : f32
    %61 = vector.shape_cast %55 : vector<128x1xf32> to vector<128x1xf32>
    %62 = vector.broadcast %61 : vector<128x1xf32> to vector<128x128xf32>
    %63 = vector.broadcast %cst_45 : f32 to vector<128x128xf32>
    %64 = arith.select %60, %62, %63 : vector<128x128xi1>, vector<128x128xf32>
    %65 = vector.shape_cast %50 : vector<128x1xf32> to vector<128x1xf32>
    %66 = vector.broadcast %65 : vector<128x1xf32> to vector<128x128xf32>
    %67 = arith.select %58, %66, %64 : vector<128x128xi1>, vector<128x128xf32>
    %c0_46 = arith.constant 0 : index
    %c0_47 = arith.constant 0 : index
    %68 = vector.load %arg18[%c0_46, %c0_47] : memref<128x128xf32, #tpu.memory_space<vmem>>, vector<128x128xf32>
    tpu.vector_store %arg18[%c0_46, %c0_47], %67 {strides = array<i32>} : memref<128x128xf32, #tpu.memory_space<vmem>>, vector<128x128xf32>,
    return
  }
  func.func @transform_0(%arg0: i32) -> (i32, i32) {
    %c0_i32 = arith.constant 0 : i32
    %c0_i32_0 = arith.constant 0 : i32
    return %arg0, %c0_i32 : i32, i32
  }
  func.func @transform_1(%arg0: i32) -> (i32, i32) {
    %c0_i32 = arith.constant 0 : i32
    %c0_i32_0 = arith.constant 0 : i32
    return %arg0, %c0_i32 : i32, i32
  }
  func.func @transform_2(%arg0: i32) -> (i32, i32) {
    %c0_i32 = arith.constant 0 : i32
    %c0_i32_0 = arith.constant 0 : i32
    return %arg0, %c0_i32 : i32, i32
  }
  func.func @transform_3(%arg0: i32) -> (i32, i32) {
    %c0_i32 = arith.constant 0 : i32
    %c0_i32_0 = arith.constant 0 : i32
    return %arg0, %c0_i32 : i32, i32
  }
  func.func @transform_4(%arg0: i32) -> (i32, i32) {
    %c0_i32 = arith.constant 0 : i32
    %c0_i32_0 = arith.constant 0 : i32
    return %arg0, %c0_i32 : i32, i32
  }
  func.func @transform_5(%arg0: i32) -> (i32, i32) {
    %c0_i32 = arith.constant 0 : i32
    %c0_i32_0 = arith.constant 0 : i32
    %c0_i32_1 = arith.constant 0 : i32
    return %c0_i32, %c0_i32_0 : i32, i32
  }
  func.func @transform_6(%arg0: i32) -> (i32, i32) {
    %c0_i32 = arith.constant 0 : i32
    %c0_i32_0 = arith.constant 0 : i32
    %c0_i32_1 = arith.constant 0 : i32
    return %c0_i32, %c0_i32_0 : i32, i32
  }
  func.func @transform_7(%arg0: i32) -> (i32, i32) {
    %c0_i32 = arith.constant 0 : i32
    %c0_i32_0 = arith.constant 0 : i32
    %c0_i32_1 = arith.constant 0 : i32
    return %c0_i32, %c0_i32_0 : i32, i32
  }
  func.func @transform_8(%arg0: i32) -> (i32, i32) {
    %c0_i32 = arith.constant 0 : i32
    %c0_i32_0 = arith.constant 0 : i32
    %c0_i32_1 = arith.constant 0 : i32
    return %c0_i32, %c0_i32_0 : i32, i32
  }
  func.func @transform_9(%arg0: i32) -> (i32, i32) {
    %c0_i32 = arith.constant 0 : i32
    %c0_i32_0 = arith.constant 0 : i32
    %c0_i32_1 = arith.constant 0 : i32
    return %c0_i32, %c0_i32_0 : i32, i32
  }
  func.func @transform_10(%arg0: i32) -> (i32, i32) {
    %c0_i32 = arith.constant 0 : i32
    %c0_i32_0 = arith.constant 0 : i32
    %c0_i32_1 = arith.constant 0 : i32
    return %c0_i32, %c0_i32_0 : i32, i32
  }
  func.func @transform_11(%arg0: i32) -> (i32, i32) {
    %c0_i32 = arith.constant 0 : i32
    %c0_i32_0 = arith.constant 0 : i32
    %c0_i32_1 = arith.constant 0 : i32
    return %c0_i32, %c0_i32_0 : i32, i32
  }
  func.func @transform_12(%arg0: i32) -> (i32, i32) {
    %c0_i32 = arith.constant 0 : i32
    %c0_i32_0 = arith.constant 0 : i32
    %c0_i32_1 = arith.constant 0 : i32
    return %c0_i32, %c0_i32_0 : i32, i32
  }
  func.func @transform_13(%arg0: i32) -> (i32, i32) {
    %c0_i32 = arith.constant 0 : i32
    %c0_i32_0 = arith.constant 0 : i32
    %c0_i32_1 = arith.constant 0 : i32
    return %c0_i32, %c0_i32_0 : i32, i32
  }
  func.func @transform_14(%arg0: i32) -> (i32, i32) {
    %c0_i32 = arith.constant 0 : i32
    %c0_i32_0 = arith.constant 0 : i32
    %c0_i32_1 = arith.constant 0 : i32
    return %c0_i32, %c0_i32_0 : i32, i32
  }
  func.func @transform_15(%arg0: i32) -> (i32, i32) {
    %c0_i32 = arith.constant 0 : i32
    %c0_i32_0 = arith.constant 0 : i32
    %c0_i32_1 = arith.constant 0 : i32
    return %c0_i32, %c0_i32_0 : i32, i32
  }
  func.func @transform_16(%arg0: i32) -> (i32, i32) {
    %c0_i32 = arith.constant 0 : i32
    %c0_i32_0 = arith.constant 0 : i32
    return %arg0, %c0_i32 : i32, i32
  }
  func.func @transform_17(%arg0: i32) -> (i32, i32) {
    %c0_i32 = arith.constant 0 : i32
    %c0_i32_0 = arith.constant 0 : i32
    return %arg0, %c0_i32 : i32, i32
  }
}

</mosaic_0001>

<bundles_post_ra>
// kernel: tpu_custom_call.1
= control target key start
LH: loop header
LB: loop body
LE: loop exit
PB: predicated region body
PF: predicated region fallthrough
CT: control target
= control target key end

     0   :  { %s10072_s0 = inlined_call_operand.hbm [shape: bf16[128,512], index: 0, kind: input, shape index: {}]   ;;  %s10073_s1 = inlined_call_operand.vmem [shape: bf16[128,16], index: 1, kind: input, shape index: {}]   ;;  %s10074_s2 = inlined_call_operand.hbm [shape: bf16[128,512], index: 2, kind: input, shape index: {}]   ;;  %s10075_s3 = inlined_call_operand.hbm [shape: bf16[128,384], index: 3, kind: input, shape index: {}]   ;;  %s10076_s4 = inlined_call_operand.hbm [shape: bf16[128,384], index: 4, kind: input, shape index: {}]   ;;  %s10077_s5 = inlined_call_operand.hbm [shape: bf16[512,512], index: 5, kind: input, shape index: {}]   ;;  %s10078_s6 = inlined_call_operand.vmem [shape: bf16[16,512], index: 6, kind: input, shape index: {}]   ;;  %s10079_s7 = inlined_call_operand.hbm [shape: bf16[512,512], index: 7, kind: input, shape index: {}]   ;;  %s10080_s8 = inlined_call_operand.vmem [shape: f32[1,512], index: 8, kind: input, shape index: {}]   ;;  %s10081_s9 = inlined_call_operand.hbm [shape: bf16[384,512], index: 9, kind: input, shape index: {}]   ;;  %s10082_s10 = inlined_call_operand.hbm [shape: bf16[384,512], index: 10, kind: input, shape index: {}]   ;;  %s10083_s11 = inlined_call_operand.vmem [shape: f32[1,512], index: 11, kind: input, shape index: {}]   ;;  %s10084_s12 = inlined_call_operand.vmem [shape: f32[1,512], index: 12, kind: input, shape index: {}]   ;;  %s10085_s13 = inlined_call_operand.<no memory space> [shape: f32[1,1], index: 13, kind: input, shape index: {}]   ;;  %s10086_s14 = inlined_call_operand.vmem [shape: f32[1,512], index: 14, kind: input, shape index: {}]   ;;  %s10087_s16 = inlined_call_operand.hbm [shape: bf16[128,512], index: 16, kind: output, shape index: {0}]   ;;  %s10088_s17 = inlined_call_operand.hbm [shape: f32[128,128], index: 17, kind: output, shape index: {1}]   ;;  %s10089_s15 = inlined_call_operand.<no memory space> [shape: f32[1,1], index: 15, kind: input, shape index: {}]  }
   0x1   :  { %10092 = sst [smem:[#allocation28_spill]] %s10072_s0  ;;  %v23_v0 = vstv %s10085_s13  ;;  %v25_v1 = vstv %s10089_s15 }
   0x2   :  { %10093 = sst [smem:[#allocation29_spill]] %s10073_s1  ;;  %24 = vst [vmem:[#allocation2] sm:$0x1] %v23_v0  ;;  %26 = vst [vmem:[#allocation3] sm:$0x1] %v25_v1 }
   0x3   :  { %27 = vsyncpa [#allocation5], 0 }
   0x4   :  { %28 = vsyncpa [#allocation8], 0 }
   0x5   :  { %29 = vsyncpa [#allocation11], 0 }
   0x6   :  { %30 = vsyncpa [#allocation14], 0 }
   0x7   :  { %31 = vsyncpa [#allocation17], 0 }
   0x8   :  { %32 = vsyncpa [#allocation6], 0 }
   0x9   :  { %33 = vsyncpa [#allocation20], 0  ;;  %s9215_s28 = smov [#allocation7]   ;;  %s8981_s13 = scalar_lea.hbm %s10074_s2, 4096 }
   0xa   :  { %s53_s29 = sshll.u32 %s9215_s28, 4  ;;  %p8982_p0 = scmp.ne.s32.totalorder %s10074_s2, %s8981_s13  ;;  %s54_s29 = int_to_ptr.vmem [resolvable:$true] %s53_s29 }
   0xb   :  { %p8985_p1 = scmp.lt.u32.totalorder %s8981_s13, %s10074_s2 }
   0xd   :  { %p8987_p2 = pnand %p8985_p1, %p8982_p0 }
   0xf   :  { %8990 = shalt.err (!%p8987_p2)
}
  0x10   :  { %s8991_s20 = scalar_lea.vmem %s54_s29, 4096  ;;  %p8996_p4 = scmp.lt.s32.totalorder %s54_s29, %s54_s29 }
  0x11   :  { %p8992_p3 = scmp.ne.s32.totalorder %s54_s29, %s8991_s20  ;;  %p8997_p5 = scmp.lt.s32.totalorder %s8991_s20, %s8991_s20 }
  0x13   :  { %p8998_p6 = por %p8997_p5, %p8996_p4 }
  0x15   :  { %p8999_p7 = pnand %p8998_p6, %p8992_p3 }
  0x17   :  { %9002 = shalt.err (!%p8999_p7)
}
  0x18   :  { %s9216_s21 = smov 256   ;;  %s9217_s22 = smov 16  }
  0x19   :  { %59 = dma.hbm_to_vmem [thread:$0]  %s10074_s2, 4096, %s54_s29, [#allocation8], %s9216_s21, %s9216_s21, %s9217_s22  }
  0x1a   :  { %s9218_s25 = smov [#allocation10]   ;;  %s9219_s27 = smov [#allocation13]  }
  0x1b   :  { %s77_s26 = sshll.u32 %s9218_s25, 4  ;;  %s103_s28 = sshll.u32 %s9219_s27, 4  ;;  %s78_s26 = int_to_ptr.vmem [resolvable:$true] %s77_s26  ;;  %s104_s28 = int_to_ptr.vmem [resolvable:$true] %s103_s28 }
  0x1c   :  { %s9003_s13 = scalar_lea.hbm %s10076_s4, 3072 }
  0x1d   :  { %p9004_p8 = scmp.ne.s32.totalorder %s10076_s4, %s9003_s13  ;;  %p9007_p9 = scmp.lt.u32.totalorder %s9003_s13, %s10076_s4 }
  0x1f   :  { %p9009_p10 = pnand %p9007_p9, %p9004_p8 }
  0x21   :  { %9012 = shalt.err (!%p9009_p10)
}
  0x22   :  { %s9013_s2 = scalar_lea.vmem %s78_s26, 3072  ;;  %p9018_p12 = scmp.lt.s32.totalorder %s78_s26, %s78_s26 }
  0x23   :  { %p9014_p11 = scmp.ne.s32.totalorder %s78_s26, %s9013_s2  ;;  %p9019_p13 = scmp.lt.s32.totalorder %s9013_s2, %s9013_s2 }
  0x25   :  { %p9020_p0 = por %p9019_p13, %p9018_p12 }
  0x27   :  { %p9021_p1 = pnand %p9020_p0, %p9014_p11 }
  0x29   :  { %9024 = shalt.err (!%p9021_p1)
}
  0x2a   :  { %s9220_s29 = smov 192   ;;  %s9221_s20 = smov 12  }
  0x2b   :  { %83 = dma.hbm_to_vmem [thread:$0]  %s10076_s4, 3072, %s78_s26, [#allocation11], %s9220_s29, %s9220_s29, %s9221_s20  }
  0x2c   :  { %s9025_s0 = scalar_lea.hbm %s10079_s7, 16384 }
  0x2d   :  { %p9026_p2 = scmp.ne.s32.totalorder %s10079_s7, %s9025_s0  ;;  %p9029_p3 = scmp.lt.u32.totalorder %s9025_s0, %s10079_s7 }
  0x2f   :  { %p9031_p4 = pnand %p9029_p3, %p9026_p2 }
  0x31   :  { %9034 = shalt.err (!%p9031_p4)
}
  0x32   :  { %s9035_s15 = scalar_lea.vmem %s104_s28, 16384  ;;  %p9040_p6 = scmp.lt.s32.totalorder %s104_s28, %s104_s28 }
  0x33   :  { %p9036_p5 = scmp.ne.s32.totalorder %s104_s28, %s9035_s15  ;;  %p9041_p7 = scmp.lt.s32.totalorder %s9035_s15, %s9035_s15 }
  0x35   :  { %p9042_p8 = por %p9041_p7, %p9040_p6 }
  0x37   :  { %p9043_p9 = pnand %p9042_p8, %p9036_p5 }
  0x39   :  { %9046 = shalt.err (!%p9043_p9)
}
  0x3a   :  { %109 = dma.hbm_to_vmem [thread:$0]  %s10079_s7, 16384, %s104_s28, [#allocation14], %s9216_s21, %s9216_s21, %s9217_s22  }
  0x3b   :  { %s9222_s1 = smov [#allocation4]   ;;  %s9223_s23 = smov [#allocation9]  }
  0x3c   :  { %s39_s2 = sshll.u32 %s9222_s1, 4  ;;  %s65_s24 = sshll.u32 %s9223_s23, 4  ;;  %s40_s2 = int_to_ptr.vmem [resolvable:$true] %s39_s2  ;;  %s66_s24 = int_to_ptr.vmem [resolvable:$true] %s65_s24 }
  0x3d   :  { %s10094_s0 = sld [smem:[#allocation28_spill]] }
  0x43   :  { %s9047_s30 = scalar_lea.hbm %s10094_s0, 4096 }
  0x44   :  { %p9048_p10 = scmp.ne.s32.totalorder %s10094_s0, %s9047_s30  ;;  %p9051_p11 = scmp.lt.u32.totalorder %s9047_s30, %s10094_s0 }
  0x46   :  { %p9053_p12 = pnand %p9051_p11, %p9048_p10 }
  0x48   :  { %9056 = shalt.err (!%p9053_p12)
}
  0x49   :  { %s9057_s7 = scalar_lea.vmem %s40_s2, 4096  ;;  %p9062_p0 = scmp.lt.s32.totalorder %s40_s2, %s40_s2 }
  0x4a   :  { %p9058_p13 = scmp.ne.s32.totalorder %s40_s2, %s9057_s7  ;;  %p9063_p1 = scmp.lt.s32.totalorder %s9057_s7, %s9057_s7 }
  0x4c   :  { %p9064_p2 = por %p9063_p1, %p9062_p0 }
  0x4e   :  { %p9065_p3 = pnand %p9064_p2, %p9058_p13 }
  0x50   :  { %9068 = shalt.err (!%p9065_p3)
}
  0x51   :  { %45 = dma.hbm_to_vmem [thread:$0]  %s10094_s0, 4096, %s40_s2, [#allocation5], %s9216_s21, %s9216_s21, %s9217_s22  }
  0x52   :  { %s9069_s23 = scalar_lea.hbm %s10075_s3, 3072 }
  0x53   :  { %p9070_p4 = scmp.ne.s32.totalorder %s10075_s3, %s9069_s23  ;;  %p9073_p5 = scmp.lt.u32.totalorder %s9069_s23, %s10075_s3 }
  0x55   :  { %p9075_p6 = pnand %p9073_p5, %p9070_p4 }
  0x57   :  { %9078 = shalt.err (!%p9075_p6)
}
  0x58   :  { %s9079_s18 = scalar_lea.vmem %s66_s24, 3072  ;;  %p9084_p8 = scmp.lt.s32.totalorder %s66_s24, %s66_s24 }
  0x59   :  { %p9080_p7 = scmp.ne.s32.totalorder %s66_s24, %s9079_s18  ;;  %p9085_p9 = scmp.lt.s32.totalorder %s9079_s18, %s9079_s18 }
  0x5b   :  { %p9086_p10 = por %p9085_p9, %p9084_p8 }
  0x5d   :  { %p9087_p11 = pnand %p9086_p10, %p9080_p7 }
  0x5f   :  { %9090 = shalt.err (!%p9087_p11)
}
  0x60   :  { %71 = dma.hbm_to_vmem [thread:$0]  %s10075_s3, 3072, %s66_s24, [#allocation8], %s9220_s29, %s9220_s29, %s9221_s20  }
  0x61   :  { %s9224_s19 = smov [#allocation12]   ;;  %s9225_s7 = smov [#allocation15]  }
  0x62   :  { %s89_s15 = sshll.u32 %s9224_s19, 4  ;;  %s117_s28 = sshll.u32 %s9225_s7, 4  ;;  %s90_s15 = int_to_ptr.vmem [resolvable:$true] %s89_s15  ;;  %s118_s28 = int_to_ptr.vmem [resolvable:$true] %s117_s28 }
  0x63   :  { %s9091_s1 = scalar_lea.hbm %s10077_s5, 16384 }
  0x64   :  { %p9092_p12 = scmp.ne.s32.totalorder %s10077_s5, %s9091_s1  ;;  %p9095_p13 = scmp.lt.u32.totalorder %s9091_s1, %s10077_s5 }
  0x66   :  { %p9097_p0 = pnand %p9095_p13, %p9092_p12 }
  0x68   :  { %9100 = shalt.err (!%p9097_p0)
}
  0x69   :  { %s9101_s3 = scalar_lea.vmem %s90_s15, 16384  ;;  %p9106_p2 = scmp.lt.s32.totalorder %s90_s15, %s90_s15 }
  0x6a   :  { %p9102_p1 = scmp.ne.s32.totalorder %s90_s15, %s9101_s3  ;;  %p9107_p3 = scmp.lt.s32.totalorder %s9101_s3, %s9101_s3 }
  0x6c   :  { %p9108_p4 = por %p9107_p3, %p9106_p2 }
  0x6e   :  { %p9109_p5 = pnand %p9108_p4, %p9102_p1 }
  0x70   :  { %9112 = shalt.err (!%p9109_p5)
}
  0x71   :  { %95 = dma.hbm_to_vmem [thread:$0]  %s10077_s5, 16384, %s90_s15, [#allocation11], %s9216_s21, %s9216_s21, %s9217_s22  }
  0x72   :  { %s9113_s18 = scalar_lea.hbm %s10081_s9, 12288 }
  0x73   :  { %p9114_p6 = scmp.ne.s32.totalorder %s10081_s9, %s9113_s18  ;;  %p9117_p7 = scmp.lt.u32.totalorder %s9113_s18, %s10081_s9 }
  0x75   :  { %p9119_p8 = pnand %p9117_p7, %p9114_p6 }
  0x77   :  { %9122 = shalt.err (!%p9119_p8)
}
  0x78   :  { %s9123_s4 = scalar_lea.vmem %s118_s28, 12288  ;;  %p9128_p10 = scmp.lt.s32.totalorder %s118_s28, %s118_s28 }
  0x79   :  { %p9124_p9 = scmp.ne.s32.totalorder %s118_s28, %s9123_s4  ;;  %p9129_p11 = scmp.lt.s32.totalorder %s9123_s4, %s9123_s4 }
  0x7b   :  { %p9130_p12 = por %p9129_p11, %p9128_p10 }
  0x7d   :  { %p9131_p13 = pnand %p9130_p12, %p9124_p9 }
  0x7f   :  { %9134 = shalt.err (!%p9131_p13)
}
  0x80   :  { %123 = dma.hbm_to_vmem [thread:$0]  %s10081_s9, 12288, %s118_s28, [#allocation14], %s9216_s21, %s9216_s21, %s9217_s22  }
  0x81   :  { %s9226_s26 = smov [#allocation16]   ;;  %s9135_s27 = scalar_lea.hbm %s10082_s10, 12288 }
  0x82   :  { %s129_s1 = sshll.u32 %s9226_s26, 4  ;;  %p9136_p0 = scmp.ne.s32.totalorder %s10082_s10, %s9135_s27  ;;  %s130_s1 = int_to_ptr.vmem [resolvable:$true] %s129_s1 }
  0x83   :  { %p9139_p1 = scmp.lt.u32.totalorder %s9135_s27, %s10082_s10 }
  0x85   :  { %p9141_p2 = pnand %p9139_p1, %p9136_p0 }
  0x87   :  { %9144 = shalt.err (!%p9141_p2)
}
  0x88   :  { %s9145_s24 = scalar_lea.vmem %s130_s1, 12288  ;;  %p9150_p4 = scmp.lt.s32.totalorder %s130_s1, %s130_s1 }
  0x89   :  { %p9146_p3 = scmp.ne.s32.totalorder %s130_s1, %s9145_s24  ;;  %p9151_p5 = scmp.lt.s32.totalorder %s9145_s24, %s9145_s24 }
  0x8b   :  { %p9152_p6 = por %p9151_p5, %p9150_p4 }
  0x8d   :  { %p9153_p7 = pnand %p9152_p6, %p9146_p3 }
  0x8f   :  { %9156 = shalt.err (!%p9153_p7)
}
  0x90   :  { %135 = dma.hbm_to_vmem [thread:$0]  %s10082_s10, 12288, %s130_s1, [#allocation17], %s9216_s21, %s9216_s21, %s9217_s22  }
  0x91   :  { %9201 = dma.done.wait [#allocation5], 4096  }
  0x92   :  { %9202 = vsyncadd [#allocation5], 4294963200 }
  0x93   :  { %9203 = dma.done.wait [#allocation8], 7168  }
  0x94   :  { %9204 = vsyncadd [#allocation8], 4294960128 }
  0x95   :  { %9205 = dma.done.wait [#allocation11], 19456  }
  0x96   :  { %9206 = vsyncadd [#allocation11], 4294947840 }
  0x97   :  { %9207 = dma.done.wait [#allocation14], 28672  }
  0x98   :  { %9208 = vsyncadd [#allocation14], 4294938624 }
  0x99   :  { %9209 = dma.done.wait [#allocation17], 12288  }
  0x9a   :  { %9210 = vsyncadd [#allocation17], 4294955008  ;;  %v9227_v2 = vmov 0   ;;  %v8134_v3 = vld [vmem:[%s10078_s6 + $0x4] ss:$16 sps:$4 sm:$0xff]   ;;  %s10095_s26 = sld [smem:[#allocation29_spill]] }
  0x9b   :  { %468 = vmatprep.mubr.bf16.mxu0 %v9227_v2  ;;  %581 = vmatprep.mubr.bf16.mxu1 %v9227_v2  ;;  %v8136_v4 = vld [vmem:[%s10078_s6 + $0xc] ss:$16 sps:$4 sm:$0xff]   ;;  %v8138_v5 = vld [vmem:[%s10078_s6] ss:$16 sps:$4 sm:$0xff]   ;;  %v8139_v6 = vld [vmem:[%s10078_s6 + $0x8] ss:$16 sps:$4 sm:$0xff]  }
  0x9c   :  { %8132 = vset.pattern.permute.xlu1 %v9227_v2  ;;  %8133 = vset.pattern.permute.xlu0 %v9227_v2  ;;  %vm411_vm0 = vcmask 130048   ;;  %v8141_v8 = vld [vmem:[#allocation12] ss:$16 sps:$4 sm:$0xff]   ;;  %v8143_v9 = vld [vmem:[#allocation12 + $0x4] ss:$16 sps:$4 sm:$0xff]  }
  0x9d   :  { %436 = vmatprep.subr.bf16.mxu0 %v8134_v3  ;;  %549 = vmatprep.subr.bf16.mxu1 %v8136_v4  ;;  %v8144_v10 = vld [vmem:[#allocation12 + $0x8] ss:$16 sps:$4 sm:$0xff]   ;;  %v8146_v11 = vld [vmem:[#allocation12 + $0xc] ss:$16 sps:$4 sm:$0xff]   ;;  %v8149_v12 = vld [vmem:[#allocation12 + $0x24] ss:$16 sps:$4 sm:$0xff]  }
  0x9e   :  { %437 = vmatpush1.bf16.msra.mxu0 %v8138_v5  ;;  %550 = vmatpush1.bf16.msra.mxu1 %v8139_v6  ;;  %v8147_v13 = vld [vmem:[#allocation12 + $0x20] ss:$16 sps:$4 sm:$0xff]   ;;  %v8152_v14 = vld [vmem:[#allocation12 + $0x2c] ss:$16 sps:$4 sm:$0xff]   ;;  %v8150_v15 = vld [vmem:[#allocation12 + $0x28] ss:$16 sps:$4 sm:$0xff]  }
  0x9f   :  { %1462 = vmatprep.subr.bf16.mxu0 %v8143_v9  ;;  %1688 = vmatprep.subr.bf16.mxu1 %v8146_v11  ;;  %v8156_v17 = vld [vmem:[#allocation12 + $0x44] ss:$16 sps:$4 sm:$0xff]   ;;  %v8154_v18 = vld [vmem:[#allocation12 + $0x40] ss:$16 sps:$4 sm:$0xff]   ;;  %v8159_v19 = vld [vmem:[#allocation12 + $0x4c] ss:$16 sps:$4 sm:$0xff]  }
  0xa0   :  { %v8140_v7 = vld [vmem:[%s10095_s26] sm:$0xff]   ;;  %v8153_v16 = vld [vmem:[%s10095_s26 + $0x8] sm:$0xff]   ;;  %v8166_v27 = vld [vmem:[%s10095_s26 + $0x10] sm:$0xff]  }
  0xa1   :  { %7025 = vmatmul.mubr.msk.bf16.vlgmr.msra.gmra.mrb[0].mxu0 %vm411_vm0, %v8140_v7  ;;  %7033 = vmatmul.mubr.msk.bf16.vlgmr.msra.gmra.mrb[0].mxu1 %vm411_vm0, %v8140_v7  ;;  %v8157_v20 = vld [vmem:[#allocation12 + $0x48] ss:$16 sps:$4 sm:$0xff]   ;;  %v8162_v21 = vld [vmem:[#allocation12 + $0x64] ss:$16 sps:$4 sm:$0xff]   ;;  %v8165_v22 = vld [vmem:[#allocation12 + $0x6c] ss:$16 sps:$4 sm:$0xff]  }
  0xa2   :  { %1463 = vmatpush1.bf16.msra.mxu0 %v8141_v8  ;;  %1689 = vmatpush1.bf16.msra.mxu1 %v8144_v10  ;;  %v8160_v23 = vld [vmem:[#allocation12 + $0x60] ss:$16 sps:$4 sm:$0xff]   ;;  %v8163_v24 = vld [vmem:[#allocation12 + $0x68] ss:$16 sps:$4 sm:$0xff]   ;;  %v8169_v25 = vld [vmem:[#allocation12 + $0x84] ss:$16 sps:$4 sm:$0xff]  }
  0xa3   :  { %1464 = vmatprep.subr.bf16.mxu0 %v8149_v12  ;;  %1690 = vmatprep.subr.bf16.mxu1 %v8152_v14  ;;  %v8172_v26 = vld [vmem:[#allocation12 + $0x8c] ss:$16 sps:$4 sm:$0xff]   ;;  %v8167_v28 = vld [vmem:[#allocation12 + $0x80] ss:$16 sps:$4 sm:$0xff]   ;;  %v8170_v29 = vld [vmem:[#allocation12 + $0x88] ss:$16 sps:$4 sm:$0xff]  }
  0xa4   :  { %478 = vmatprep.mubr.bf16.mxu0 %v9227_v2  ;;  %591 = vmatprep.mubr.bf16.mxu1 %v9227_v2  ;;  %v8175_v30 = vld [vmem:[#allocation12 + $0xa4] ss:$16 sps:$4 sm:$0xff]   ;;  %v8178_v31 = vld [vmem:[#allocation12 + $0xac] ss:$16 sps:$4 sm:$0xff]   ;;  %v8173_v32 = vld [vmem:[#allocation12 + $0xa0] ss:$16 sps:$4 sm:$0xff]  }
  0xa5   :  { %v8176_v33 = vld [vmem:[#allocation12 + $0xa8] ss:$16 sps:$4 sm:$0xff]   ;;  %v8182_v34 = vld [vmem:[#allocation12 + $0xc4] ss:$16 sps:$4 sm:$0xff]   ;;  %v8185_v35 = vld [vmem:[#allocation12 + $0xcc] ss:$16 sps:$4 sm:$0xff]  }
  0xa6   :  { %1465 = vmatpush1.bf16.msra.mxu0 %v8147_v13  ;;  %1691 = vmatpush1.bf16.msra.mxu1 %v8150_v15  ;;  %v8179_v36 = vld [vmem:[%s10095_s26 + $0x18] sm:$0xff]   ;;  %v8180_v37 = vld [vmem:[#allocation12 + $0xc0] ss:$16 sps:$4 sm:$0xff]   ;;  %v8205_v54 = vld [vmem:[%s10095_s26 + $0x28] sm:$0xff]  }
  0xa7   :  { %1466 = vmatprep.subr.bf16.mxu0 %v8156_v17  ;;  %1692 = vmatprep.subr.bf16.mxu1 %v8159_v19  ;;  %v8183_v38 = vld [vmem:[#allocation12 + $0xc8] ss:$16 sps:$4 sm:$0xff]   ;;  %v8188_v39 = vld [vmem:[#allocation12 + $0xe4] ss:$16 sps:$4 sm:$0xff]   ;;  %v8191_v40 = vld [vmem:[#allocation12 + $0xec] ss:$16 sps:$4 sm:$0xff]  }
  0xa8   :  { %v8186_v41 = vld [vmem:[#allocation12 + $0xe0] ss:$16 sps:$4 sm:$0xff]   ;;  %v8189_v42 = vld [vmem:[#allocation12 + $0xe8] ss:$16 sps:$4 sm:$0xff]   ;;  %v8195_v43 = vld [vmem:[#allocation12 + $0x104] ss:$16 sps:$4 sm:$0xff]  }
  0xa9   :  { %7026 = vmatmul.mubr.msk.bf16.gmra.mrb[4].mxu0 %vm411_vm0, %v8153_v16  ;;  %7034 = vmatmul.mubr.msk.bf16.gmra.mrb[4].mxu1 %vm411_vm0, %v8153_v16  ;;  %v8198_v44 = vld [vmem:[#allocation12 + $0x10c] ss:$16 sps:$4 sm:$0xff]   ;;  %v8193_v46 = vld [vmem:[#allocation12 + $0x100] ss:$16 sps:$4 sm:$0xff]   ;;  %v8196_v47 = vld [vmem:[#allocation12 + $0x108] ss:$16 sps:$4 sm:$0xff]  }
  0xaa   :  { %1467 = vmatpush1.bf16.msra.mxu0 %v8154_v18  ;;  %488 = vmatprep.mubr.bf16.mxu0 %v9227_v2  ;;  %v8192_v45 = vld [vmem:[%s10095_s26 + $0x20] sm:$0xff]   ;;  %v8202_v51 = vld [vmem:[#allocation12 + $0x128] ss:$16 sps:$4 sm:$0xff]   ;;  %v8218_v63 = vld [vmem:[%s10095_s26 + $0x30] sm:$0xff]  }
  0xab   :  { %1693 = vmatpush1.bf16.msra.mxu1 %v8157_v20  ;;  %1468 = vmatprep.subr.bf16.mxu0 %v8162_v21  ;;  %v8201_v48 = vld [vmem:[#allocation12 + $0x124] ss:$16 sps:$4 sm:$0xff]   ;;  %v8204_v49 = vld [vmem:[#allocation12 + $0x12c] ss:$16 sps:$4 sm:$0xff]   ;;  %v8199_v50 = vld [vmem:[#allocation12 + $0x120] ss:$16 sps:$4 sm:$0xff]  }
  0xac   :  { %1694 = vmatprep.subr.bf16.mxu1 %v8165_v22  ;;  %601 = vmatprep.mubr.bf16.mxu1 %v9227_v2  ;;  %v8208_v52 = vld [vmem:[#allocation12 + $0x144] ss:$16 sps:$4 sm:$0xff]   ;;  %v8211_v53 = vld [vmem:[#allocation12 + $0x14c] ss:$16 sps:$4 sm:$0xff]   ;;  %v8206_v55 = vld [vmem:[#allocation12 + $0x140] ss:$16 sps:$4 sm:$0xff]  }
  0xad   :  { %v8209_v56 = vld [vmem:[#allocation12 + $0x148] ss:$16 sps:$4 sm:$0xff]   ;;  %v8214_v57 = vld [vmem:[#allocation12 + $0x164] ss:$16 sps:$4 sm:$0xff]   ;;  %v8217_v58 = vld [vmem:[#allocation12 + $0x16c] ss:$16 sps:$4 sm:$0xff]  }
  0xae   :  { %1469 = vmatpush1.bf16.msra.mxu0 %v8160_v23  ;;  %v8212_v59 = vld [vmem:[#allocation12 + $0x160] ss:$16 sps:$4 sm:$0xff]   ;;  %v8215_v60 = vld [vmem:[#allocation12 + $0x168] ss:$16 sps:$4 sm:$0xff]   ;;  %v8221_v61 = vld [vmem:[#allocation12 + $0x184] ss:$16 sps:$4 sm:$0xff]  }
  0xaf   :  { %1695 = vmatpush1.bf16.msra.mxu1 %v8163_v24  ;;  %1470 = vmatprep.subr.bf16.mxu0 %v8169_v25  ;;  %v8224_v62 = vld [vmem:[#allocation12 + $0x18c] ss:$16 sps:$4 sm:$0xff]   ;;  %v8219_v0 = vld [vmem:[#allocation12 + $0x180] ss:$16 sps:$4 sm:$0xff]   ;;  %v8222_v1 = vld [vmem:[#allocation12 + $0x188] ss:$16 sps:$4 sm:$0xff]  }
  0xb0   :  { %1696 = vmatprep.subr.bf16.mxu1 %v8172_v26  ;;  %v8227_v3 = vld [vmem:[#allocation12 + $0x1a4] ss:$16 sps:$4 sm:$0xff]   ;;  %v8230_v4 = vld [vmem:[#allocation12 + $0x1ac] ss:$16 sps:$4 sm:$0xff]   ;;  %v8225_v5 = vld [vmem:[#allocation12 + $0x1a0] ss:$16 sps:$4 sm:$0xff]  }
  0xb1   :  { %7027 = vmatmul.mubr.msk.bf16.gmra.mrb[8].mxu0 %vm411_vm0, %v8166_v27  ;;  %7035 = vmatmul.mubr.msk.bf16.gmra.mrb[8].mxu1 %vm411_vm0, %v8166_v27  ;;  %v8228_v6 = vld [vmem:[#allocation12 + $0x1a8] ss:$16 sps:$4 sm:$0xff]   ;;  %v8234_v7 = vld [vmem:[#allocation12 + $0x1c4] ss:$16 sps:$4 sm:$0xff]   ;;  %v8237_v9 = vld [vmem:[#allocation12 + $0x1cc] ss:$16 sps:$4 sm:$0xff]  }
  0xb2   :  { %1471 = vmatpush1.bf16.msra.mxu0 %v8167_v28  ;;  %498 = vmatprep.mubr.bf16.mxu0 %v9227_v2  ;;  %v8231_v8 = vld [vmem:[%s10095_s26 + $0x38] sm:$0xff]   ;;  %v8232_v10 = vld [vmem:[#allocation12 + $0x1c0] ss:$16 sps:$4 sm:$0xff]  }
  0xb3   :  { %1697 = vmatpush1.bf16.msra.mxu1 %v8170_v29  ;;  %1472 = vmatprep.subr.bf16.mxu0 %v8175_v30  ;;  %v8235_v11 = vld [vmem:[#allocation12 + $0x1c8] ss:$16 sps:$4 sm:$0xff]   ;;  %v8246_v12 = vld [vmem:[#allocation4 + $0x4] ss:$16 sps:$4 sm:$0xff]   ;;  %v8243_v14 = vld [vmem:[#allocation12 + $0x1ec] ss:$16 sps:$4 sm:$0xff]  }
  0xb4   :  { %1698 = vmatprep.subr.bf16.mxu1 %v8178_v31  ;;  %611 = vmatprep.mubr.bf16.mxu1 %v9227_v2  ;;  %v8240_v13 = vld [vmem:[#allocation12 + $0x1e4] ss:$16 sps:$4 sm:$0xff]   ;;  %v8238_v15 = vld [vmem:[#allocation12 + $0x1e0] ss:$16 sps:$4 sm:$0xff]   ;;  %v8241_v16 = vld [vmem:[#allocation12 + $0x1e8] ss:$16 sps:$4 sm:$0xff]  }
  0xb5   :  { %v8249_v17 = vld [vmem:[#allocation12 + $0x204] ss:$16 sps:$4 sm:$0xff]   ;;  %v8252_v18 = vld [vmem:[#allocation12 + $0x20c] ss:$16 sps:$4 sm:$0xff]   ;;  %v8244_v19 = vld [vmem:[#allocation4] ss:$16 sps:$4 sm:$0xff]  }
  0xb6   :  { %1473 = vmatpush1.bf16.msra.mxu0 %v8173_v32  ;;  %v8247_v20 = vld [vmem:[#allocation12 + $0x200] ss:$16 sps:$4 sm:$0xff]   ;;  %v8250_v21 = vld [vmem:[#allocation12 + $0x208] ss:$16 sps:$4 sm:$0xff]   ;;  %v8255_v22 = vld [vmem:[#allocation12 + $0x224] ss:$16 sps:$4 sm:$0xff]  }
  0xb7   :  { %1699 = vmatpush1.bf16.msra.mxu1 %v8176_v33  ;;  %1474 = vmatprep.subr.bf16.mxu0 %v8182_v34  ;;  %v8258_v23 = vld [vmem:[#allocation12 + $0x22c] ss:$16 sps:$4 sm:$0xff]   ;;  %v8259_v24 = vld [vmem:[#allocation4 + $0x24] ss:$16 sps:$4 sm:$0xff]   ;;  %v8253_v25 = vld [vmem:[#allocation12 + $0x220] ss:$16 sps:$4 sm:$0xff]  }
  0xb8   :  { %1700 = vmatprep.subr.bf16.mxu1 %v8185_v35  ;;  %v8256_v26 = vld [vmem:[#allocation12 + $0x228] ss:$16 sps:$4 sm:$0xff]   ;;  %v8264_v27 = vld [vmem:[#allocation12 + $0x244] ss:$16 sps:$4 sm:$0xff]   ;;  %v8267_v28 = vld [vmem:[#allocation12 + $0x24c] ss:$16 sps:$4 sm:$0xff]  }
  0xb9   :  { %7028 = vmatmul.mubr.msk.bf16.gmra.mrb[12].mxu0 %vm411_vm0, %v8179_v36  ;;  %7036 = vmatmul.mubr.msk.bf16.gmra.mrb[12].mxu1 %vm411_vm0, %v8179_v36  ;;  %v8261_v29 = vld [vmem:[#allocation4 + $0x20] ss:$16 sps:$4 sm:$0xff]   ;;  %v8265_v31 = vld [vmem:[#allocation12 + $0x248] ss:$16 sps:$4 sm:$0xff]   ;;  %v8270_v32 = vld [vmem:[#allocation12 + $0x264] ss:$16 sps:$4 sm:$0xff]  }
  0xba   :  { %1475 = vmatpush1.bf16.msra.mxu0 %v8180_v37  ;;  %508 = vmatprep.mubr.bf16.mxu0 %v9227_v2  ;;  %v8262_v30 = vld [vmem:[#allocation12 + $0x240] ss:$16 sps:$4 sm:$0xff]   ;;  %v8273_v33 = vld [vmem:[#allocation12 + $0x26c] ss:$16 sps:$4 sm:$0xff]   ;;  %v8274_v34 = vld [vmem:[#allocation4 + $0x44] ss:$16 sps:$4 sm:$0xff]  }
  0xbb   :  { %1701 = vmatpush1.bf16.msra.mxu1 %v8183_v38  ;;  %1476 = vmatprep.subr.bf16.mxu0 %v8188_v39  ;;  %v8268_v35 = vld [vmem:[#allocation12 + $0x260] ss:$16 sps:$4 sm:$0xff]   ;;  %v8271_v36 = vld [vmem:[#allocation12 + $0x268] ss:$16 sps:$4 sm:$0xff]   ;;  %v8279_v37 = vld [vmem:[#allocation12 + $0x284] ss:$16 sps:$4 sm:$0xff]  }
  0xbc   :  { %1702 = vmatprep.subr.bf16.mxu1 %v8191_v40  ;;  %621 = vmatprep.mubr.bf16.mxu1 %v9227_v2  ;;  %v8282_v38 = vld [vmem:[#allocation12 + $0x28c] ss:$16 sps:$4 sm:$0xff]   ;;  %v8276_v39 = vld [vmem:[#allocation4 + $0x40] ss:$16 sps:$4 sm:$0xff]  }
  0xbd   :  { %v8277_v40 = vld [vmem:[#allocation12 + $0x280] ss:$16 sps:$4 sm:$0xff]  }
  0xbe   :  { %1477 = vmatpush1.bf16.msra.mxu0 %v8186_v41  ;;  %v8280_v41 = vld [vmem:[#allocation12 + $0x288] ss:$16 sps:$4 sm:$0xff]  }
  0xbf   :  { %1703 = vmatpush1.bf16.msra.mxu1 %v8189_v42  ;;  %1478 = vmatprep.subr.bf16.mxu0 %v8195_v43  ;;  %v8285_v42 = vld [vmem:[#allocation12 + $0x2a4] ss:$16 sps:$4 sm:$0xff]   ;;  %v8288_v43 = vld [vmem:[#allocation12 + $0x2ac] ss:$16 sps:$4 sm:$0xff]  }
  0xc0   :  { %1704 = vmatprep.subr.bf16.mxu1 %v8198_v44  ;;  %v8289_v44 = vld [vmem:[#allocation4 + $0x64] ss:$16 sps:$4 sm:$0xff]  }
  0xc1   :  { %7029 = vmatmul.mubr.msk.bf16.gmra.mrb[16].mxu0 %vm411_vm0, %v8192_v45  ;;  %7037 = vmatmul.mubr.msk.bf16.gmra.mrb[16].mxu1 %vm411_vm0, %v8192_v45  ;;  %v8283_v45 = vld [vmem:[#allocation12 + $0x2a0] ss:$16 sps:$4 sm:$0xff]  }
  0xc2   :  { %1479 = vmatpush1.bf16.msra.mxu0 %v8193_v46  ;;  %518 = vmatprep.mubr.bf16.mxu0 %v9227_v2  ;;  %v8286_v46 = vld [vmem:[#allocation12 + $0x2a8] ss:$16 sps:$4 sm:$0xff]  }
  0xc3   :  { %1705 = vmatpush1.bf16.msra.mxu1 %v8196_v47  ;;  %1480 = vmatprep.subr.bf16.mxu0 %v8201_v48  ;;  %v8294_v47 = vld [vmem:[#allocation12 + $0x2c4] ss:$16 sps:$4 sm:$0xff]   ;;  %v8297_v48 = vld [vmem:[#allocation12 + $0x2cc] ss:$16 sps:$4 sm:$0xff]  }
  0xc4   :  { %1706 = vmatprep.subr.bf16.mxu1 %v8204_v49  ;;  %631 = vmatprep.mubr.bf16.mxu1 %v9227_v2  ;;  %v8291_v49 = vld [vmem:[#allocation4 + $0x60] ss:$16 sps:$4 sm:$0xff]  }
  0xc6   :  { %1481 = vmatpush1.bf16.msra.mxu0 %v8199_v50  ;;  %v8292_v50 = vld [vmem:[#allocation12 + $0x2c0] ss:$16 sps:$4 sm:$0xff]  }
  0xc7   :  { %1707 = vmatpush1.bf16.msra.mxu1 %v8202_v51  ;;  %1482 = vmatprep.subr.bf16.mxu0 %v8208_v52  ;;  %v8295_v51 = vld [vmem:[#allocation12 + $0x2c8] ss:$16 sps:$4 sm:$0xff]   ;;  %v8300_v52 = vld [vmem:[#allocation12 + $0x2e4] ss:$16 sps:$4 sm:$0xff]  }
  0xc8   :  { %1708 = vmatprep.subr.bf16.mxu1 %v8211_v53  ;;  %v8303_v53 = vld [vmem:[#allocation12 + $0x2ec] ss:$16 sps:$4 sm:$0xff]  }
  0xc9   :  { %7030 = vmatmul.mubr.msk.bf16.gmra.mrb[20].mxu0 %vm411_vm0, %v8205_v54  ;;  %7038 = vmatmul.mubr.msk.bf16.gmra.mrb[20].mxu1 %vm411_vm0, %v8205_v54  ;;  %v8304_v54 = vld [vmem:[#allocation4 + $0x84] ss:$16 sps:$4 sm:$0xff]  }
  0xca   :  { %1483 = vmatpush1.bf16.msra.mxu0 %v8206_v55  ;;  %528 = vmatprep.mubr.bf16.mxu0 %v9227_v2  ;;  %v8298_v55 = vld [vmem:[#allocation12 + $0x2e0] ss:$16 sps:$4 sm:$0xff]  }
  0xcb   :  { %1709 = vmatpush1.bf16.msra.mxu1 %v8209_v56  ;;  %1484 = vmatprep.subr.bf16.mxu0 %v8214_v57  ;;  %v8301_v56 = vld [vmem:[#allocation12 + $0x2e8] ss:$16 sps:$4 sm:$0xff]   ;;  %v8309_v57 = vld [vmem:[#allocation12 + $0x304] ss:$16 sps:$4 sm:$0xff]  }
  0xcc   :  { %1710 = vmatprep.subr.bf16.mxu1 %v8217_v58  ;;  %641 = vmatprep.mubr.bf16.mxu1 %v9227_v2  ;;  %v8312_v58 = vld [vmem:[#allocation12 + $0x30c] ss:$16 sps:$4 sm:$0xff]  }
  0xce   :  { %1485 = vmatpush1.bf16.msra.mxu0 %v8212_v59  ;;  %v8306_v59 = vld [vmem:[#allocation4 + $0x80] ss:$16 sps:$4 sm:$0xff]  }
  0xcf   :  { %1711 = vmatpush1.bf16.msra.mxu1 %v8215_v60  ;;  %1486 = vmatprep.subr.bf16.mxu0 %v8221_v61  ;;  %v8307_v60 = vld [vmem:[#allocation12 + $0x300] ss:$16 sps:$4 sm:$0xff]   ;;  %v8310_v61 = vld [vmem:[#allocation12 + $0x308] ss:$16 sps:$4 sm:$0xff]  }
  0xd0   :  { %1712 = vmatprep.subr.bf16.mxu1 %v8224_v62  ;;  %v8315_v62 = vld [vmem:[#allocation12 + $0x324] ss:$16 sps:$4 sm:$0xff]  }
  0xd1   :  { %7031 = vmatmul.mubr.msk.bf16.gmra.mrb[24].mxu0 %vm411_vm0, %v8218_v63  ;;  %7039 = vmatmul.mubr.msk.bf16.gmra.mrb[24].mxu1 %vm411_vm0, %v8218_v63  ;;  %v8318_v63 = vld [vmem:[#allocation12 + $0x32c] ss:$16 sps:$4 sm:$0xff]  }
  0xd2   :  { %1487 = vmatpush1.bf16.msra.mxu0 %v8219_v0  ;;  %538 = vmatprep.mubr.bf16.mxu0 %v9227_v2  ;;  %v8319_v0 = vld [vmem:[#allocation4 + $0xa4] ss:$16 sps:$4 sm:$0xff]  }
  0xd3   :  { %1713 = vmatpush1.bf16.msra.mxu1 %v8222_v1  ;;  %1488 = vmatprep.subr.bf16.mxu0 %v8227_v3  ;;  %v8313_v1 = vld [vmem:[#allocation12 + $0x320] ss:$16 sps:$4 sm:$0xff]   ;;  %v8316_v3 = vld [vmem:[#allocation12 + $0x328] ss:$16 sps:$4 sm:$0xff]  }
  0xd4   :  { %1714 = vmatprep.subr.bf16.mxu1 %v8230_v4  ;;  %651 = vmatprep.mubr.bf16.mxu1 %v9227_v2  ;;  %v8324_v4 = vld [vmem:[#allocation12 + $0x344] ss:$16 sps:$4 sm:$0xff]  }
  0xd6   :  { %1489 = vmatpush1.bf16.msra.mxu0 %v8225_v5  ;;  %v8327_v5 = vld [vmem:[#allocation12 + $0x34c] ss:$16 sps:$4 sm:$0xff]  }
  0xd7   :  { %1715 = vmatpush1.bf16.msra.mxu1 %v8228_v6  ;;  %1490 = vmatprep.subr.bf16.mxu0 %v8234_v7  ;;  %v8321_v6 = vld [vmem:[#allocation4 + $0xa0] ss:$16 sps:$4 sm:$0xff]  }
  0xd8   :  { %1716 = vmatprep.subr.bf16.mxu1 %v8237_v9  ;;  %v8322_v7 = vld [vmem:[#allocation12 + $0x340] ss:$16 sps:$4 sm:$0xff]   ;;  %v8330_v9 = vld [vmem:[#allocation12 + $0x364] ss:$16 sps:$4 sm:$0xff]  }
  0xd9   :  { %7032 = vmatmul.mubr.msk.bf16.gmra.mrb[28].mxu0 %vm411_vm0, %v8231_v8  ;;  %7040 = vmatmul.mubr.msk.bf16.gmra.mrb[28].mxu1 %vm411_vm0, %v8231_v8  ;;  %v8325_v8 = vld [vmem:[#allocation12 + $0x348] ss:$16 sps:$4 sm:$0xff]  }
  0xda   :  { %1491 = vmatpush1.bf16.msra.mxu0 %v8232_v10  ;;  %1494 = vmatprep.mubr.bf16.mxu0 %v8246_v12  ;;  %v8333_v10 = vld [vmem:[#allocation12 + $0x36c] ss:$16 sps:$4 sm:$0xff]  }
  0xdb   :  { %1717 = vmatpush1.bf16.msra.mxu1 %v8235_v11  ;;  %1492 = vmatprep.subr.bf16.mxu0 %v8240_v13  ;;  %v8334_v11 = vld [vmem:[#allocation4 + $0xc4] ss:$16 sps:$4 sm:$0xff]   ;;  %v8331_v13 = vld [vmem:[#allocation12 + $0x368] ss:$16 sps:$4 sm:$0xff]  }
  0xdc   :  { %1718 = vmatprep.subr.bf16.mxu1 %v8243_v14  ;;  %1720 = vmatprep.mubr.bf16.mxu1 %v8246_v12  ;;  %v8328_v12 = vld [vmem:[#allocation12 + $0x360] ss:$16 sps:$4 sm:$0xff]   ;;  %v8339_v14 = vld [vmem:[#allocation12 + $0x384] ss:$16 sps:$4 sm:$0xff]  }
  0xde   :  { %1493 = vmatpush1.bf16.msra.mxu0 %v8238_v15  ;;  %v8342_v15 = vld [vmem:[#allocation12 + $0x38c] ss:$16 sps:$4 sm:$0xff]  }
  0xdf   :  { %1719 = vmatpush1.bf16.msra.mxu1 %v8241_v16  ;;  %1575 = vmatprep.subr.bf16.mxu0 %v8249_v17  ;;  %v8336_v16 = vld [vmem:[#allocation4 + $0xc0] ss:$16 sps:$4 sm:$0xff]  }
  0xe0   :  { %1801 = vmatprep.subr.bf16.mxu1 %v8252_v18  ;;  %v8337_v17 = vld [vmem:[#allocation12 + $0x380] ss:$16 sps:$4 sm:$0xff]   ;;  %v8340_v18 = vld [vmem:[#allocation12 + $0x388] ss:$16 sps:$4 sm:$0xff]  }
  0xe1   :  { %1495 = vmatmul.mubr.bf16.vlgmr.msra.gmra.mrb[0].mxu0 %v8244_v19 }
  0xe2   :  { %1721 = vmatmul.mubr.bf16.vlgmr.msra.gmra.mrb[0].mxu1 %v8244_v19  ;;  %1576 = vmatpush1.bf16.msra.mxu0 %v8247_v20  ;;  %v8345_v19 = vld [vmem:[#allocation12 + $0x3a4] ss:$16 sps:$4 sm:$0xff]   ;;  %v8348_v20 = vld [vmem:[#allocation12 + $0x3ac] ss:$16 sps:$4 sm:$0xff]  }
  0xe3   :  { %1802 = vmatpush1.bf16.msra.mxu1 %v8250_v21  ;;  %1577 = vmatprep.subr.bf16.mxu0 %v8255_v22  ;;  %v8349_v21 = vld [vmem:[#allocation4 + $0xe4] ss:$16 sps:$4 sm:$0xff]   ;;  %v8343_v22 = vld [vmem:[#allocation12 + $0x3a0] ss:$16 sps:$4 sm:$0xff]  }
  0xe4   :  { %1803 = vmatprep.subr.bf16.mxu1 %v8258_v23  ;;  %1504 = vmatprep.mubr.bf16.mxu0 %v8259_v24  ;;  %v8346_v23 = vld [vmem:[#allocation12 + $0x3a8] ss:$16 sps:$4 sm:$0xff]  }
  0xe5   :  { %1730 = vmatprep.mubr.bf16.mxu1 %v8259_v24  ;;  %v8354_v24 = vld [vmem:[#allocation12 + $0x3c4] ss:$16 sps:$4 sm:$0xff]  }
  0xe6   :  { %1578 = vmatpush1.bf16.msra.mxu0 %v8253_v25  ;;  %v8357_v25 = vld [vmem:[#allocation12 + $0x3cc] ss:$16 sps:$4 sm:$0xff]  }
  0xe7   :  { %1804 = vmatpush1.bf16.msra.mxu1 %v8256_v26  ;;  %1579 = vmatprep.subr.bf16.mxu0 %v8264_v27  ;;  %v8351_v26 = vld [vmem:[#allocation4 + $0xe0] ss:$16 sps:$4 sm:$0xff]  }
  0xe8   :  { %1805 = vmatprep.subr.bf16.mxu1 %v8267_v28  ;;  %v8352_v27 = vld [vmem:[#allocation12 + $0x3c0] ss:$16 sps:$4 sm:$0xff]   ;;  %v8355_v28 = vld [vmem:[#allocation12 + $0x3c8] ss:$16 sps:$4 sm:$0xff]  }
  0xe9   :  { %1505 = vmatmul.mubr.bf16.gmra.mrb[4].mxu0 %v8261_v29 }
  0xea   :  { %1731 = vmatmul.mubr.bf16.gmra.mrb[4].mxu1 %v8261_v29  ;;  %1580 = vmatpush1.bf16.msra.mxu0 %v8262_v30  ;;  %v8360_v29 = vld [vmem:[#allocation12 + $0x3e4] ss:$16 sps:$4 sm:$0xff]   ;;  %v8363_v30 = vld [vmem:[#allocation12 + $0x3ec] ss:$16 sps:$4 sm:$0xff]  }
  0xeb   :  { %1806 = vmatpush1.bf16.msra.mxu1 %v8265_v31  ;;  %1581 = vmatprep.subr.bf16.mxu0 %v8270_v32  ;;  %v8366_v31 = vld [vmem:[#allocation4 + $0xc] ss:$16 sps:$4 sm:$0xff]   ;;  %v8358_v32 = vld [vmem:[#allocation12 + $0x3e0] ss:$16 sps:$4 sm:$0xff]  }
  0xec   :  { %1807 = vmatprep.subr.bf16.mxu1 %v8273_v33  ;;  %1514 = vmatprep.mubr.bf16.mxu0 %v8274_v34  ;;  %v8361_v33 = vld [vmem:[#allocation12 + $0x3e8] ss:$16 sps:$4 sm:$0xff]  }
  0xed   :  { %1740 = vmatprep.mubr.bf16.mxu1 %v8274_v34  ;;  %v8369_v34 = vld [vmem:[#allocation13 + $0x4] ss:$16 sps:$4 sm:$0xff]  }
  0xee   :  { %1582 = vmatpush1.bf16.msra.mxu0 %v8268_v35  ;;  %v8372_v35 = vld [vmem:[#allocation13 + $0xc] ss:$16 sps:$4 sm:$0xff]  }
  0xef   :  { %1808 = vmatpush1.bf16.msra.mxu1 %v8271_v36  ;;  %1583 = vmatprep.subr.bf16.mxu0 %v8279_v37  ;;  %v8364_v36 = vld [vmem:[#allocation4 + $0x8] ss:$16 sps:$4 sm:$0xff]   ;;  %v8367_v37 = vld [vmem:[#allocation13] ss:$16 sps:$4 sm:$0xff]  }
  0xf0   :  { %1809 = vmatprep.subr.bf16.mxu1 %v8282_v38  ;;  %v8370_v38 = vld [vmem:[#allocation13 + $0x8] ss:$16 sps:$4 sm:$0xff]  }
  0xf1   :  { %1515 = vmatmul.mubr.bf16.gmra.mrb[8].mxu0 %v8276_v39 }
  0xf2   :  { %1741 = vmatmul.mubr.bf16.gmra.mrb[8].mxu1 %v8276_v39  ;;  %1584 = vmatpush1.bf16.msra.mxu0 %v8277_v40  ;;  %v8375_v39 = vld [vmem:[#allocation13 + $0x24] ss:$16 sps:$4 sm:$0xff]   ;;  %v8378_v40 = vld [vmem:[#allocation13 + $0x2c] ss:$16 sps:$4 sm:$0xff]  }
  0xf3   :  { %1810 = vmatpush1.bf16.msra.mxu1 %v8280_v41  ;;  %1585 = vmatprep.subr.bf16.mxu0 %v8285_v42  ;;  %v8379_v41 = vld [vmem:[#allocation4 + $0x2c] ss:$16 sps:$4 sm:$0xff]   ;;  %v8373_v42 = vld [vmem:[#allocation13 + $0x20] ss:$16 sps:$4 sm:$0xff]  }
  0xf4   :  { %1811 = vmatprep.subr.bf16.mxu1 %v8288_v43  ;;  %1524 = vmatprep.mubr.bf16.mxu0 %v8289_v44  ;;  %v8376_v43 = vld [vmem:[#allocation13 + $0x28] ss:$16 sps:$4 sm:$0xff]  }
  0xf5   :  { %1750 = vmatprep.mubr.bf16.mxu1 %v8289_v44  ;;  %v8384_v44 = vld [vmem:[#allocation13 + $0x44] ss:$16 sps:$4 sm:$0xff]  }
  0xf6   :  { %1586 = vmatpush1.bf16.msra.mxu0 %v8283_v45  ;;  %v8387_v45 = vld [vmem:[#allocation13 + $0x4c] ss:$16 sps:$4 sm:$0xff]  }
  0xf7   :  { %1812 = vmatpush1.bf16.msra.mxu1 %v8286_v46  ;;  %1587 = vmatprep.subr.bf16.mxu0 %v8294_v47  ;;  %v8381_v46 = vld [vmem:[#allocation4 + $0x28] ss:$16 sps:$4 sm:$0xff]   ;;  %v8382_v47 = vld [vmem:[#allocation13 + $0x40] ss:$16 sps:$4 sm:$0xff]  }
  0xf8   :  { %1813 = vmatprep.subr.bf16.mxu1 %v8297_v48  ;;  %v8385_v48 = vld [vmem:[#allocation13 + $0x48] ss:$16 sps:$4 sm:$0xff]  }
  0xf9   :  { %1525 = vmatmul.mubr.bf16.gmra.mrb[12].mxu0 %v8291_v49 }
  0xfa   :  { %1751 = vmatmul.mubr.bf16.gmra.mrb[12].mxu1 %v8291_v49  ;;  %1588 = vmatpush1.bf16.msra.mxu0 %v8292_v50  ;;  %v8390_v49 = vld [vmem:[#allocation13 + $0x64] ss:$16 sps:$4 sm:$0xff]   ;;  %v8393_v50 = vld [vmem:[#allocation13 + $0x6c] ss:$16 sps:$4 sm:$0xff]  }
  0xfb   :  { %1814 = vmatpush1.bf16.msra.mxu1 %v8295_v51  ;;  %1589 = vmatprep.subr.bf16.mxu0 %v8300_v52  ;;  %v8394_v51 = vld [vmem:[#allocation4 + $0x4c] ss:$16 sps:$4 sm:$0xff]   ;;  %v8388_v52 = vld [vmem:[#allocation13 + $0x60] ss:$16 sps:$4 sm:$0xff]  }
  0xfc   :  { %1815 = vmatprep.subr.bf16.mxu1 %v8303_v53  ;;  %1534 = vmatprep.mubr.bf16.mxu0 %v8304_v54  ;;  %v8391_v53 = vld [vmem:[#allocation13 + $0x68] ss:$16 sps:$4 sm:$0xff]  }
  0xfd   :  { %1760 = vmatprep.mubr.bf16.mxu1 %v8304_v54  ;;  %v8399_v54 = vld [vmem:[#allocation13 + $0x84] ss:$16 sps:$4 sm:$0xff]  }
  0xfe   :  { %1590 = vmatpush1.bf16.msra.mxu0 %v8298_v55  ;;  %v8402_v55 = vld [vmem:[#allocation13 + $0x8c] ss:$16 sps:$4 sm:$0xff]  }
  0xff   :  { %1816 = vmatpush1.bf16.msra.mxu1 %v8301_v56  ;;  %1591 = vmatprep.subr.bf16.mxu0 %v8309_v57  ;;  %v8396_v56 = vld [vmem:[#allocation4 + $0x48] ss:$16 sps:$4 sm:$0xff]   ;;  %v8397_v57 = vld [vmem:[#allocation13 + $0x80] ss:$16 sps:$4 sm:$0xff]  }
 0x100   :  { %1817 = vmatprep.subr.bf16.mxu1 %v8312_v58  ;;  %v8400_v58 = vld [vmem:[#allocation13 + $0x88] ss:$16 sps:$4 sm:$0xff]  }
 0x101   :  { %1535 = vmatmul.mubr.bf16.gmra.mrb[16].mxu0 %v8306_v59 }
 0x102   :  { %1761 = vmatmul.mubr.bf16.gmra.mrb[16].mxu1 %v8306_v59  ;;  %1592 = vmatpush1.bf16.msra.mxu0 %v8307_v60  ;;  %v8405_v59 = vld [vmem:[#allocation13 + $0xa4] ss:$16 sps:$4 sm:$0xff]   ;;  %v8408_v60 = vld [vmem:[#allocation13 + $0xac] ss:$16 sps:$4 sm:$0xff]  }
 0x103   :  { %1818 = vmatpush1.bf16.msra.mxu1 %v8310_v61  ;;  %1593 = vmatprep.subr.bf16.mxu0 %v8315_v62  ;;  %v8409_v61 = vld [vmem:[#allocation4 + $0x6c] ss:$16 sps:$4 sm:$0xff]   ;;  %v8403_v62 = vld [vmem:[#allocation13 + $0xa0] ss:$16 sps:$4 sm:$0xff]  }
 0x104   :  { %1819 = vmatprep.subr.bf16.mxu1 %v8318_v63  ;;  %1544 = vmatprep.mubr.bf16.mxu0 %v8319_v0  ;;  %v8406_v63 = vld [vmem:[#allocation13 + $0xa8] ss:$16 sps:$4 sm:$0xff]  }
 0x105   :  { %1770 = vmatprep.mubr.bf16.mxu1 %v8319_v0  ;;  %v8414_v0 = vld [vmem:[#allocation13 + $0xc4] ss:$16 sps:$4 sm:$0xff]  }
 0x106   :  { %1594 = vmatpush1.bf16.msra.mxu0 %v8313_v1  ;;  %v8417_v1 = vld [vmem:[#allocation13 + $0xcc] ss:$16 sps:$4 sm:$0xff]  }
 0x107   :  { %1820 = vmatpush1.bf16.msra.mxu1 %v8316_v3  ;;  %1595 = vmatprep.subr.bf16.mxu0 %v8324_v4  ;;  %v8411_v3 = vld [vmem:[#allocation4 + $0x68] ss:$16 sps:$4 sm:$0xff]   ;;  %v8412_v4 = vld [vmem:[#allocation13 + $0xc0] ss:$16 sps:$4 sm:$0xff]  }
 0x108   :  { %1821 = vmatprep.subr.bf16.mxu1 %v8327_v5  ;;  %v8415_v5 = vld [vmem:[#allocation13 + $0xc8] ss:$16 sps:$4 sm:$0xff]  }
 0x109   :  { %1545 = vmatmul.mubr.bf16.gmra.mrb[20].mxu0 %v8321_v6 }
 0x10a   :  { %1771 = vmatmul.mubr.bf16.gmra.mrb[20].mxu1 %v8321_v6  ;;  %1596 = vmatpush1.bf16.msra.mxu0 %v8322_v7  ;;  %v8420_v6 = vld [vmem:[#allocation13 + $0xe4] ss:$16 sps:$4 sm:$0xff]   ;;  %v8423_v7 = vld [vmem:[#allocation13 + $0xec] ss:$16 sps:$4 sm:$0xff]  }
 0x10b   :  { %1822 = vmatpush1.bf16.msra.mxu1 %v8325_v8  ;;  %1597 = vmatprep.subr.bf16.mxu0 %v8330_v9  ;;  %v8424_v8 = vld [vmem:[#allocation4 + $0x8c] ss:$16 sps:$4 sm:$0xff]   ;;  %v8418_v9 = vld [vmem:[#allocation13 + $0xe0] ss:$16 sps:$4 sm:$0xff]  }
 0x10c   :  { %1823 = vmatprep.subr.bf16.mxu1 %v8333_v10  ;;  %1554 = vmatprep.mubr.bf16.mxu0 %v8334_v11  ;;  %v8421_v10 = vld [vmem:[#allocation13 + $0xe8] ss:$16 sps:$4 sm:$0xff]  }
 0x10d   :  { %1780 = vmatprep.mubr.bf16.mxu1 %v8334_v11  ;;  %v8429_v11 = vld [vmem:[#allocation13 + $0x104] ss:$16 sps:$4 sm:$0xff]  }
 0x10e   :  { %1598 = vmatpush1.bf16.msra.mxu0 %v8328_v12  ;;  %v8432_v12 = vld [vmem:[#allocation13 + $0x10c] ss:$16 sps:$4 sm:$0xff]  }
 0x10f   :  { %1824 = vmatpush1.bf16.msra.mxu1 %v8331_v13  ;;  %1599 = vmatprep.subr.bf16.mxu0 %v8339_v14  ;;  %v8426_v13 = vld [vmem:[#allocation4 + $0x88] ss:$16 sps:$4 sm:$0xff]   ;;  %v8427_v14 = vld [vmem:[#allocation13 + $0x100] ss:$16 sps:$4 sm:$0xff]  }
 0x110   :  { %1825 = vmatprep.subr.bf16.mxu1 %v8342_v15  ;;  %v8430_v15 = vld [vmem:[#allocation13 + $0x108] ss:$16 sps:$4 sm:$0xff]  }
 0x111   :  { %1555 = vmatmul.mubr.bf16.gmra.mrb[24].mxu0 %v8336_v16 }
 0x112   :  { %1781 = vmatmul.mubr.bf16.gmra.mrb[24].mxu1 %v8336_v16  ;;  %1600 = vmatpush1.bf16.msra.mxu0 %v8337_v17  ;;  %v8435_v16 = vld [vmem:[#allocation13 + $0x124] ss:$16 sps:$4 sm:$0xff]   ;;  %v8438_v17 = vld [vmem:[#allocation13 + $0x12c] ss:$16 sps:$4 sm:$0xff]  }
 0x113   :  { %1826 = vmatpush1.bf16.msra.mxu1 %v8340_v18  ;;  %1601 = vmatprep.subr.bf16.mxu0 %v8345_v19  ;;  %v8439_v18 = vld [vmem:[#allocation4 + $0xac] ss:$16 sps:$4 sm:$0xff]   ;;  %v8433_v19 = vld [vmem:[#allocation13 + $0x120] ss:$16 sps:$4 sm:$0xff]  }
 0x114   :  { %1827 = vmatprep.subr.bf16.mxu1 %v8348_v20  ;;  %1564 = vmatprep.mubr.bf16.mxu0 %v8349_v21  ;;  %v8436_v20 = vld [vmem:[#allocation13 + $0x128] ss:$16 sps:$4 sm:$0xff]  }
 0x115   :  { %1790 = vmatprep.mubr.bf16.mxu1 %v8349_v21  ;;  %v8444_v21 = vld [vmem:[#allocation13 + $0x144] ss:$16 sps:$4 sm:$0xff]  }
 0x116   :  { %1602 = vmatpush1.bf16.msra.mxu0 %v8343_v22  ;;  %v8447_v22 = vld [vmem:[#allocation13 + $0x14c] ss:$16 sps:$4 sm:$0xff]  }
 0x117   :  { %1828 = vmatpush1.bf16.msra.mxu1 %v8346_v23  ;;  %1603 = vmatprep.subr.bf16.mxu0 %v8354_v24  ;;  %v8441_v23 = vld [vmem:[#allocation4 + $0xa8] ss:$16 sps:$4 sm:$0xff]   ;;  %v8442_v24 = vld [vmem:[#allocation13 + $0x140] ss:$16 sps:$4 sm:$0xff]  }
 0x118   :  { %1829 = vmatprep.subr.bf16.mxu1 %v8357_v25  ;;  %v8445_v25 = vld [vmem:[#allocation13 + $0x148] ss:$16 sps:$4 sm:$0xff]  }
 0x119   :  { %1565 = vmatmul.mubr.bf16.gmra.mrb[28].mxu0 %v8351_v26 }
 0x11a   :  { %1791 = vmatmul.mubr.bf16.gmra.mrb[28].mxu1 %v8351_v26  ;;  %1604 = vmatpush1.bf16.msra.mxu0 %v8352_v27  ;;  %v8450_v26 = vld [vmem:[#allocation13 + $0x164] ss:$16 sps:$4 sm:$0xff]   ;;  %v8453_v27 = vld [vmem:[#allocation13 + $0x16c] ss:$16 sps:$4 sm:$0xff]  }
 0x11b   :  { %1830 = vmatpush1.bf16.msra.mxu1 %v8355_v28  ;;  %1605 = vmatprep.subr.bf16.mxu0 %v8360_v29  ;;  %v8454_v28 = vld [vmem:[#allocation4 + $0xcc] ss:$16 sps:$4 sm:$0xff]   ;;  %v8448_v29 = vld [vmem:[#allocation13 + $0x160] ss:$16 sps:$4 sm:$0xff]  }
 0x11c   :  { %1831 = vmatprep.subr.bf16.mxu1 %v8363_v30  ;;  %1607 = vmatprep.mubr.bf16.mxu0 %v8366_v31  ;;  %v8451_v30 = vld [vmem:[#allocation13 + $0x168] ss:$16 sps:$4 sm:$0xff]  }
 0x11d   :  { %1833 = vmatprep.mubr.bf16.mxu1 %v8366_v31  ;;  %v8459_v31 = vld [vmem:[#allocation13 + $0x184] ss:$16 sps:$4 sm:$0xff]  }
 0x11e   :  { %1606 = vmatpush1.bf16.msra.mxu0 %v8358_v32  ;;  %v8462_v32 = vld [vmem:[#allocation13 + $0x18c] ss:$16 sps:$4 sm:$0xff]  }
 0x11f   :  { %1832 = vmatpush1.bf16.msra.mxu1 %v8361_v33  ;;  %2874 = vmatprep.subr.bf16.mxu0 %v8369_v34  ;;  %v8456_v33 = vld [vmem:[#allocation4 + $0xc8] ss:$16 sps:$4 sm:$0xff]   ;;  %v8457_v34 = vld [vmem:[#allocation13 + $0x180] ss:$16 sps:$4 sm:$0xff]  }
 0x120   :  { %3100 = vmatprep.subr.bf16.mxu1 %v8372_v35  ;;  %v8460_v35 = vld [vmem:[#allocation13 + $0x188] ss:$16 sps:$4 sm:$0xff]  }
 0x121   :  { %1608 = vmatmul.mubr.bf16.vlgmr.msra.gmra.mrb[0].mxu0 %v8364_v36 }
 0x122   :  { %1834 = vmatmul.mubr.bf16.vlgmr.msra.gmra.mrb[0].mxu1 %v8364_v36  ;;  %2875 = vmatpush1.bf16.msra.mxu0 %v8367_v37  ;;  %v8465_v36 = vld [vmem:[#allocation13 + $0x1a4] ss:$16 sps:$4 sm:$0xff]   ;;  %v8468_v37 = vld [vmem:[#allocation13 + $0x1ac] ss:$16 sps:$4 sm:$0xff]  }
 0x123   :  { %3101 = vmatpush1.bf16.msra.mxu1 %v8370_v38  ;;  %2876 = vmatprep.subr.bf16.mxu0 %v8375_v39  ;;  %v8469_v38 = vld [vmem:[#allocation4 + $0xec] ss:$16 sps:$4 sm:$0xff]   ;;  %v8463_v39 = vld [vmem:[#allocation13 + $0x1a0] ss:$16 sps:$4 sm:$0xff]  }
 0x124   :  { %3102 = vmatprep.subr.bf16.mxu1 %v8378_v40  ;;  %1617 = vmatprep.mubr.bf16.mxu0 %v8379_v41  ;;  %v8466_v40 = vld [vmem:[#allocation13 + $0x1a8] ss:$16 sps:$4 sm:$0xff]  }
 0x125   :  { %1843 = vmatprep.mubr.bf16.mxu1 %v8379_v41  ;;  %v8474_v41 = vld [vmem:[#allocation13 + $0x1c4] ss:$16 sps:$4 sm:$0xff]  }
 0x126   :  { %2877 = vmatpush1.bf16.msra.mxu0 %v8373_v42  ;;  %v8477_v42 = vld [vmem:[#allocation13 + $0x1cc] ss:$16 sps:$4 sm:$0xff]  }
 0x127   :  { %3103 = vmatpush1.bf16.msra.mxu1 %v8376_v43  ;;  %2878 = vmatprep.subr.bf16.mxu0 %v8384_v44  ;;  %v8471_v43 = vld [vmem:[#allocation4 + $0xe8] ss:$16 sps:$4 sm:$0xff]   ;;  %v8472_v44 = vld [vmem:[#allocation13 + $0x1c0] ss:$16 sps:$4 sm:$0xff]  }
 0x128   :  { %3104 = vmatprep.subr.bf16.mxu1 %v8387_v45  ;;  %v8475_v45 = vld [vmem:[#allocation13 + $0x1c8] ss:$16 sps:$4 sm:$0xff]  }
 0x129   :  { %1618 = vmatmul.mubr.bf16.gmra.mrb[4].mxu0 %v8381_v46 }
 0x12a   :  { %1844 = vmatmul.mubr.bf16.gmra.mrb[4].mxu1 %v8381_v46  ;;  %2879 = vmatpush1.bf16.msra.mxu0 %v8382_v47  ;;  %v8480_v46 = vld [vmem:[#allocation13 + $0x1e4] ss:$16 sps:$4 sm:$0xff]   ;;  %v8483_v47 = vld [vmem:[#allocation13 + $0x1ec] ss:$16 sps:$4 sm:$0xff]  }
 0x12b   :  { %3105 = vmatpush1.bf16.msra.mxu1 %v8385_v48  ;;  %2880 = vmatprep.subr.bf16.mxu0 %v8390_v49  ;;  %v8486_v48 = vld [vmem:[#allocation7 + $0x4] ss:$16 sps:$4 sm:$0xff]   ;;  %v8478_v49 = vld [vmem:[#allocation13 + $0x1e0] ss:$16 sps:$4 sm:$0xff]  }
 0x12c   :  { %3106 = vmatprep.subr.bf16.mxu1 %v8393_v50  ;;  %1627 = vmatprep.mubr.bf16.mxu0 %v8394_v51  ;;  %v8481_v50 = vld [vmem:[#allocation13 + $0x1e8] ss:$16 sps:$4 sm:$0xff]  }
 0x12d   :  { %1853 = vmatprep.mubr.bf16.mxu1 %v8394_v51  ;;  %v8489_v51 = vld [vmem:[#allocation13 + $0x204] ss:$16 sps:$4 sm:$0xff]  }
 0x12e   :  { %2881 = vmatpush1.bf16.msra.mxu0 %v8388_v52  ;;  %v8492_v52 = vld [vmem:[#allocation13 + $0x20c] ss:$16 sps:$4 sm:$0xff]  }
 0x12f   :  { %3107 = vmatpush1.bf16.msra.mxu1 %v8391_v53  ;;  %2882 = vmatprep.subr.bf16.mxu0 %v8399_v54  ;;  %v8484_v53 = vld [vmem:[#allocation7] ss:$16 sps:$4 sm:$0xff]  }
 0x130   :  { %3108 = vmatprep.subr.bf16.mxu1 %v8402_v55  ;;  %v8487_v54 = vld [vmem:[#allocation13 + $0x200] ss:$16 sps:$4 sm:$0xff]   ;;  %v8490_v55 = vld [vmem:[#allocation13 + $0x208] ss:$16 sps:$4 sm:$0xff]  }
 0x131   :  { %1628 = vmatmul.mubr.bf16.gmra.mrb[8].mxu0 %v8396_v56 }
 0x132   :  { %1854 = vmatmul.mubr.bf16.gmra.mrb[8].mxu1 %v8396_v56  ;;  %2883 = vmatpush1.bf16.msra.mxu0 %v8397_v57  ;;  %v8495_v56 = vld [vmem:[#allocation13 + $0x224] ss:$16 sps:$4 sm:$0xff]   ;;  %v8498_v57 = vld [vmem:[#allocation13 + $0x22c] ss:$16 sps:$4 sm:$0xff]  }
 0x133   :  { %3109 = vmatpush1.bf16.msra.mxu1 %v8400_v58  ;;  %2884 = vmatprep.subr.bf16.mxu0 %v8405_v59  ;;  %v8499_v58 = vld [vmem:[#allocation7 + $0x24] ss:$16 sps:$4 sm:$0xff]   ;;  %v8493_v59 = vld [vmem:[#allocation13 + $0x220] ss:$16 sps:$4 sm:$0xff]  }
 0x134   :  { %3110 = vmatprep.subr.bf16.mxu1 %v8408_v60  ;;  %1637 = vmatprep.mubr.bf16.mxu0 %v8409_v61  ;;  %v8496_v60 = vld [vmem:[#allocation13 + $0x228] ss:$16 sps:$4 sm:$0xff]  }
 0x135   :  { %1863 = vmatprep.mubr.bf16.mxu1 %v8409_v61  ;;  %v8504_v61 = vld [vmem:[#allocation13 + $0x244] ss:$16 sps:$4 sm:$0xff]  }
 0x136   :  { %2885 = vmatpush1.bf16.msra.mxu0 %v8403_v62  ;;  %v8507_v62 = vld [vmem:[#allocation13 + $0x24c] ss:$16 sps:$4 sm:$0xff]  }
 0x137   :  { %3111 = vmatpush1.bf16.msra.mxu1 %v8406_v63  ;;  %2886 = vmatprep.subr.bf16.mxu0 %v8414_v0  ;;  %v8501_v63 = vld [vmem:[#allocation7 + $0x20] ss:$16 sps:$4 sm:$0xff]  }
 0x138   :  { %3112 = vmatprep.subr.bf16.mxu1 %v8417_v1  ;;  %v8502_v0 = vld [vmem:[#allocation13 + $0x240] ss:$16 sps:$4 sm:$0xff]   ;;  %v8505_v1 = vld [vmem:[#allocation13 + $0x248] ss:$16 sps:$4 sm:$0xff]  }
 0x139   :  { %1638 = vmatmul.mubr.bf16.gmra.mrb[12].mxu0 %v8411_v3 }
 0x13a   :  { %1864 = vmatmul.mubr.bf16.gmra.mrb[12].mxu1 %v8411_v3  ;;  %2887 = vmatpush1.bf16.msra.mxu0 %v8412_v4  ;;  %v8510_v3 = vld [vmem:[#allocation13 + $0x264] ss:$16 sps:$4 sm:$0xff]   ;;  %v8513_v4 = vld [vmem:[#allocation13 + $0x26c] ss:$16 sps:$4 sm:$0xff]  }
 0x13b   :  { %3113 = vmatpush1.bf16.msra.mxu1 %v8415_v5  ;;  %2888 = vmatprep.subr.bf16.mxu0 %v8420_v6  ;;  %v8514_v5 = vld [vmem:[#allocation7 + $0x44] ss:$16 sps:$4 sm:$0xff]   ;;  %v8508_v6 = vld [vmem:[#allocation13 + $0x260] ss:$16 sps:$4 sm:$0xff]  }
 0x13c   :  { %3114 = vmatprep.subr.bf16.mxu1 %v8423_v7  ;;  %1647 = vmatprep.mubr.bf16.mxu0 %v8424_v8  ;;  %v8511_v7 = vld [vmem:[#allocation13 + $0x268] ss:$16 sps:$4 sm:$0xff]  }
 0x13d   :  { %1873 = vmatprep.mubr.bf16.mxu1 %v8424_v8  ;;  %v8519_v8 = vld [vmem:[#allocation13 + $0x284] ss:$16 sps:$4 sm:$0xff]  }
 0x13e   :  { %2889 = vmatpush1.bf16.msra.mxu0 %v8418_v9  ;;  %v8522_v9 = vld [vmem:[#allocation13 + $0x28c] ss:$16 sps:$4 sm:$0xff]  }
 0x13f   :  { %3115 = vmatpush1.bf16.msra.mxu1 %v8421_v10  ;;  %2890 = vmatprep.subr.bf16.mxu0 %v8429_v11  ;;  %v8516_v10 = vld [vmem:[#allocation7 + $0x40] ss:$16 sps:$4 sm:$0xff]  }
 0x140   :  { %3116 = vmatprep.subr.bf16.mxu1 %v8432_v12  ;;  %v8517_v11 = vld [vmem:[#allocation13 + $0x280] ss:$16 sps:$4 sm:$0xff]   ;;  %v8520_v12 = vld [vmem:[#allocation13 + $0x288] ss:$16 sps:$4 sm:$0xff]  }
 0x141   :  { %1648 = vmatmul.mubr.bf16.gmra.mrb[16].mxu0 %v8426_v13 }
 0x142   :  { %1874 = vmatmul.mubr.bf16.gmra.mrb[16].mxu1 %v8426_v13  ;;  %2891 = vmatpush1.bf16.msra.mxu0 %v8427_v14  ;;  %v8525_v13 = vld [vmem:[#allocation13 + $0x2a4] ss:$16 sps:$4 sm:$0xff]   ;;  %v8528_v14 = vld [vmem:[#allocation13 + $0x2ac] ss:$16 sps:$4 sm:$0xff]  }
 0x143   :  { %3117 = vmatpush1.bf16.msra.mxu1 %v8430_v15  ;;  %2892 = vmatprep.subr.bf16.mxu0 %v8435_v16  ;;  %v8529_v15 = vld [vmem:[#allocation7 + $0x64] ss:$16 sps:$4 sm:$0xff]   ;;  %v8523_v16 = vld [vmem:[#allocation13 + $0x2a0] ss:$16 sps:$4 sm:$0xff]  }
 0x144   :  { %3118 = vmatprep.subr.bf16.mxu1 %v8438_v17  ;;  %1657 = vmatprep.mubr.bf16.mxu0 %v8439_v18  ;;  %v8526_v17 = vld [vmem:[#allocation13 + $0x2a8] ss:$16 sps:$4 sm:$0xff]  }
 0x145   :  { %1883 = vmatprep.mubr.bf16.mxu1 %v8439_v18  ;;  %v8534_v18 = vld [vmem:[#allocation13 + $0x2c4] ss:$16 sps:$4 sm:$0xff]  }
 0x146   :  { %2893 = vmatpush1.bf16.msra.mxu0 %v8433_v19  ;;  %v8537_v19 = vld [vmem:[#allocation13 + $0x2cc] ss:$16 sps:$4 sm:$0xff]  }
 0x147   :  { %3119 = vmatpush1.bf16.msra.mxu1 %v8436_v20  ;;  %2894 = vmatprep.subr.bf16.mxu0 %v8444_v21  ;;  %v8531_v20 = vld [vmem:[#allocation7 + $0x60] ss:$16 sps:$4 sm:$0xff]  }
 0x148   :  { %3120 = vmatprep.subr.bf16.mxu1 %v8447_v22  ;;  %v8532_v21 = vld [vmem:[#allocation13 + $0x2c0] ss:$16 sps:$4 sm:$0xff]   ;;  %v8535_v22 = vld [vmem:[#allocation13 + $0x2c8] ss:$16 sps:$4 sm:$0xff]  }
 0x149   :  { %1658 = vmatmul.mubr.bf16.gmra.mrb[20].mxu0 %v8441_v23 }
 0x14a   :  { %1884 = vmatmul.mubr.bf16.gmra.mrb[20].mxu1 %v8441_v23  ;;  %2895 = vmatpush1.bf16.msra.mxu0 %v8442_v24  ;;  %v8540_v23 = vld [vmem:[#allocation13 + $0x2e4] ss:$16 sps:$4 sm:$0xff]   ;;  %v8543_v24 = vld [vmem:[#allocation13 + $0x2ec] ss:$16 sps:$4 sm:$0xff]  }
 0x14b   :  { %3121 = vmatpush1.bf16.msra.mxu1 %v8445_v25  ;;  %2896 = vmatprep.subr.bf16.mxu0 %v8450_v26  ;;  %v8544_v25 = vld [vmem:[#allocation7 + $0x84] ss:$16 sps:$4 sm:$0xff]   ;;  %v8538_v26 = vld [vmem:[#allocation13 + $0x2e0] ss:$16 sps:$4 sm:$0xff]  }
 0x14c   :  { %3122 = vmatprep.subr.bf16.mxu1 %v8453_v27  ;;  %1667 = vmatprep.mubr.bf16.mxu0 %v8454_v28  ;;  %v8541_v27 = vld [vmem:[#allocation13 + $0x2e8] ss:$16 sps:$4 sm:$0xff]  }
 0x14d   :  { %1893 = vmatprep.mubr.bf16.mxu1 %v8454_v28  ;;  %v8549_v28 = vld [vmem:[#allocation13 + $0x304] ss:$16 sps:$4 sm:$0xff]  }
 0x14e   :  { %2897 = vmatpush1.bf16.msra.mxu0 %v8448_v29  ;;  %v8552_v29 = vld [vmem:[#allocation13 + $0x30c] ss:$16 sps:$4 sm:$0xff]  }
 0x14f   :  { %3123 = vmatpush1.bf16.msra.mxu1 %v8451_v30  ;;  %2898 = vmatprep.subr.bf16.mxu0 %v8459_v31  ;;  %v8546_v30 = vld [vmem:[#allocation7 + $0x80] ss:$16 sps:$4 sm:$0xff]  }
 0x150   :  { %3124 = vmatprep.subr.bf16.mxu1 %v8462_v32  ;;  %v8547_v31 = vld [vmem:[#allocation13 + $0x300] ss:$16 sps:$4 sm:$0xff]   ;;  %v8550_v32 = vld [vmem:[#allocation13 + $0x308] ss:$16 sps:$4 sm:$0xff]  }
 0x151   :  { %1668 = vmatmul.mubr.bf16.gmra.mrb[24].mxu0 %v8456_v33 }
 0x152   :  { %1894 = vmatmul.mubr.bf16.gmra.mrb[24].mxu1 %v8456_v33  ;;  %2899 = vmatpush1.bf16.msra.mxu0 %v8457_v34  ;;  %v8555_v33 = vld [vmem:[#allocation13 + $0x324] ss:$16 sps:$4 sm:$0xff]   ;;  %v8558_v34 = vld [vmem:[#allocation13 + $0x32c] ss:$16 sps:$4 sm:$0xff]  }
 0x153   :  { %3125 = vmatpush1.bf16.msra.mxu1 %v8460_v35  ;;  %2900 = vmatprep.subr.bf16.mxu0 %v8465_v36  ;;  %v8559_v35 = vld [vmem:[#allocation7 + $0xa4] ss:$16 sps:$4 sm:$0xff]   ;;  %v8553_v36 = vld [vmem:[#allocation13 + $0x320] ss:$16 sps:$4 sm:$0xff]  }
 0x154   :  { %3126 = vmatprep.subr.bf16.mxu1 %v8468_v37  ;;  %1677 = vmatprep.mubr.bf16.mxu0 %v8469_v38  ;;  %v8556_v37 = vld [vmem:[#allocation13 + $0x328] ss:$16 sps:$4 sm:$0xff]  }
 0x155   :  { %1903 = vmatprep.mubr.bf16.mxu1 %v8469_v38  ;;  %v8564_v38 = vld [vmem:[#allocation13 + $0x344] ss:$16 sps:$4 sm:$0xff]  }
 0x156   :  { %2901 = vmatpush1.bf16.msra.mxu0 %v8463_v39  ;;  %v8567_v39 = vld [vmem:[#allocation13 + $0x34c] ss:$16 sps:$4 sm:$0xff]  }
 0x157   :  { %3127 = vmatpush1.bf16.msra.mxu1 %v8466_v40  ;;  %2902 = vmatprep.subr.bf16.mxu0 %v8474_v41  ;;  %v8561_v40 = vld [vmem:[#allocation7 + $0xa0] ss:$16 sps:$4 sm:$0xff]  }
 0x158   :  { %3128 = vmatprep.subr.bf16.mxu1 %v8477_v42  ;;  %v8562_v41 = vld [vmem:[#allocation13 + $0x340] ss:$16 sps:$4 sm:$0xff]   ;;  %v8565_v42 = vld [vmem:[#allocation13 + $0x348] ss:$16 sps:$4 sm:$0xff]  }
 0x159   :  { %1678 = vmatmul.mubr.bf16.gmra.mrb[28].mxu0 %v8471_v43 }
 0x15a   :  { %1904 = vmatmul.mubr.bf16.gmra.mrb[28].mxu1 %v8471_v43  ;;  %2903 = vmatpush1.bf16.msra.mxu0 %v8472_v44  ;;  %v8570_v43 = vld [vmem:[#allocation13 + $0x364] ss:$16 sps:$4 sm:$0xff]   ;;  %v8573_v44 = vld [vmem:[#allocation13 + $0x36c] ss:$16 sps:$4 sm:$0xff]  }
 0x15b   :  { %3129 = vmatpush1.bf16.msra.mxu1 %v8475_v45  ;;  %2904 = vmatprep.subr.bf16.mxu0 %v8480_v46  ;;  %v8574_v45 = vld [vmem:[#allocation7 + $0xc4] ss:$16 sps:$4 sm:$0xff]   ;;  %v8568_v46 = vld [vmem:[#allocation13 + $0x360] ss:$16 sps:$4 sm:$0xff]  }
 0x15c   :  { %3130 = vmatprep.subr.bf16.mxu1 %v8483_v47  ;;  %2906 = vmatprep.mubr.bf16.mxu0 %v8486_v48  ;;  %v8571_v47 = vld [vmem:[#allocation13 + $0x368] ss:$16 sps:$4 sm:$0xff]  }
 0x15d   :  { %3132 = vmatprep.mubr.bf16.mxu1 %v8486_v48  ;;  %v8579_v48 = vld [vmem:[#allocation13 + $0x384] ss:$16 sps:$4 sm:$0xff]  }
 0x15e   :  { %2905 = vmatpush1.bf16.msra.mxu0 %v8478_v49  ;;  %v8582_v49 = vld [vmem:[#allocation13 + $0x38c] ss:$16 sps:$4 sm:$0xff]  }
 0x15f   :  { %3131 = vmatpush1.bf16.msra.mxu1 %v8481_v50  ;;  %2987 = vmatprep.subr.bf16.mxu0 %v8489_v51  ;;  %v8576_v50 = vld [vmem:[#allocation7 + $0xc0] ss:$16 sps:$4 sm:$0xff]  }
 0x160   :  { %3213 = vmatprep.subr.bf16.mxu1 %v8492_v52  ;;  %v8577_v51 = vld [vmem:[#allocation13 + $0x380] ss:$16 sps:$4 sm:$0xff]   ;;  %v8580_v52 = vld [vmem:[#allocation13 + $0x388] ss:$16 sps:$4 sm:$0xff]  }
 0x161   :  { %2907 = vmatmul.mubr.bf16.vlgmr.msra.gmra.mrb[0].mxu0 %v8484_v53 }
 0x162   :  { %3133 = vmatmul.mubr.bf16.vlgmr.msra.gmra.mrb[0].mxu1 %v8484_v53  ;;  %2988 = vmatpush1.bf16.msra.mxu0 %v8487_v54  ;;  %v8585_v53 = vld [vmem:[#allocation13 + $0x3a4] ss:$16 sps:$4 sm:$0xff]   ;;  %v8588_v54 = vld [vmem:[#allocation13 + $0x3ac] ss:$16 sps:$4 sm:$0xff]  }
 0x163   :  { %3214 = vmatpush1.bf16.msra.mxu1 %v8490_v55  ;;  %2989 = vmatprep.subr.bf16.mxu0 %v8495_v56  ;;  %v8589_v55 = vld [vmem:[#allocation7 + $0xe4] ss:$16 sps:$4 sm:$0xff]   ;;  %v8583_v56 = vld [vmem:[#allocation13 + $0x3a0] ss:$16 sps:$4 sm:$0xff]  }
 0x164   :  { %3215 = vmatprep.subr.bf16.mxu1 %v8498_v57  ;;  %2916 = vmatprep.mubr.bf16.mxu0 %v8499_v58  ;;  %v8586_v57 = vld [vmem:[#allocation13 + $0x3a8] ss:$16 sps:$4 sm:$0xff]  }
 0x165   :  { %3142 = vmatprep.mubr.bf16.mxu1 %v8499_v58  ;;  %v8594_v58 = vld [vmem:[#allocation13 + $0x3c4] ss:$16 sps:$4 sm:$0xff]  }
 0x166   :  { %2990 = vmatpush1.bf16.msra.mxu0 %v8493_v59  ;;  %v8597_v59 = vld [vmem:[#allocation13 + $0x3cc] ss:$16 sps:$4 sm:$0xff]  }
 0x167   :  { %3216 = vmatpush1.bf16.msra.mxu1 %v8496_v60  ;;  %2991 = vmatprep.subr.bf16.mxu0 %v8504_v61  ;;  %v8591_v60 = vld [vmem:[#allocation7 + $0xe0] ss:$16 sps:$4 sm:$0xff]  }
 0x168   :  { %3217 = vmatprep.subr.bf16.mxu1 %v8507_v62  ;;  %v8592_v61 = vld [vmem:[#allocation13 + $0x3c0] ss:$16 sps:$4 sm:$0xff]   ;;  %v8595_v62 = vld [vmem:[#allocation13 + $0x3c8] ss:$16 sps:$4 sm:$0xff]  }
 0x169   :  { %2917 = vmatmul.mubr.bf16.gmra.mrb[4].mxu0 %v8501_v63 }
 0x16a   :  { %3143 = vmatmul.mubr.bf16.gmra.mrb[4].mxu1 %v8501_v63  ;;  %2992 = vmatpush1.bf16.msra.mxu0 %v8502_v0  ;;  %v8600_v63 = vld [vmem:[#allocation13 + $0x3e4] ss:$16 sps:$4 sm:$0xff]   ;;  %v8603_v0 = vld [vmem:[#allocation13 + $0x3ec] ss:$16 sps:$4 sm:$0xff]  }
 0x16b   :  { %3218 = vmatpush1.bf16.msra.mxu1 %v8505_v1  ;;  %2993 = vmatprep.subr.bf16.mxu0 %v8510_v3  ;;  %v8606_v1 = vld [vmem:[#allocation7 + $0xc] ss:$16 sps:$4 sm:$0xff]   ;;  %v8598_v3 = vld [vmem:[#allocation13 + $0x3e0] ss:$16 sps:$4 sm:$0xff]  }
 0x16c   :  { %3219 = vmatprep.subr.bf16.mxu1 %v8513_v4  ;;  %2926 = vmatprep.mubr.bf16.mxu0 %v8514_v5  ;;  %v8601_v4 = vld [vmem:[#allocation13 + $0x3e8] ss:$16 sps:$4 sm:$0xff]  }
 0x16d   :  { %3152 = vmatprep.mubr.bf16.mxu1 %v8514_v5  ;;  %v8609_v5 = vld [vmem:[#allocation16 + $0x4] ss:$16 sps:$4 sm:$0xff]  }
 0x16e   :  { %2994 = vmatpush1.bf16.msra.mxu0 %v8508_v6  ;;  %v8612_v6 = vld [vmem:[#allocation16 + $0xc] ss:$16 sps:$4 sm:$0xff]  }
 0x16f   :  { %3220 = vmatpush1.bf16.msra.mxu1 %v8511_v7  ;;  %2995 = vmatprep.subr.bf16.mxu0 %v8519_v8  ;;  %v8604_v7 = vld [vmem:[#allocation7 + $0x8] ss:$16 sps:$4 sm:$0xff]   ;;  %v8607_v8 = vld [vmem:[#allocation16] ss:$16 sps:$4 sm:$0xff]  }
 0x170   :  { %3221 = vmatprep.subr.bf16.mxu1 %v8522_v9  ;;  %v8610_v9 = vld [vmem:[#allocation16 + $0x8] ss:$16 sps:$4 sm:$0xff]  }
 0x171   :  { %2927 = vmatmul.mubr.bf16.gmra.mrb[8].mxu0 %v8516_v10 }
 0x172   :  { %3153 = vmatmul.mubr.bf16.gmra.mrb[8].mxu1 %v8516_v10  ;;  %2996 = vmatpush1.bf16.msra.mxu0 %v8517_v11  ;;  %v8615_v10 = vld [vmem:[#allocation16 + $0x24] ss:$16 sps:$4 sm:$0xff]   ;;  %v8618_v11 = vld [vmem:[#allocation16 + $0x2c] ss:$16 sps:$4 sm:$0xff]  }
 0x173   :  { %3222 = vmatpush1.bf16.msra.mxu1 %v8520_v12  ;;  %2997 = vmatprep.subr.bf16.mxu0 %v8525_v13  ;;  %v8619_v12 = vld [vmem:[#allocation7 + $0x2c] ss:$16 sps:$4 sm:$0xff]   ;;  %v8613_v13 = vld [vmem:[#allocation16 + $0x20] ss:$16 sps:$4 sm:$0xff]  }
 0x174   :  { %3223 = vmatprep.subr.bf16.mxu1 %v8528_v14  ;;  %2936 = vmatprep.mubr.bf16.mxu0 %v8529_v15  ;;  %v8616_v14 = vld [vmem:[#allocation16 + $0x28] ss:$16 sps:$4 sm:$0xff]  }
 0x175   :  { %3162 = vmatprep.mubr.bf16.mxu1 %v8529_v15  ;;  %v8624_v15 = vld [vmem:[#allocation16 + $0x44] ss:$16 sps:$4 sm:$0xff]  }
 0x176   :  { %2998 = vmatpush1.bf16.msra.mxu0 %v8523_v16  ;;  %v8627_v16 = vld [vmem:[#allocation16 + $0x4c] ss:$16 sps:$4 sm:$0xff]  }
 0x177   :  { %3224 = vmatpush1.bf16.msra.mxu1 %v8526_v17  ;;  %2999 = vmatprep.subr.bf16.mxu0 %v8534_v18  ;;  %v8621_v17 = vld [vmem:[#allocation7 + $0x28] ss:$16 sps:$4 sm:$0xff]   ;;  %v8622_v18 = vld [vmem:[#allocation16 + $0x40] ss:$16 sps:$4 sm:$0xff]  }
 0x178   :  { %3225 = vmatprep.subr.bf16.mxu1 %v8537_v19  ;;  %v8625_v19 = vld [vmem:[#allocation16 + $0x48] ss:$16 sps:$4 sm:$0xff]  }
 0x179   :  { %2937 = vmatmul.mubr.bf16.gmra.mrb[12].mxu0 %v8531_v20 }
 0x17a   :  { %3163 = vmatmul.mubr.bf16.gmra.mrb[12].mxu1 %v8531_v20  ;;  %3000 = vmatpush1.bf16.msra.mxu0 %v8532_v21  ;;  %v8630_v20 = vld [vmem:[#allocation16 + $0x64] ss:$16 sps:$4 sm:$0xff]   ;;  %v8633_v21 = vld [vmem:[#allocation16 + $0x6c] ss:$16 sps:$4 sm:$0xff]  }
 0x17b   :  { %3226 = vmatpush1.bf16.msra.mxu1 %v8535_v22  ;;  %3001 = vmatprep.subr.bf16.mxu0 %v8540_v23  ;;  %v8634_v22 = vld [vmem:[#allocation7 + $0x4c] ss:$16 sps:$4 sm:$0xff]   ;;  %v8628_v23 = vld [vmem:[#allocation16 + $0x60] ss:$16 sps:$4 sm:$0xff]  }
 0x17c   :  { %3227 = vmatprep.subr.bf16.mxu1 %v8543_v24  ;;  %2946 = vmatprep.mubr.bf16.mxu0 %v8544_v25  ;;  %v8631_v24 = vld [vmem:[#allocation16 + $0x68] ss:$16 sps:$4 sm:$0xff]  }
 0x17d   :  { %3172 = vmatprep.mubr.bf16.mxu1 %v8544_v25  ;;  %v8639_v25 = vld [vmem:[#allocation16 + $0x84] ss:$16 sps:$4 sm:$0xff]  }
 0x17e   :  { %3002 = vmatpush1.bf16.msra.mxu0 %v8538_v26  ;;  %v8642_v26 = vld [vmem:[#allocation16 + $0x8c] ss:$16 sps:$4 sm:$0xff]  }
 0x17f   :  { %3228 = vmatpush1.bf16.msra.mxu1 %v8541_v27  ;;  %3003 = vmatprep.subr.bf16.mxu0 %v8549_v28  ;;  %v8636_v27 = vld [vmem:[#allocation7 + $0x48] ss:$16 sps:$4 sm:$0xff]   ;;  %v8637_v28 = vld [vmem:[#allocation16 + $0x80] ss:$16 sps:$4 sm:$0xff]  }
 0x180   :  { %3229 = vmatprep.subr.bf16.mxu1 %v8552_v29  ;;  %v8640_v29 = vld [vmem:[#allocation16 + $0x88] ss:$16 sps:$4 sm:$0xff]  }
 0x181   :  { %2947 = vmatmul.mubr.bf16.gmra.mrb[16].mxu0 %v8546_v30 }
 0x182   :  { %3173 = vmatmul.mubr.bf16.gmra.mrb[16].mxu1 %v8546_v30  ;;  %3004 = vmatpush1.bf16.msra.mxu0 %v8547_v31  ;;  %v8645_v30 = vld [vmem:[#allocation16 + $0xa4] ss:$16 sps:$4 sm:$0xff]   ;;  %v8648_v31 = vld [vmem:[#allocation16 + $0xac] ss:$16 sps:$4 sm:$0xff]  }
 0x183   :  { %3230 = vmatpush1.bf16.msra.mxu1 %v8550_v32  ;;  %3005 = vmatprep.subr.bf16.mxu0 %v8555_v33  ;;  %v8649_v32 = vld [vmem:[#allocation7 + $0x6c] ss:$16 sps:$4 sm:$0xff]   ;;  %v8643_v33 = vld [vmem:[#allocation16 + $0xa0] ss:$16 sps:$4 sm:$0xff]  }
 0x184   :  { %3231 = vmatprep.subr.bf16.mxu1 %v8558_v34  ;;  %2956 = vmatprep.mubr.bf16.mxu0 %v8559_v35  ;;  %v8646_v34 = vld [vmem:[#allocation16 + $0xa8] ss:$16 sps:$4 sm:$0xff]  }
 0x185   :  { %3182 = vmatprep.mubr.bf16.mxu1 %v8559_v35  ;;  %v8654_v35 = vld [vmem:[#allocation16 + $0xc4] ss:$16 sps:$4 sm:$0xff]  }
 0x186   :  { %3006 = vmatpush1.bf16.msra.mxu0 %v8553_v36  ;;  %v8657_v36 = vld [vmem:[#allocation16 + $0xcc] ss:$16 sps:$4 sm:$0xff]  }
 0x187   :  { %3232 = vmatpush1.bf16.msra.mxu1 %v8556_v37  ;;  %3007 = vmatprep.subr.bf16.mxu0 %v8564_v38  ;;  %v8651_v37 = vld [vmem:[#allocation7 + $0x68] ss:$16 sps:$4 sm:$0xff]   ;;  %v8652_v38 = vld [vmem:[#allocation16 + $0xc0] ss:$16 sps:$4 sm:$0xff]  }
 0x188   :  { %3233 = vmatprep.subr.bf16.mxu1 %v8567_v39  ;;  %v8655_v39 = vld [vmem:[#allocation16 + $0xc8] ss:$16 sps:$4 sm:$0xff]  }
 0x189   :  { %2957 = vmatmul.mubr.bf16.gmra.mrb[20].mxu0 %v8561_v40 }
 0x18a   :  { %3183 = vmatmul.mubr.bf16.gmra.mrb[20].mxu1 %v8561_v40  ;;  %3008 = vmatpush1.bf16.msra.mxu0 %v8562_v41  ;;  %v8660_v40 = vld [vmem:[#allocation16 + $0xe4] ss:$16 sps:$4 sm:$0xff]   ;;  %v8663_v41 = vld [vmem:[#allocation16 + $0xec] ss:$16 sps:$4 sm:$0xff]  }
 0x18b   :  { %3234 = vmatpush1.bf16.msra.mxu1 %v8565_v42  ;;  %3009 = vmatprep.subr.bf16.mxu0 %v8570_v43  ;;  %v8664_v42 = vld [vmem:[#allocation7 + $0x8c] ss:$16 sps:$4 sm:$0xff]   ;;  %v8658_v43 = vld [vmem:[#allocation16 + $0xe0] ss:$16 sps:$4 sm:$0xff]  }
 0x18c   :  { %3235 = vmatprep.subr.bf16.mxu1 %v8573_v44  ;;  %2966 = vmatprep.mubr.bf16.mxu0 %v8574_v45  ;;  %v8661_v44 = vld [vmem:[#allocation16 + $0xe8] ss:$16 sps:$4 sm:$0xff]  }
 0x18d   :  { %3192 = vmatprep.mubr.bf16.mxu1 %v8574_v45  ;;  %v8669_v45 = vld [vmem:[#allocation16 + $0x104] ss:$16 sps:$4 sm:$0xff]  }
 0x18e   :  { %3010 = vmatpush1.bf16.msra.mxu0 %v8568_v46  ;;  %v8672_v46 = vld [vmem:[#allocation16 + $0x10c] ss:$16 sps:$4 sm:$0xff]  }
 0x18f   :  { %3236 = vmatpush1.bf16.msra.mxu1 %v8571_v47  ;;  %3011 = vmatprep.subr.bf16.mxu0 %v8579_v48  ;;  %v8666_v47 = vld [vmem:[#allocation7 + $0x88] ss:$16 sps:$4 sm:$0xff]   ;;  %v8667_v48 = vld [vmem:[#allocation16 + $0x100] ss:$16 sps:$4 sm:$0xff]  }
 0x190   :  { %3237 = vmatprep.subr.bf16.mxu1 %v8582_v49  ;;  %v8670_v49 = vld [vmem:[#allocation16 + $0x108] ss:$16 sps:$4 sm:$0xff]  }
 0x191   :  { %2967 = vmatmul.mubr.bf16.gmra.mrb[24].mxu0 %v8576_v50 }
 0x192   :  { %3193 = vmatmul.mubr.bf16.gmra.mrb[24].mxu1 %v8576_v50  ;;  %3012 = vmatpush1.bf16.msra.mxu0 %v8577_v51  ;;  %v8675_v50 = vld [vmem:[#allocation16 + $0x124] ss:$16 sps:$4 sm:$0xff]   ;;  %v8678_v51 = vld [vmem:[#allocation16 + $0x12c] ss:$16 sps:$4 sm:$0xff]  }
 0x193   :  { %3238 = vmatpush1.bf16.msra.mxu1 %v8580_v52  ;;  %3013 = vmatprep.subr.bf16.mxu0 %v8585_v53  ;;  %v8679_v52 = vld [vmem:[#allocation7 + $0xac] ss:$16 sps:$4 sm:$0xff]   ;;  %v8673_v53 = vld [vmem:[#allocation16 + $0x120] ss:$16 sps:$4 sm:$0xff]  }
 0x194   :  { %3239 = vmatprep.subr.bf16.mxu1 %v8588_v54  ;;  %2976 = vmatprep.mubr.bf16.mxu0 %v8589_v55  ;;  %v8676_v54 = vld [vmem:[#allocation16 + $0x128] ss:$16 sps:$4 sm:$0xff]  }
 0x195   :  { %3202 = vmatprep.mubr.bf16.mxu1 %v8589_v55  ;;  %v8684_v55 = vld [vmem:[#allocation16 + $0x144] ss:$16 sps:$4 sm:$0xff]  }
 0x196   :  { %3014 = vmatpush1.bf16.msra.mxu0 %v8583_v56  ;;  %v8681_v56 = vld [vmem:[#allocation7 + $0xa8] ss:$16 sps:$4 sm:$0xff]  }
 0x197   :  { %3240 = vmatpush1.bf16.msra.mxu1 %v8586_v57  ;;  %3015 = vmatprep.subr.bf16.mxu0 %v8594_v58  ;;  %v8687_v57 = vld [vmem:[#allocation16 + $0x14c] ss:$16 sps:$4 sm:$0xff]   ;;  %v8682_v58 = vld [vmem:[#allocation16 + $0x140] ss:$16 sps:$4 sm:$0xff]  }
 0x198   :  { %3241 = vmatprep.subr.bf16.mxu1 %v8597_v59  ;;  %v8685_v59 = vld [vmem:[#allocation16 + $0x148] ss:$16 sps:$4 sm:$0xff]  }
 0x199   :  { %2977 = vmatmul.mubr.bf16.gmra.mrb[28].mxu0 %v8591_v60 }
 0x19a   :  { %3203 = vmatmul.mubr.bf16.gmra.mrb[28].mxu1 %v8591_v60  ;;  %3016 = vmatpush1.bf16.msra.mxu0 %v8592_v61  ;;  %v8690_v60 = vld [vmem:[#allocation16 + $0x164] ss:$16 sps:$4 sm:$0xff]   ;;  %v8693_v61 = vld [vmem:[#allocation16 + $0x16c] ss:$16 sps:$4 sm:$0xff]  }
 0x19b   :  { %3242 = vmatpush1.bf16.msra.mxu1 %v8595_v62  ;;  %3017 = vmatprep.subr.bf16.mxu0 %v8600_v63  ;;  %v8694_v62 = vld [vmem:[#allocation7 + $0xcc] ss:$16 sps:$4 sm:$0xff]   ;;  %v8688_v63 = vld [vmem:[#allocation16 + $0x160] ss:$16 sps:$4 sm:$0xff]  }
 0x19c   :  { %3243 = vmatprep.subr.bf16.mxu1 %v8603_v0  ;;  %3019 = vmatprep.mubr.bf16.mxu0 %v8606_v1  ;;  %v8691_v0 = vld [vmem:[#allocation16 + $0x168] ss:$16 sps:$4 sm:$0xff]  }
 0x19d   :  { %3245 = vmatprep.mubr.bf16.mxu1 %v8606_v1  ;;  %v8699_v1 = vld [vmem:[#allocation16 + $0x184] ss:$16 sps:$4 sm:$0xff]  }
 0x19e   :  { %3018 = vmatpush1.bf16.msra.mxu0 %v8598_v3  ;;  %v8702_v3 = vld [vmem:[#allocation16 + $0x18c] ss:$16 sps:$4 sm:$0xff]  }
 0x19f   :  { %3244 = vmatpush1.bf16.msra.mxu1 %v8601_v4  ;;  %4404 = vmatprep.subr.bf16.mxu0 %v8609_v5  ;;  %v8696_v4 = vld [vmem:[#allocation7 + $0xc8] ss:$16 sps:$4 sm:$0xff]   ;;  %v8697_v5 = vld [vmem:[#allocation16 + $0x180] ss:$16 sps:$4 sm:$0xff]  }
 0x1a0   :  { %4630 = vmatprep.subr.bf16.mxu1 %v8612_v6  ;;  %v8700_v6 = vld [vmem:[#allocation16 + $0x188] ss:$16 sps:$4 sm:$0xff]  }
 0x1a1   :  { %3020 = vmatmul.mubr.bf16.vlgmr.msra.gmra.mrb[0].mxu0 %v8604_v7 }
 0x1a2   :  { %3246 = vmatmul.mubr.bf16.vlgmr.msra.gmra.mrb[0].mxu1 %v8604_v7  ;;  %4405 = vmatpush1.bf16.msra.mxu0 %v8607_v8  ;;  %v8705_v7 = vld [vmem:[#allocation16 + $0x1a4] ss:$16 sps:$4 sm:$0xff]   ;;  %v8708_v8 = vld [vmem:[#allocation16 + $0x1ac] ss:$16 sps:$4 sm:$0xff]  }
 0x1a3   :  { %4631 = vmatpush1.bf16.msra.mxu1 %v8610_v9  ;;  %4406 = vmatprep.subr.bf16.mxu0 %v8615_v10  ;;  %v8709_v9 = vld [vmem:[#allocation7 + $0xec] ss:$16 sps:$4 sm:$0xff]   ;;  %v8703_v10 = vld [vmem:[#allocation16 + $0x1a0] ss:$16 sps:$4 sm:$0xff]  }
 0x1a4   :  { %4632 = vmatprep.subr.bf16.mxu1 %v8618_v11  ;;  %3029 = vmatprep.mubr.bf16.mxu0 %v8619_v12  ;;  %v8706_v11 = vld [vmem:[#allocation16 + $0x1a8] ss:$16 sps:$4 sm:$0xff]  }
 0x1a5   :  { %3255 = vmatprep.mubr.bf16.mxu1 %v8619_v12  ;;  %v8714_v12 = vld [vmem:[#allocation16 + $0x1c4] ss:$16 sps:$4 sm:$0xff]  }
 0x1a6   :  { %4407 = vmatpush1.bf16.msra.mxu0 %v8613_v13  ;;  %v8711_v13 = vld [vmem:[#allocation7 + $0xe8] ss:$16 sps:$4 sm:$0xff]  }
 0x1a7   :  { %4633 = vmatpush1.bf16.msra.mxu1 %v8616_v14  ;;  %4408 = vmatprep.subr.bf16.mxu0 %v8624_v15  ;;  %v8717_v14 = vld [vmem:[#allocation16 + $0x1cc] ss:$16 sps:$4 sm:$0xff]   ;;  %v8712_v15 = vld [vmem:[#allocation16 + $0x1c0] ss:$16 sps:$4 sm:$0xff]  }
 0x1a8   :  { %4634 = vmatprep.subr.bf16.mxu1 %v8627_v16  ;;  %v8715_v16 = vld [vmem:[#allocation16 + $0x1c8] ss:$16 sps:$4 sm:$0xff]  }
 0x1a9   :  { %3030 = vmatmul.mubr.bf16.gmra.mrb[4].mxu0 %v8621_v17 }
 0x1aa   :  { %3256 = vmatmul.mubr.bf16.gmra.mrb[4].mxu1 %v8621_v17  ;;  %4409 = vmatpush1.bf16.msra.mxu0 %v8622_v18  ;;  %v8720_v17 = vld [vmem:[#allocation16 + $0x1e4] ss:$16 sps:$4 sm:$0xff]   ;;  %v8723_v18 = vld [vmem:[#allocation16 + $0x1ec] ss:$16 sps:$4 sm:$0xff]  }
 0x1ab   :  { %4635 = vmatpush1.bf16.msra.mxu1 %v8625_v19  ;;  %4410 = vmatprep.subr.bf16.mxu0 %v8630_v20  ;;  %v8726_v19 = vld [vmem:[#allocation10 + $0x4] ss:$12 sps:$4 sm:$0xff]  }
 0x1ac   :  { %4636 = vmatprep.subr.bf16.mxu1 %v8633_v21  ;;  %3039 = vmatprep.mubr.bf16.mxu0 %v8634_v22  ;;  %v8718_v20 = vld [vmem:[#allocation16 + $0x1e0] ss:$16 sps:$4 sm:$0xff]   ;;  %v8721_v21 = vld [vmem:[#allocation16 + $0x1e8] ss:$16 sps:$4 sm:$0xff]  }
 0x1ad   :  { %3265 = vmatprep.mubr.bf16.mxu1 %v8634_v22  ;;  %v8729_v22 = vld [vmem:[#allocation16 + $0x204] ss:$16 sps:$4 sm:$0xff]  }
 0x1ae   :  { %4411 = vmatpush1.bf16.msra.mxu0 %v8628_v23  ;;  %v8732_v23 = vld [vmem:[#allocation16 + $0x20c] ss:$16 sps:$4 sm:$0xff]  }
 0x1af   :  { %4637 = vmatpush1.bf16.msra.mxu1 %v8631_v24  ;;  %4412 = vmatprep.subr.bf16.mxu0 %v8639_v25  ;;  %v8724_v24 = vld [vmem:[#allocation10] ss:$12 sps:$4 sm:$0xff]  }
 0x1b0   :  { %4638 = vmatprep.subr.bf16.mxu1 %v8642_v26  ;;  %v8727_v25 = vld [vmem:[#allocation16 + $0x200] ss:$16 sps:$4 sm:$0xff]   ;;  %v8730_v26 = vld [vmem:[#allocation16 + $0x208] ss:$16 sps:$4 sm:$0xff]  }
 0x1b1   :  { %3040 = vmatmul.mubr.bf16.gmra.mrb[8].mxu0 %v8636_v27 }
 0x1b2   :  { %3266 = vmatmul.mubr.bf16.gmra.mrb[8].mxu1 %v8636_v27  ;;  %4413 = vmatpush1.bf16.msra.mxu0 %v8637_v28  ;;  %v8733_v27 = vld [vmem:[#allocation10 + $0x1c] ss:$12 sps:$4 sm:$0xff]   ;;  %v8738_v28 = vld [vmem:[#allocation16 + $0x224] ss:$16 sps:$4 sm:$0xff]  }
 0x1b3   :  { %4639 = vmatpush1.bf16.msra.mxu1 %v8640_v29  ;;  %4414 = vmatprep.subr.bf16.mxu0 %v8645_v30  ;;  %v8741_v29 = vld [vmem:[#allocation16 + $0x22c] ss:$16 sps:$4 sm:$0xff]   ;;  %v8736_v30 = vld [vmem:[#allocation16 + $0x220] ss:$16 sps:$4 sm:$0xff]  }
 0x1b4   :  { %4640 = vmatprep.subr.bf16.mxu1 %v8648_v31  ;;  %3049 = vmatprep.mubr.bf16.mxu0 %v8649_v32  ;;  %v8739_v31 = vld [vmem:[#allocation16 + $0x228] ss:$16 sps:$4 sm:$0xff]  }
 0x1b5   :  { %3275 = vmatprep.mubr.bf16.mxu1 %v8649_v32  ;;  %v8747_v32 = vld [vmem:[#allocation16 + $0x244] ss:$16 sps:$4 sm:$0xff]  }
 0x1b6   :  { %4415 = vmatpush1.bf16.msra.mxu0 %v8643_v33  ;;  %v8750_v33 = vld [vmem:[#allocation16 + $0x24c] ss:$16 sps:$4 sm:$0xff]  }
 0x1b7   :  { %4641 = vmatpush1.bf16.msra.mxu1 %v8646_v34  ;;  %4416 = vmatprep.subr.bf16.mxu0 %v8654_v35  ;;  %v8735_v34 = vld [vmem:[#allocation10 + $0x18] ss:$12 sps:$4 sm:$0xff]   ;;  %v8742_v35 = vld [vmem:[#allocation10 + $0x34] ss:$12 sps:$4 sm:$0xff]  }
 0x1b8   :  { %4642 = vmatprep.subr.bf16.mxu1 %v8657_v36  ;;  %v8745_v36 = vld [vmem:[#allocation16 + $0x240] ss:$16 sps:$4 sm:$0xff]  }
 0x1b9   :  { %3050 = vmatmul.mubr.bf16.gmra.mrb[12].mxu0 %v8651_v37 }
 0x1ba   :  { %3276 = vmatmul.mubr.bf16.gmra.mrb[12].mxu1 %v8651_v37  ;;  %4417 = vmatpush1.bf16.msra.mxu0 %v8652_v38  ;;  %v8748_v37 = vld [vmem:[#allocation16 + $0x248] ss:$16 sps:$4 sm:$0xff]   ;;  %v8756_v38 = vld [vmem:[#allocation16 + $0x264] ss:$16 sps:$4 sm:$0xff]  }
 0x1bb   :  { %4643 = vmatpush1.bf16.msra.mxu1 %v8655_v39  ;;  %4418 = vmatprep.subr.bf16.mxu0 %v8660_v40  ;;  %v8759_v39 = vld [vmem:[#allocation16 + $0x26c] ss:$16 sps:$4 sm:$0xff]  }
 0x1bc   :  { %4644 = vmatprep.subr.bf16.mxu1 %v8663_v41  ;;  %3059 = vmatprep.mubr.bf16.mxu0 %v8664_v42  ;;  %v8744_v40 = vld [vmem:[#allocation10 + $0x30] ss:$12 sps:$4 sm:$0xff]  }
 0x1bd   :  { %3285 = vmatprep.mubr.bf16.mxu1 %v8664_v42  ;;  %v8754_v41 = vld [vmem:[#allocation16 + $0x260] ss:$16 sps:$4 sm:$0xff]   ;;  %v8757_v42 = vld [vmem:[#allocation16 + $0x268] ss:$16 sps:$4 sm:$0xff]  }
 0x1be   :  { %4419 = vmatpush1.bf16.msra.mxu0 %v8658_v43  ;;  %v8765_v43 = vld [vmem:[#allocation16 + $0x284] ss:$16 sps:$4 sm:$0xff]  }
 0x1bf   :  { %4645 = vmatpush1.bf16.msra.mxu1 %v8661_v44  ;;  %4420 = vmatprep.subr.bf16.mxu0 %v8669_v45  ;;  %v8768_v44 = vld [vmem:[#allocation16 + $0x28c] ss:$16 sps:$4 sm:$0xff]  }
 0x1c0   :  { %4646 = vmatprep.subr.bf16.mxu1 %v8672_v46  ;;  %v8751_v45 = vld [vmem:[#allocation10 + $0x4c] ss:$12 sps:$4 sm:$0xff]   ;;  %v8763_v46 = vld [vmem:[#allocation16 + $0x280] ss:$16 sps:$4 sm:$0xff]  }
 0x1c1   :  { %3060 = vmatmul.mubr.bf16.gmra.mrb[16].mxu0 %v8666_v47 }
 0x1c2   :  { %3286 = vmatmul.mubr.bf16.gmra.mrb[16].mxu1 %v8666_v47  ;;  %4421 = vmatpush1.bf16.msra.mxu0 %v8667_v48  ;;  %v8766_v47 = vld [vmem:[#allocation16 + $0x288] ss:$16 sps:$4 sm:$0xff]   ;;  %v8774_v48 = vld [vmem:[#allocation16 + $0x2a4] ss:$16 sps:$4 sm:$0xff]  }
 0x1c3   :  { %4647 = vmatpush1.bf16.msra.mxu1 %v8670_v49  ;;  %4422 = vmatprep.subr.bf16.mxu0 %v8675_v50  ;;  %v8777_v49 = vld [vmem:[#allocation16 + $0x2ac] ss:$16 sps:$4 sm:$0xff]   ;;  %v8772_v50 = vld [vmem:[#allocation16 + $0x2a0] ss:$16 sps:$4 sm:$0xff]  }
 0x1c4   :  { %4648 = vmatprep.subr.bf16.mxu1 %v8678_v51  ;;  %3069 = vmatprep.mubr.bf16.mxu0 %v8679_v52  ;;  %v8775_v51 = vld [vmem:[#allocation16 + $0x2a8] ss:$16 sps:$4 sm:$0xff]  }
 0x1c5   :  { %3295 = vmatprep.mubr.bf16.mxu1 %v8679_v52  ;;  %v8783_v52 = vld [vmem:[#allocation16 + $0x2c4] ss:$16 sps:$4 sm:$0xff]  }
 0x1c6   :  { %4423 = vmatpush1.bf16.msra.mxu0 %v8673_v53  ;;  %v8753_v53 = vld [vmem:[#allocation10 + $0x48] ss:$12 sps:$4 sm:$0xff]  }
 0x1c7   :  { %4649 = vmatpush1.bf16.msra.mxu1 %v8676_v54  ;;  %4424 = vmatprep.subr.bf16.mxu0 %v8684_v55  ;;  %v8786_v54 = vld [vmem:[#allocation16 + $0x2cc] ss:$16 sps:$4 sm:$0xff]   ;;  %v8760_v55 = vld [vmem:[#allocation10 + $0x64] ss:$12 sps:$4 sm:$0xff]  }
 0x1c8   :  { %4650 = vmatprep.subr.bf16.mxu1 %v8687_v57  ;;  %v8784_v57 = vld [vmem:[#allocation16 + $0x2c8] ss:$16 sps:$4 sm:$0xff]  }
 0x1c9   :  { %3070 = vmatmul.mubr.bf16.gmra.mrb[20].mxu0 %v8681_v56 }
 0x1ca   :  { %3296 = vmatmul.mubr.bf16.gmra.mrb[20].mxu1 %v8681_v56  ;;  %4425 = vmatpush1.bf16.msra.mxu0 %v8682_v58  ;;  %v8781_v56 = vld [vmem:[#allocation16 + $0x2c0] ss:$16 sps:$4 sm:$0xff]   ;;  %v8792_v58 = vld [vmem:[#allocation16 + $0x2e4] ss:$16 sps:$4 sm:$0xff]  }
 0x1cb   :  { %4651 = vmatpush1.bf16.msra.mxu1 %v8685_v59  ;;  %4426 = vmatprep.subr.bf16.mxu0 %v8690_v60  ;;  %v8795_v59 = vld [vmem:[#allocation16 + $0x2ec] ss:$16 sps:$4 sm:$0xff]   ;;  %v8790_v60 = vld [vmem:[#allocation16 + $0x2e0] ss:$16 sps:$4 sm:$0xff]  }
 0x1cc   :  { %4652 = vmatprep.subr.bf16.mxu1 %v8693_v61  ;;  %3079 = vmatprep.mubr.bf16.mxu0 %v8694_v62  ;;  %v8793_v61 = vld [vmem:[#allocation16 + $0x2e8] ss:$16 sps:$4 sm:$0xff]  }
 0x1cd   :  { %3305 = vmatprep.mubr.bf16.mxu1 %v8694_v62  ;;  %v8799_v62 = vld [vmem:[#allocation15 + $0x4] ss:$16 sps:$4 sm:$0xff]  }
 0x1ce   :  { %4427 = vmatpush1.bf16.msra.mxu0 %v8688_v63  ;;  %v8762_v63 = vld [vmem:[#allocation10 + $0x60] ss:$12 sps:$4 sm:$0xff]  }
 0x1cf   :  { %4653 = vmatpush1.bf16.msra.mxu1 %v8691_v0  ;;  %4428 = vmatprep.subr.bf16.mxu0 %v8699_v1  ;;  %v8802_v0 = vld [vmem:[#allocation15 + $0xc] ss:$16 sps:$4 sm:$0xff]  }
 0x1d0   :  { %4654 = vmatprep.subr.bf16.mxu1 %v8702_v3  ;;  %v8769_v1 = vld [vmem:[#allocation10 + $0x7c] ss:$12 sps:$4 sm:$0xff]   ;;  %v8771_v3 = vld [vmem:[#allocation10 + $0x78] ss:$12 sps:$4 sm:$0xff]  }
 0x1d1   :  { %3080 = vmatmul.mubr.bf16.gmra.mrb[24].mxu0 %v8696_v4 }
 0x1d2   :  { %3306 = vmatmul.mubr.bf16.gmra.mrb[24].mxu1 %v8696_v4  ;;  %4429 = vmatpush1.bf16.msra.mxu0 %v8697_v5  ;;  %v8778_v4 = vld [vmem:[#allocation10 + $0x94] ss:$12 sps:$4 sm:$0xff]   ;;  %v8780_v5 = vld [vmem:[#allocation10 + $0x90] ss:$12 sps:$4 sm:$0xff]  }
 0x1d3   :  { %4655 = vmatpush1.bf16.msra.mxu1 %v8700_v6  ;;  %4430 = vmatprep.subr.bf16.mxu0 %v8705_v7  ;;  %v8787_v6 = vld [vmem:[#allocation10 + $0xac] ss:$12 sps:$4 sm:$0xff]   ;;  %v8789_v7 = vld [vmem:[#allocation10 + $0xa8] ss:$12 sps:$4 sm:$0xff]  }
 0x1d4   :  { %4656 = vmatprep.subr.bf16.mxu1 %v8708_v8  ;;  %3089 = vmatprep.mubr.bf16.mxu0 %v8709_v9  ;;  %v8796_v8 = vld [vmem:[#allocation10 + $0x8] ss:$12 sps:$4 sm:$0xff]  }
 0x1d5   :  { %3315 = vmatprep.mubr.bf16.mxu1 %v8709_v9  ;;  %v8797_v9 = vld [vmem:[#allocation15] ss:$16 sps:$4 sm:$0xff]  }
 0x1d6   :  { %4431 = vmatpush1.bf16.msra.mxu0 %v8703_v10  ;;  %v8800_v10 = vld [vmem:[#allocation15 + $0x8] ss:$16 sps:$4 sm:$0xff]  }
 0x1d7   :  { %4657 = vmatpush1.bf16.msra.mxu1 %v8706_v11  ;;  %4432 = vmatprep.subr.bf16.mxu0 %v8714_v12  ;;  %v8805_v11 = vld [vmem:[#allocation15 + $0x24] ss:$16 sps:$4 sm:$0xff]   ;;  %v8808_v12 = vld [vmem:[#allocation15 + $0x2c] ss:$16 sps:$4 sm:$0xff]  }
 0x1d8   :  { %4658 = vmatprep.subr.bf16.mxu1 %v8717_v14  ;;  %v8806_v14 = vld [vmem:[#allocation15 + $0x28] ss:$16 sps:$4 sm:$0xff]  }
 0x1d9   :  { %3090 = vmatmul.mubr.bf16.gmra.mrb[28].mxu0 %v8711_v13 }
 0x1da   :  { %3316 = vmatmul.mubr.bf16.gmra.mrb[28].mxu1 %v8711_v13  ;;  %4433 = vmatpush1.bf16.msra.mxu0 %v8712_v15  ;;  %v8803_v13 = vld [vmem:[#allocation15 + $0x20] ss:$16 sps:$4 sm:$0xff]   ;;  %v8812_v15 = vld [vmem:[#allocation15 + $0x44] ss:$16 sps:$4 sm:$0xff]  }
 0x1db   :  { %4659 = vmatpush1.bf16.msra.mxu1 %v8715_v16  ;;  %4434 = vmatprep.subr.bf16.mxu0 %v8720_v17  ;;  %v8815_v16 = vld [vmem:[#allocation15 + $0x4c] ss:$16 sps:$4 sm:$0xff]  }
 0x1dc   :  { %4660 = vmatprep.subr.bf16.mxu1 %v8723_v18  ;;  %4436 = vmatprep.mubr.bf16.mxu0 %v8726_v19  ;;  %v8809_v17 = vld [vmem:[#allocation10 + $0x20] ss:$12 sps:$4 sm:$0xff]  }
 0x1dd   :  { %4662 = vmatprep.mubr.bf16.mxu1 %v8726_v19  ;;  %v8810_v18 = vld [vmem:[#allocation15 + $0x40] ss:$16 sps:$4 sm:$0xff]   ;;  %v8813_v19 = vld [vmem:[#allocation15 + $0x48] ss:$16 sps:$4 sm:$0xff]  }
 0x1de   :  { %4435 = vmatpush1.bf16.msra.mxu0 %v8718_v20  ;;  %v8818_v20 = vld [vmem:[#allocation15 + $0x64] ss:$16 sps:$4 sm:$0xff]  }
 0x1df   :  { %4661 = vmatpush1.bf16.msra.mxu1 %v8721_v21  ;;  %4517 = vmatprep.subr.bf16.mxu0 %v8729_v22  ;;  %v8821_v21 = vld [vmem:[#allocation15 + $0x6c] ss:$16 sps:$4 sm:$0xff]   ;;  %v8816_v22 = vld [vmem:[#allocation15 + $0x60] ss:$16 sps:$4 sm:$0xff]  }
 0x1e0   :  { %4743 = vmatprep.subr.bf16.mxu1 %v8732_v23  ;;  %v8819_v23 = vld [vmem:[#allocation15 + $0x68] ss:$16 sps:$4 sm:$0xff]  }
 0x1e1   :  { %4437 = vmatmul.mubr.bf16.vlgmr.msra.gmra.mrb[32].mxu0 %v8724_v24 }
 0x1e2   :  { %4663 = vmatmul.mubr.bf16.vlgmr.msra.gmra.mrb[32].mxu1 %v8724_v24  ;;  %4518 = vmatpush1.bf16.msra.mxu0 %v8727_v25  ;;  %v8825_v24 = vld [vmem:[#allocation15 + $0x84] ss:$16 sps:$4 sm:$0xff]   ;;  %v8828_v25 = vld [vmem:[#allocation15 + $0x8c] ss:$16 sps:$4 sm:$0xff]  }
 0x1e3   :  { %4744 = vmatpush1.bf16.msra.mxu1 %v8730_v26  ;;  %4446 = vmatprep.mubr.bf16.mxu0 %v8733_v27  ;;  %v8822_v26 = vld [vmem:[#allocation10 + $0x38] ss:$12 sps:$4 sm:$0xff]  }
 0x1e4   :  { %4672 = vmatprep.mubr.bf16.mxu1 %v8733_v27  ;;  %4519 = vmatprep.subr.bf16.mxu0 %v8738_v28  ;;  %v8823_v27 = vld [vmem:[#allocation15 + $0x80] ss:$16 sps:$4 sm:$0xff]   ;;  %v8826_v28 = vld [vmem:[#allocation15 + $0x88] ss:$16 sps:$4 sm:$0xff]  }
 0x1e5   :  { %4745 = vmatprep.subr.bf16.mxu1 %v8741_v29  ;;  %v8831_v29 = vld [vmem:[#allocation15 + $0xa4] ss:$16 sps:$4 sm:$0xff]  }
 0x1e6   :  { %4520 = vmatpush1.bf16.msra.mxu0 %v8736_v30  ;;  %v8834_v30 = vld [vmem:[#allocation15 + $0xac] ss:$16 sps:$4 sm:$0xff]  }
 0x1e7   :  { %4746 = vmatpush1.bf16.msra.mxu1 %v8739_v31  ;;  %4521 = vmatprep.subr.bf16.mxu0 %v8747_v32  ;;  %v8829_v31 = vld [vmem:[#allocation15 + $0xa0] ss:$16 sps:$4 sm:$0xff]   ;;  %v8832_v32 = vld [vmem:[#allocation15 + $0xa8] ss:$16 sps:$4 sm:$0xff]  }
 0x1e8   :  { %4747 = vmatprep.subr.bf16.mxu1 %v8750_v33  ;;  %v8838_v33 = vld [vmem:[#allocation15 + $0xc4] ss:$16 sps:$4 sm:$0xff]  }
 0x1e9   :  { %4447 = vmatmul.mubr.bf16.gmra.mrb[36].mxu0 %v8735_v34 }
 0x1ea   :  { %4673 = vmatmul.mubr.bf16.gmra.mrb[36].mxu1 %v8735_v34  ;;  %4456 = vmatprep.mubr.bf16.mxu0 %v8742_v35  ;;  %v8841_v34 = vld [vmem:[#allocation15 + $0xcc] ss:$16 sps:$4 sm:$0xff]  }
 0x1eb   :  { %4682 = vmatprep.mubr.bf16.mxu1 %v8742_v35  ;;  %4522 = vmatpush1.bf16.msra.mxu0 %v8745_v36  ;;  %v8835_v35 = vld [vmem:[#allocation10 + $0x50] ss:$12 sps:$4 sm:$0xff]  }
 0x1ec   :  { %4748 = vmatpush1.bf16.msra.mxu1 %v8748_v37  ;;  %4523 = vmatprep.subr.bf16.mxu0 %v8756_v38  ;;  %v8836_v36 = vld [vmem:[#allocation15 + $0xc0] ss:$16 sps:$4 sm:$0xff]   ;;  %v8839_v37 = vld [vmem:[#allocation15 + $0xc8] ss:$16 sps:$4 sm:$0xff]   ;;  %v8844_v38 = vld [vmem:[#allocation15 + $0xe4] ss:$16 sps:$4 sm:$0xff]  }
 0x1ed   :  { %4749 = vmatprep.subr.bf16.mxu1 %v8759_v39  ;;  %v8847_v39 = vld [vmem:[#allocation15 + $0xec] ss:$16 sps:$4 sm:$0xff]  }
 0x1ef   :  { %4524 = vmatpush1.bf16.msra.mxu0 %v8754_v41  ;;  %v8845_v41 = vld [vmem:[#allocation15 + $0xe8] ss:$16 sps:$4 sm:$0xff]  }
 0x1f0   :  { %4750 = vmatpush1.bf16.msra.mxu1 %v8757_v42  ;;  %4525 = vmatprep.subr.bf16.mxu0 %v8765_v43  ;;  %v8851_v42 = vld [vmem:[#allocation15 + $0x104] ss:$16 sps:$4 sm:$0xff]   ;;  %v8854_v43 = vld [vmem:[#allocation15 + $0x10c] ss:$16 sps:$4 sm:$0xff]  }
 0x1f1   :  { %4457 = vmatmul.mubr.bf16.gmra.mrb[40].mxu0 %v8744_v40  ;;  %4751 = vmatprep.subr.bf16.mxu1 %v8768_v44  ;;  %v8848_v44 = vld [vmem:[#allocation10 + $0x68] ss:$12 sps:$4 sm:$0xff]  }
 0x1f2   :  { %4683 = vmatmul.mubr.bf16.gmra.mrb[40].mxu1 %v8744_v40  ;;  %4466 = vmatprep.mubr.bf16.mxu0 %v8751_v45  ;;  %v8842_v40 = vld [vmem:[#allocation15 + $0xe0] ss:$16 sps:$4 sm:$0xff]  }
 0x1f3   :  { %4692 = vmatprep.mubr.bf16.mxu1 %v8751_v45  ;;  %4526 = vmatpush1.bf16.msra.mxu0 %v8763_v46  ;;  %v8849_v45 = vld [vmem:[#allocation15 + $0x100] ss:$16 sps:$4 sm:$0xff]   ;;  %v8852_v46 = vld [vmem:[#allocation15 + $0x108] ss:$16 sps:$4 sm:$0xff]  }
 0x1f4   :  { %4752 = vmatpush1.bf16.msra.mxu1 %v8766_v47  ;;  %4527 = vmatprep.subr.bf16.mxu0 %v8774_v48  ;;  %v8857_v47 = vld [vmem:[#allocation15 + $0x124] ss:$16 sps:$4 sm:$0xff]   ;;  %v8860_v48 = vld [vmem:[#allocation15 + $0x12c] ss:$16 sps:$4 sm:$0xff]  }
 0x1f5   :  { %4753 = vmatprep.subr.bf16.mxu1 %v8777_v49  ;;  %v8855_v49 = vld [vmem:[#allocation15 + $0x120] ss:$16 sps:$4 sm:$0xff]  }
 0x1f7   :  { %4528 = vmatpush1.bf16.msra.mxu0 %v8772_v50  ;;  %v8858_v50 = vld [vmem:[#allocation15 + $0x128] ss:$16 sps:$4 sm:$0xff]  }
 0x1f8   :  { %4754 = vmatpush1.bf16.msra.mxu1 %v8775_v51  ;;  %4529 = vmatprep.subr.bf16.mxu0 %v8783_v52  ;;  %v8864_v51 = vld [vmem:[#allocation15 + $0x144] ss:$16 sps:$4 sm:$0xff]   ;;  %v8867_v52 = vld [vmem:[#allocation15 + $0x14c] ss:$16 sps:$4 sm:$0xff]  }
 0x1f9   :  { %4467 = vmatmul.mubr.bf16.gmra.mrb[44].mxu0 %v8753_v53  ;;  %4755 = vmatprep.subr.bf16.mxu1 %v8786_v54  ;;  %v8862_v54 = vld [vmem:[#allocation15 + $0x140] ss:$16 sps:$4 sm:$0xff]  }
 0x1fa   :  { %4693 = vmatmul.mubr.bf16.gmra.mrb[44].mxu1 %v8753_v53  ;;  %4476 = vmatprep.mubr.bf16.mxu0 %v8760_v55  ;;  %v8861_v53 = vld [vmem:[#allocation10 + $0x80] ss:$12 sps:$4 sm:$0xff]  }
 0x1fb   :  { %4702 = vmatprep.mubr.bf16.mxu1 %v8760_v55  ;;  %4530 = vmatpush1.bf16.msra.mxu0 %v8781_v56  ;;  %v8865_v55 = vld [vmem:[#allocation15 + $0x148] ss:$16 sps:$4 sm:$0xff]   ;;  %v8870_v56 = vld [vmem:[#allocation15 + $0x164] ss:$16 sps:$4 sm:$0xff]  }
 0x1fc   :  { %4756 = vmatpush1.bf16.msra.mxu1 %v8784_v57  ;;  %4531 = vmatprep.subr.bf16.mxu0 %v8792_v58  ;;  %v8873_v57 = vld [vmem:[#allocation15 + $0x16c] ss:$16 sps:$4 sm:$0xff]   ;;  %v8868_v58 = vld [vmem:[#allocation15 + $0x160] ss:$16 sps:$4 sm:$0xff]  }
 0x1fd   :  { %4757 = vmatprep.subr.bf16.mxu1 %v8795_v59  ;;  %v8871_v59 = vld [vmem:[#allocation15 + $0x168] ss:$16 sps:$4 sm:$0xff]  }
 0x1ff   :  { %4532 = vmatpush1.bf16.msra.mxu0 %v8790_v60  ;;  %v8877_v60 = vld [vmem:[#allocation15 + $0x184] ss:$16 sps:$4 sm:$0xff]  }
 0x200   :  { %4758 = vmatpush1.bf16.msra.mxu1 %v8793_v61  ;;  %5464 = vmatprep.subr.bf16.mxu0 %v8799_v62  ;;  %v8880_v61 = vld [vmem:[#allocation15 + $0x18c] ss:$16 sps:$4 sm:$0xff]   ;;  %v8874_v62 = vld [vmem:[#allocation10 + $0x98] ss:$12 sps:$4 sm:$0xff]  }
 0x201   :  { %4477 = vmatmul.mubr.bf16.gmra.mrb[48].mxu0 %v8762_v63  ;;  %5690 = vmatprep.subr.bf16.mxu1 %v8802_v0  ;;  %v8878_v0 = vld [vmem:[#allocation15 + $0x188] ss:$16 sps:$4 sm:$0xff]  }
 0x202   :  { %4703 = vmatmul.mubr.bf16.gmra.mrb[48].mxu1 %v8762_v63  ;;  %4486 = vmatprep.mubr.bf16.mxu0 %v8769_v1  ;;  %v8875_v63 = vld [vmem:[#allocation15 + $0x180] ss:$16 sps:$4 sm:$0xff]  }
 0x203   :  { %4712 = vmatprep.mubr.bf16.mxu1 %v8769_v1  ;;  %v8883_v1 = vld [vmem:[#allocation15 + $0x1a4] ss:$16 sps:$4 sm:$0xff]  }
 0x209   :  { %4487 = vmatmul.mubr.bf16.gmra.mrb[52].mxu0 %v8771_v3 }
 0x20a   :  { %4713 = vmatmul.mubr.bf16.gmra.mrb[52].mxu1 %v8771_v3  ;;  %4496 = vmatprep.mubr.bf16.mxu0 %v8778_v4  ;;  %v8886_v3 = vld [vmem:[#allocation15 + $0x1ac] ss:$16 sps:$4 sm:$0xff]  }
 0x20b   :  { %4722 = vmatprep.mubr.bf16.mxu1 %v8778_v4  ;;  %v8881_v4 = vld [vmem:[#allocation15 + $0x1a0] ss:$16 sps:$4 sm:$0xff]  }
 0x211   :  { %4497 = vmatmul.mubr.bf16.gmra.mrb[56].mxu0 %v8780_v5 }
 0x212   :  { %4723 = vmatmul.mubr.bf16.gmra.mrb[56].mxu1 %v8780_v5  ;;  %4506 = vmatprep.mubr.bf16.mxu0 %v8787_v6  ;;  %v8884_v5 = vld [vmem:[#allocation15 + $0x1a8] ss:$16 sps:$4 sm:$0xff]  }
 0x213   :  { %4732 = vmatprep.mubr.bf16.mxu1 %v8787_v6  ;;  %v8890_v6 = vld [vmem:[#allocation15 + $0x1c4] ss:$16 sps:$4 sm:$0xff]  }
 0x219   :  { %4507 = vmatmul.mubr.bf16.gmra.mrb[60].mxu0 %v8789_v7 }
 0x21a   :  { %4733 = vmatmul.mubr.bf16.gmra.mrb[60].mxu1 %v8789_v7  ;;  %4549 = vmatprep.mubr.bf16.mxu0 %v9227_v2  ;;  %v8893_v7 = vld [vmem:[#allocation15 + $0x1cc] ss:$16 sps:$4 sm:$0xff]  }
 0x21b   :  { %4775 = vmatprep.mubr.bf16.mxu1 %v9227_v2 }
 0x221   :  { %4550 = vmatmul.mubr.bf16.vlgmr.msra.gmra.mrb[32].mxu0 %v8796_v8 }
 0x222   :  { %4776 = vmatmul.mubr.bf16.vlgmr.msra.gmra.mrb[32].mxu1 %v8796_v8  ;;  %5465 = vmatpush1.bf16.msra.mxu0 %v8797_v9  ;;  %v8887_v8 = vld [vmem:[#allocation10 + $0xb0] ss:$12 sps:$4 sm:$0xff]  }
 0x223   :  { %5691 = vmatpush1.bf16.msra.mxu1 %v8800_v10  ;;  %5466 = vmatprep.subr.bf16.mxu0 %v8805_v11  ;;  %v8888_v9 = vld [vmem:[#allocation15 + $0x1c0] ss:$16 sps:$4 sm:$0xff]   ;;  %v8891_v10 = vld [vmem:[#allocation15 + $0x1c8] ss:$16 sps:$4 sm:$0xff]   ;;  %v8896_v11 = vld [vmem:[#allocation15 + $0x1e4] ss:$16 sps:$4 sm:$0xff]  }
 0x224   :  { %5692 = vmatprep.subr.bf16.mxu1 %v8808_v12  ;;  %4559 = vmatprep.mubr.bf16.mxu0 %v9227_v2  ;;  %v8899_v12 = vld [vmem:[#allocation15 + $0x1ec] ss:$16 sps:$4 sm:$0xff]  }
 0x225   :  { %4785 = vmatprep.mubr.bf16.mxu1 %v9227_v2 }
 0x226   :  { %5467 = vmatpush1.bf16.msra.mxu0 %v8803_v13  ;;  %v8902_v13 = vld [vmem:[#allocation9 + $0x4] ss:$12 sps:$4 sm:$0xff]  }
 0x227   :  { %5693 = vmatpush1.bf16.msra.mxu1 %v8806_v14  ;;  %5468 = vmatprep.subr.bf16.mxu0 %v8812_v15  ;;  %v8894_v14 = vld [vmem:[#allocation15 + $0x1e0] ss:$16 sps:$4 sm:$0xff]   ;;  %v8897_v15 = vld [vmem:[#allocation15 + $0x1e8] ss:$16 sps:$4 sm:$0xff]  }
 0x228   :  { %5694 = vmatprep.subr.bf16.mxu1 %v8815_v16  ;;  %v8905_v16 = vld [vmem:[#allocation15 + $0x204] ss:$16 sps:$4 sm:$0xff]  }
 0x229   :  { %4560 = vmatmul.mubr.bf16.gmra.mrb[36].mxu0 %v8809_v17 }
 0x22a   :  { %4786 = vmatmul.mubr.bf16.gmra.mrb[36].mxu1 %v8809_v17  ;;  %5469 = vmatpush1.bf16.msra.mxu0 %v8810_v18  ;;  %v8908_v17 = vld [vmem:[#allocation15 + $0x20c] ss:$16 sps:$4 sm:$0xff]  }
 0x22b   :  { %5695 = vmatpush1.bf16.msra.mxu1 %v8813_v19  ;;  %5470 = vmatprep.subr.bf16.mxu0 %v8818_v20  ;;  %v8900_v18 = vld [vmem:[#allocation9] ss:$12 sps:$4 sm:$0xff]   ;;  %v8906_v20 = vld [vmem:[#allocation15 + $0x208] ss:$16 sps:$4 sm:$0xff]  }
 0x22c   :  { %5696 = vmatprep.subr.bf16.mxu1 %v8821_v21  ;;  %4569 = vmatprep.mubr.bf16.mxu0 %v9227_v2  ;;  %v8903_v19 = vld [vmem:[#allocation15 + $0x200] ss:$16 sps:$4 sm:$0xff]   ;;  %v8909_v21 = vld [vmem:[#allocation9 + $0x1c] ss:$12 sps:$4 sm:$0xff]  }
 0x22d   :  { %4795 = vmatprep.mubr.bf16.mxu1 %v9227_v2 }
 0x22e   :  { %5471 = vmatpush1.bf16.msra.mxu0 %v8816_v22  ;;  %v8914_v22 = vld [vmem:[#allocation15 + $0x224] ss:$16 sps:$4 sm:$0xff]  }
 0x22f   :  { %5697 = vmatpush1.bf16.msra.mxu1 %v8819_v23  ;;  %5472 = vmatprep.subr.bf16.mxu0 %v8825_v24  ;;  %v8917_v23 = vld [vmem:[#allocation15 + $0x22c] ss:$16 sps:$4 sm:$0xff]   ;;  %v8912_v24 = vld [vmem:[#allocation15 + $0x220] ss:$16 sps:$4 sm:$0xff]  }
 0x230   :  { %5698 = vmatprep.subr.bf16.mxu1 %v8828_v25  ;;  %v8915_v25 = vld [vmem:[#allocation15 + $0x228] ss:$16 sps:$4 sm:$0xff]  }
 0x231   :  { %4570 = vmatmul.mubr.bf16.gmra.mrb[40].mxu0 %v8822_v26 }
 0x232   :  { %4796 = vmatmul.mubr.bf16.gmra.mrb[40].mxu1 %v8822_v26  ;;  %5473 = vmatpush1.bf16.msra.mxu0 %v8823_v27  ;;  %v8923_v26 = vld [vmem:[#allocation15 + $0x244] ss:$16 sps:$4 sm:$0xff]   ;;  %v8926_v27 = vld [vmem:[#allocation15 + $0x24c] ss:$16 sps:$4 sm:$0xff]  }
 0x233   :  { %5699 = vmatpush1.bf16.msra.mxu1 %v8826_v28  ;;  %5474 = vmatprep.subr.bf16.mxu0 %v8831_v29  ;;  %v8911_v28 = vld [vmem:[#allocation9 + $0x18] ss:$12 sps:$4 sm:$0xff]   ;;  %v3392_v29 = vlaneseq }
 0x234   :  { %5700 = vmatprep.subr.bf16.mxu1 %v8834_v30  ;;  %4579 = vmatprep.mubr.bf16.mxu0 %v9227_v2  ;;  %v8918_v30 = vld [vmem:[#allocation9 + $0x34] ss:$12 sps:$4 sm:$0xff]  }
 0x235   :  { %4805 = vmatprep.mubr.bf16.mxu1 %v9227_v2 }
 0x236   :  { %5475 = vmatpush1.bf16.msra.mxu0 %v8829_v31  ;;  %v8921_v31 = vld [vmem:[#allocation15 + $0x240] ss:$16 sps:$4 sm:$0xff]  }
 0x237   :  { %5701 = vmatpush1.bf16.msra.mxu1 %v8832_v32  ;;  %5476 = vmatprep.subr.bf16.mxu0 %v8838_v33  ;;  %v8924_v32 = vld [vmem:[#allocation15 + $0x248] ss:$16 sps:$4 sm:$0xff]   ;;  %v8932_v33 = vld [vmem:[#allocation15 + $0x264] ss:$16 sps:$4 sm:$0xff]  }
 0x238   :  { %5702 = vmatprep.subr.bf16.mxu1 %v8841_v34  ;;  %v3393_v34 = vshrl.u32 %v3392_v29, 7 }
 0x239   :  { %4580 = vmatmul.mubr.bf16.gmra.mrb[44].mxu0 %v8835_v35 }
 0x23a   :  { %4806 = vmatmul.mubr.bf16.gmra.mrb[44].mxu1 %v8835_v35  ;;  %5477 = vmatpush1.bf16.msra.mxu0 %v8836_v36  ;;  %v8935_v35 = vld [vmem:[#allocation15 + $0x26c] ss:$16 sps:$4 sm:$0xff]   ;;  %v8930_v36 = vld [vmem:[#allocation15 + $0x260] ss:$16 sps:$4 sm:$0xff]  }
 0x23b   :  { %5703 = vmatpush1.bf16.msra.mxu1 %v8839_v37  ;;  %5478 = vmatprep.subr.bf16.mxu0 %v8844_v38  ;;  %v8933_v37 = vld [vmem:[#allocation15 + $0x268] ss:$16 sps:$4 sm:$0xff]   ;;  %v8941_v38 = vld [vmem:[#allocation15 + $0x284] ss:$16 sps:$4 sm:$0xff]  }
 0x23c   :  { %5704 = vmatprep.subr.bf16.mxu1 %v8847_v39  ;;  %4589 = vmatprep.mubr.bf16.mxu0 %v9227_v2  ;;  %v8920_v39 = vld [vmem:[#allocation9 + $0x30] ss:$12 sps:$4 sm:$0xff]  }
 0x23d   :  { %4815 = vmatprep.mubr.bf16.mxu1 %v9227_v2 }
 0x23e   :  { %5479 = vmatpush1.bf16.msra.mxu0 %v8842_v40  ;;  %v9535_v40 = vsub.s32 0, %v3393_v34 }
 0x23f   :  { %5705 = vmatpush1.bf16.msra.mxu1 %v8845_v41  ;;  %5480 = vmatprep.subr.bf16.mxu0 %v8851_v42  ;;  %v8944_v41 = vld [vmem:[#allocation15 + $0x28c] ss:$16 sps:$4 sm:$0xff]  }
 0x240   :  { %5706 = vmatprep.subr.bf16.mxu1 %v8854_v43  ;;  %v3390_v42 = vld [vmem:[%s10080_s8] sm:$0xf]  ;;  %v9540_v43 = vsub.s32 2, %v3393_v34 }
 0x241   :  { %4590 = vmatmul.mubr.bf16.gmra.mrb[48].mxu0 %v8848_v44 }
 0x242   :  { %4816 = vmatmul.mubr.bf16.gmra.mrb[48].mxu1 %v8848_v44  ;;  %5481 = vmatpush1.bf16.msra.mxu0 %v8849_v45  ;;  %v9542_v44 = vsub.s32 1, %v3393_v34  ;;  %v8927_v45 = vld [vmem:[#allocation9 + $0x4c] ss:$12 sps:$4 sm:$0xff]  }
 0x243   :  { %5707 = vmatpush1.bf16.msra.mxu1 %v8852_v46  ;;  %5482 = vmatprep.subr.bf16.mxu0 %v8857_v47  ;;  %v9544_v46 = vsub.s32 3, %v3393_v34  ;;  %v8939_v47 = vld [vmem:[#allocation15 + $0x280] ss:$16 sps:$4 sm:$0xff]  }
 0x244   :  { %5708 = vmatprep.subr.bf16.mxu1 %v8860_v48  ;;  %4599 = vmatprep.mubr.bf16.mxu0 %v9227_v2  ;;  %v8942_v48 = vld [vmem:[#allocation15 + $0x288] ss:$16 sps:$4 sm:$0xff]  }
 0x245   :  { %4825 = vmatprep.mubr.bf16.mxu1 %v9227_v2 }
 0x246   :  { %5483 = vmatpush1.bf16.msra.mxu0 %v8855_v49  ;;  %v8950_v49 = vld [vmem:[#allocation15 + $0x2a4] ss:$16 sps:$4 sm:$0xff]  }
 0x247   :  { %5709 = vmatpush1.bf16.msra.mxu1 %v8858_v50  ;;  %5484 = vmatprep.subr.bf16.mxu0 %v8864_v51  ;;  %v9547_v50 = vrot.slane %v3390_v42, %v9535_v40  ;;  %v8953_v51 = vld [vmem:[#allocation15 + $0x2ac] ss:$16 sps:$4 sm:$0xff]  }
 0x248   :  { %5710 = vmatprep.subr.bf16.mxu1 %v8867_v52  ;;  %v6290_v52 = vld [vmem:[%s10084_s12] sm:$0xf] }
 0x249   :  { %4600 = vmatmul.mubr.bf16.gmra.mrb[52].mxu0 %v8861_v53 }
 0x24a   :  { %4826 = vmatmul.mubr.bf16.gmra.mrb[52].mxu1 %v8861_v53  ;;  %5485 = vmatpush1.bf16.msra.mxu0 %v8862_v54  ;;  %v9553_v53 = vrot.slane %v3390_v42, %v9540_v43  ;;  %v9556_v54 = vrot.slane %v3390_v42, %v9542_v44 }
 0x24b   :  { %5711 = vmatpush1.bf16.msra.mxu1 %v8865_v55  ;;  %5486 = vmatprep.subr.bf16.mxu0 %v8870_v56  ;;  %v9559_v55 = vrot.slane %v3390_v42, %v9544_v46  ;;  %v8948_v56 = vld [vmem:[#allocation15 + $0x2a0] ss:$16 sps:$4 sm:$0xff]   ;;  %v8969_v42 = vld [vmem:[#allocation15 + $0x2e8] ss:$16 sps:$4 sm:$0xff]  }
 0x24c   :  { %5712 = vmatprep.subr.bf16.mxu1 %v8873_v57  ;;  %4609 = vmatprep.mubr.bf16.mxu0 %v9227_v2 }
 0x24d   :  { %4835 = vmatprep.mubr.bf16.mxu1 %v9227_v2 }
 0x24e   :  { %5487 = vmatpush1.bf16.msra.mxu0 %v8868_v58  ;;  %v8951_v58 = vld [vmem:[#allocation15 + $0x2a8] ss:$16 sps:$4 sm:$0xff]  }
 0x24f   :  { %5713 = vmatpush1.bf16.msra.mxu1 %v8871_v59  ;;  %5488 = vmatprep.subr.bf16.mxu0 %v8877_v60  ;;  %v8959_v59 = vld [vmem:[#allocation15 + $0x2c4] ss:$16 sps:$4 sm:$0xff]  }
 0x250   :  { %5714 = vmatprep.subr.bf16.mxu1 %v8880_v61  ;;  %v9563_v61 = vrot.slane %v6290_v52, %v9535_v40 }
 0x251   :  { %4610 = vmatmul.mubr.bf16.gmra.mrb[56].mxu0 %v8874_v62 }
 0x252   :  { %4836 = vmatmul.mubr.bf16.gmra.mrb[56].mxu1 %v8874_v62  ;;  %5489 = vmatpush1.bf16.msra.mxu0 %v8875_v63 }
 0x253   :  { %5715 = vmatpush1.bf16.msra.mxu1 %v8878_v0  ;;  %5490 = vmatprep.subr.bf16.mxu0 %v8883_v1  ;;  %v8929_v0 = vld [vmem:[#allocation9 + $0x48] ss:$12 sps:$4 sm:$0xff]   ;;  %v8962_v1 = vld [vmem:[#allocation15 + $0x2cc] ss:$16 sps:$4 sm:$0xff]  }
 0x254   :  { %5716 = vmatprep.subr.bf16.mxu1 %v8886_v3  ;;  %4619 = vmatprep.mubr.bf16.mxu0 %v9227_v2 }
 0x255   :  { %4845 = vmatprep.mubr.bf16.mxu1 %v9227_v2 }
 0x256   :  { %5491 = vmatpush1.bf16.msra.mxu0 %v8881_v4 }
 0x257   :  { %5717 = vmatpush1.bf16.msra.mxu1 %v8884_v5  ;;  %5492 = vmatprep.subr.bf16.mxu0 %v8890_v6  ;;  %v9568_v5 = vrot.slane %v6290_v52, %v9542_v44 }
 0x258   :  { %5718 = vmatprep.subr.bf16.mxu1 %v8893_v7 }
 0x259   :  { %4620 = vmatmul.mubr.bf16.gmra.mrb[60].mxu0 %v8887_v8 }
 0x25a   :  { %4846 = vmatmul.mubr.bf16.gmra.mrb[60].mxu1 %v8887_v8  ;;  %5493 = vmatpush1.bf16.msra.mxu0 %v8888_v9  ;;  %v8936_v8 = vld [vmem:[#allocation9 + $0x64] ss:$12 sps:$4 sm:$0xff]  }
 0x25b   :  { %5719 = vmatpush1.bf16.msra.mxu1 %v8891_v10  ;;  %5494 = vmatprep.subr.bf16.mxu0 %v8896_v11  ;;  %v8957_v9 = vld [vmem:[#allocation15 + $0x2c0] ss:$16 sps:$4 sm:$0xff]   ;;  %v9571_v11 = vrot.slane %v6290_v52, %v9540_v43 }
 0x25c   :  { %5720 = vmatprep.subr.bf16.mxu1 %v8899_v12  ;;  %5496 = vmatprep.mubr.bf16.mxu0 %v8902_v13 }
 0x25d   :  { %5722 = vmatprep.mubr.bf16.mxu1 %v8902_v13 }
 0x25e   :  { %5495 = vmatpush1.bf16.msra.mxu0 %v8894_v14 }
 0x25f   :  { %5721 = vmatpush1.bf16.msra.mxu1 %v8897_v15  ;;  %5577 = vmatprep.subr.bf16.mxu0 %v8905_v16  ;;  %v8960_v16 = vld [vmem:[#allocation15 + $0x2c8] ss:$16 sps:$4 sm:$0xff]  }
 0x260   :  { %5803 = vmatprep.subr.bf16.mxu1 %v8908_v17 }
 0x261   :  { %5497 = vmatmul.mubr.bf16.vlgmr.msra.gmra.mrb[32].mxu0 %v8900_v18 }
 0x262   :  { %5723 = vmatmul.mubr.bf16.vlgmr.msra.gmra.mrb[32].mxu1 %v8900_v18  ;;  %5578 = vmatpush1.bf16.msra.mxu0 %v8903_v19 }
 0x263   :  { %5804 = vmatpush1.bf16.msra.mxu1 %v8906_v20  ;;  %5506 = vmatprep.mubr.bf16.mxu0 %v8909_v21 }
 0x264   :  { %5732 = vmatprep.mubr.bf16.mxu1 %v8909_v21  ;;  %5579 = vmatprep.subr.bf16.mxu0 %v8914_v22  ;;  %v8968_v22 = vld [vmem:[#allocation15 + $0x2e4] ss:$16 sps:$4 sm:$0xff]  }
 0x265   :  { %5805 = vmatprep.subr.bf16.mxu1 %v8917_v23 }
 0x266   :  { %5580 = vmatpush1.bf16.msra.mxu0 %v8912_v24 }
 0x267   :  { %5806 = vmatpush1.bf16.msra.mxu1 %v8915_v25  ;;  %5581 = vmatprep.subr.bf16.mxu0 %v8923_v26 }
 0x268   :  { %5807 = vmatprep.subr.bf16.mxu1 %v8926_v27  ;;  %v8971_v27 = vld [vmem:[#allocation15 + $0x2ec] ss:$16 sps:$4 sm:$0xff]  }
 0x269   :  { %5507 = vmatmul.mubr.bf16.gmra.mrb[36].mxu0 %v8911_v28 }
 0x26a   :  { %5733 = vmatmul.mubr.bf16.gmra.mrb[36].mxu1 %v8911_v28  ;;  %5516 = vmatprep.mubr.bf16.mxu0 %v8918_v30 }
 0x26b   :  { %5742 = vmatprep.mubr.bf16.mxu1 %v8918_v30  ;;  %5582 = vmatpush1.bf16.msra.mxu0 %v8921_v31 }
 0x26c   :  { %5808 = vmatpush1.bf16.msra.mxu1 %v8924_v32  ;;  %5583 = vmatprep.subr.bf16.mxu0 %v8932_v33  ;;  %v9584_v32 = vrot.slane %v6290_v52, %v9544_v46 }
 0x26d   :  { %5809 = vmatprep.subr.bf16.mxu1 %v8935_v35 }
 0x26f   :  { %5584 = vmatpush1.bf16.msra.mxu0 %v8930_v36 }
 0x270   :  { %5810 = vmatpush1.bf16.msra.mxu1 %v8933_v37  ;;  %5585 = vmatprep.subr.bf16.mxu0 %v8941_v38  ;;  %v8966_v37 = vld [vmem:[#allocation15 + $0x2e0] ss:$16 sps:$4 sm:$0xff]  }
 0x271   :  { %5517 = vmatmul.mubr.bf16.gmra.mrb[40].mxu0 %v8920_v39  ;;  %5811 = vmatprep.subr.bf16.mxu1 %v8944_v41 }
 0x272   :  { %5743 = vmatmul.mubr.bf16.gmra.mrb[40].mxu1 %v8920_v39  ;;  %5526 = vmatprep.mubr.bf16.mxu0 %v8927_v45 }
 0x273   :  { %5752 = vmatprep.mubr.bf16.mxu1 %v8927_v45  ;;  %5586 = vmatpush1.bf16.msra.mxu0 %v8939_v47 }
 0x274   :  { %v3021_v57 = vpop.f32.mrb[0].mxu0  ;;  %5812 = vmatpush1.bf16.msra.mxu1 %v8942_v48  ;;  %5587 = vmatprep.subr.bf16.mxu0 %v8950_v49 }
 0x275   :  { %v3412_v60 = vadd.f32 %v9547_v50, %v3021_v57  ;;  %v3247_v62 = vpop.f32.mrb[0].mxu1  ;;  %v3023_v63 = vpop.f32.mrb[1].mxu0  ;;  %5813 = vmatprep.subr.bf16.mxu1 %v8953_v51 }
 0x276   :  { %v3414_v3 = vadd.f32 %v9553_v53, %v3247_v62  ;;  %v3413_v4 = vadd.f32 %v9556_v54, %v3023_v63  ;;  %v3249_v6 = vpop.f32.mrb[1].mxu1  ;;  %v3025_v7 = vpop.f32.mrb[2].mxu0 }
 0x277   :  { %v3476_v10 = vmax.f32 %v3412_v60, 0.0  ;;  %v9574_v12 = vadd.f32 %v9559_v55, %v3249_v6  ;;  %v3416_v13 = vadd.f32 %v9547_v50, %v3025_v7  ;;  %v3251_v14 = vpop.f32.mrb[2].mxu1  ;;  %v3027_v15 = vpop.f32.mrb[3].mxu0  ;;  %5588 = vmatpush1.bf16.msra.mxu0 %v8948_v56  ;;  %v8938_v56 = vld [vmem:[#allocation9 + $0x60] ss:$12 sps:$4 sm:$0xff]  }
 0x278   :  { %v3478_v17 = vmax.f32 %v3414_v3, 0.0  ;;  %v3477_v18 = vmax.f32 %v3413_v4, 0.0  ;;  %v3418_v19 = vadd.f32 %v9553_v53, %v3251_v14  ;;  %v3417_v20 = vadd.f32 %v9556_v54, %v3027_v15  ;;  %v3253_v21 = vpop.f32.mrb[3].mxu1  ;;  %5814 = vmatpush1.bf16.msra.mxu1 %v8951_v58  ;;  %5589 = vmatprep.subr.bf16.mxu0 %v8959_v59 }
 0x279   :  { %v6312_v23 = vmul.f32 %v9563_v61, %v3476_v10  ;;  %v3479_v24 = vmax.f32 %v9574_v12, 0.0  ;;  %v3480_v25 = vmax.f32 %v3416_v13, 0.0  ;;  %v3419_v26 = vadd.f32 %v9559_v55, %v3253_v21  ;;  %5527 = vmatmul.mubr.bf16.gmra.mrb[44].mxu0 %v8929_v0  ;;  %5815 = vmatprep.subr.bf16.mxu1 %v8962_v1 }
 0x27a   :  { %v7635_v28 = vpack.c.bf16 %v3477_v18, %v3476_v10  ;;  %v6313_v30 = vmul.f32 %v9568_v5, %v3477_v18  ;;  %v3482_v31 = vmax.f32 %v3418_v19, 0.0  ;;  %5753 = vmatmul.mubr.bf16.gmra.mrb[44].mxu1 %v8929_v0  ;;  %5536 = vmatprep.mubr.bf16.mxu0 %v8936_v8  ;;  %v3481_v35 = vmax.f32 %v3417_v20, 0.0 }
 0x27b   :  { %v7636_v33 = vpack.c.bf16 %v3479_v24, %v3478_v17  ;;  %v6316_v34 = vmul.f32 %v9563_v61, %v3480_v25  ;;  %v3483_v36 = vmax.f32 %v3419_v26, 0.0  ;;  %5762 = vmatprep.mubr.bf16.mxu1 %v8936_v8  ;;  %5590 = vmatpush1.bf16.msra.mxu0 %v8957_v9  ;;  %v6314_v38 = vmul.f32 %v9571_v11, %v3478_v17  ;;  %v8945_v8 = vld [vmem:[#allocation9 + $0x7c] ss:$12 sps:$4 sm:$0xff]  }
 0x27c   :  { %6258 = vst [vmem:[#allocation18] sm:$0xff] %v7635_v28  ;;  %v3031_v39 = vpop.f32.mrb[4].mxu0  ;;  %v6376_v41 = vadd.f32 %v6313_v30, %v6312_v23  ;;  %5816 = vmatpush1.bf16.msra.mxu1 %v8960_v16  ;;  %5591 = vmatprep.subr.bf16.mxu0 %v8968_v22  ;;  %v6318_v45 = vmul.f32 %v9571_v11, %v3482_v31 }
 0x27d   :  { %6259 = vst [vmem:[#allocation18 + $0x8] sm:$0xff] %v7636_v33  ;;  %v7637_v47 = vpack.c.bf16 %v3481_v35, %v3480_v25  ;;  %v6317_v48 = vmul.f32 %v9568_v5, %v3481_v35  ;;  %v7638_v49 = vpack.c.bf16 %v3483_v36, %v3482_v31  ;;  %v3257_v51 = vpop.f32.mrb[4].mxu1  ;;  %v3033_v52 = vpop.f32.mrb[5].mxu0  ;;  %5817 = vmatprep.subr.bf16.mxu1 %v8971_v27 }
 0x27e   :  { %v3420_v57 = vadd.f32 %v9547_v50, %v3031_v39  ;;  %v3422_v58 = vadd.f32 %v9553_v53, %v3257_v51  ;;  %v3421_v59 = vadd.f32 %v9556_v54, %v3033_v52  ;;  %v3259_v60 = vpop.f32.mrb[5].mxu1  ;;  %v3035_v62 = vpop.f32.mrb[6].mxu0  ;;  %v6377_v63 = vadd.f32 %v6376_v41, %v6314_v38  ;;  %v8947_v39 = vld [vmem:[#allocation9 + $0x78] ss:$12 sps:$4 sm:$0xff]  }
 0x27f   :  { %6260 = vst [vmem:[#allocation18 + $0x10] sm:$0xff] %v7637_v47  ;;  %v6381_v0 = vadd.f32 %v6317_v48, %v6316_v34  ;;  %6261 = vst [vmem:[#allocation18 + $0x18] sm:$0xff] %v7638_v49  ;;  %v3423_v1 = vadd.f32 %v9559_v55, %v3259_v60  ;;  %v3424_v3 = vadd.f32 %v9547_v50, %v3035_v62  ;;  %v3261_v4 = vpop.f32.mrb[6].mxu1  ;;  %v3037_v6 = vpop.f32.mrb[7].mxu0  ;;  %5592 = vmatpush1.bf16.msra.mxu0 %v8966_v37  ;;  %v8954_v62 = vld [vmem:[#allocation9 + $0x94] ss:$12 sps:$4 sm:$0xff]  }
 0x280   :  { %v6315_v7 = vmul.f32 %v9584_v32, %v3479_v24  ;;  %v3484_v9 = vmax.f32 %v3420_v57, 0.0  ;;  %v3486_v10 = vmax.f32 %v3422_v58, 0.0  ;;  %v3485_v12 = vmax.f32 %v3421_v59, 0.0  ;;  %v3263_v14 = vpop.f32.mrb[7].mxu1  ;;  %5818 = vmatpush1.bf16.msra.mxu1 %v8969_v42 }
 0x281   :  { %v3426_v13 = vadd.f32 %v9553_v53, %v3261_v4  ;;  %v3487_v15 = vmax.f32 %v3423_v1, 0.0  ;;  %v3488_v16 = vmax.f32 %v3424_v3, 0.0  ;;  %v3425_v17 = vadd.f32 %v9556_v54, %v3037_v6  ;;  %5537 = vmatmul.mubr.bf16.gmra.mrb[48].mxu0 %v8938_v56 }
 0x282   :  { %v3427_v18 = vadd.f32 %v9559_v55, %v3263_v14  ;;  %v6319_v19 = vmul.f32 %v9584_v32, %v3483_v36  ;;  %v9601_v20 = vmul.f32 %v9563_v61, %v3484_v9  ;;  %v9604_v21 = vmul.f32 %v9571_v11, %v3486_v10  ;;  %5763 = vmatmul.mubr.bf16.gmra.mrb[48].mxu1 %v8938_v56 }
 0x283   :  { %v7639_v22 = vpack.c.bf16 %v3485_v12, %v3484_v9  ;;  %v7640_v23 = vpack.c.bf16 %v3487_v15, %v3486_v10  ;;  %v6324_v24 = vmul.f32 %v9563_v61, %v3488_v16  ;;  %v3490_v25 = vmax.f32 %v3426_v13, 0.0  ;;  %5546 = vmatprep.mubr.bf16.mxu0 %v8945_v8  ;;  %5772 = vmatprep.mubr.bf16.mxu1 %v8945_v8 }
 0x284   :  { %v3489_v26 = vmax.f32 %v3425_v17, 0.0  ;;  %v6321_v27 = vmul.f32 %v9568_v5, %v3485_v12  ;;  %v3491_v28 = vmax.f32 %v3427_v18, 0.0  ;;  %v6378_v30 = vadd.f32 %v6377_v63, %v6315_v7  ;;  %v3041_v31 = vpop.f32.mrb[8].mxu0 }
 0x285   :  { %6262 = vst [vmem:[#allocation18 + $0x20] sm:$0xff] %v7639_v22  ;;  %v6382_v33 = vadd.f32 %v6381_v0, %v6318_v45  ;;  %6263 = vst [vmem:[#allocation18 + $0x28] sm:$0xff] %v7640_v23  ;;  %v3428_v36 = vadd.f32 %v9547_v50, %v3041_v31  ;;  %v3267_v37 = vpop.f32.mrb[8].mxu1  ;;  %v3043_v38 = vpop.f32.mrb[9].mxu0  ;;  %v9611_v41 = vmul.f32 %v9584_v32, %v3487_v15 }
 0x286   :  { %v7641_v34 = vpack.c.bf16 %v3489_v26, %v3488_v16  ;;  %v6325_v35 = vmul.f32 %v9568_v5, %v3489_v26  ;;  %v9614_v42 = vmul.f32 %v9571_v11, %v3490_v25  ;;  %v7642_v47 = vpack.c.bf16 %v3491_v28, %v3490_v25  ;;  %6379 = vadd.xlane.f32.xlu0 %v6378_v30  ;;  %v3269_v49 = vpop.f32.mrb[9].mxu1  ;;  %v3045_v51 = vpop.f32.mrb[10].mxu0 }
 0x287   :  { %v3430_v48 = vadd.f32 %v9553_v53, %v3267_v37  ;;  %v3429_v45 = vadd.f32 %v9556_v54, %v3043_v38  ;;  %v3492_v56 = vmax.f32 %v3428_v36, 0.0  ;;  %v3431_v57 = vadd.f32 %v9559_v55, %v3269_v49  ;;  %v3271_v58 = vpop.f32.mrb[10].mxu1  ;;  %v3047_v60 = vpop.f32.mrb[11].mxu0 }
 0x288   :  { %6264 = vst [vmem:[#allocation18 + $0x30] sm:$0xff] %v7641_v34  ;;  %v6391_v52 = vadd.f32 %v6325_v35, %v6324_v24  ;;  %v6383_v59 = vadd.f32 %v6382_v33, %v6319_v19  ;;  %6265 = vst [vmem:[#allocation18 + $0x38] sm:$0xff] %v7642_v47  ;;  %v3434_v1 = vadd.f32 %v9553_v53, %v3271_v58  ;;  %v3273_v4 = vpop.f32.mrb[11].mxu1  ;;  %v8956_v35 = vld [vmem:[#allocation9 + $0x90] ss:$12 sps:$4 sm:$0xff]  }
 0x289   :  { %v3494_v63 = vmax.f32 %v3430_v48, 0.0  ;;  %v3493_v0 = vmax.f32 %v3429_v45, 0.0  ;;  %v3432_v3 = vadd.f32 %v9547_v50, %v3045_v51  ;;  %v6328_v6 = vmul.f32 %v9563_v61, %v3492_v56  ;;  %5547 = vmatmul.mubr.bf16.gmra.mrb[52].mxu0 %v8947_v39 }
 0x28a   :  { %v3495_v7 = vmax.f32 %v3431_v57, 0.0  ;;  %v3433_v8 = vadd.f32 %v9556_v54, %v3047_v60  ;;  %v3435_v9 = vadd.f32 %v9559_v55, %v3273_v4  ;;  %v6327_v10 = vmul.f32 %v9584_v32, %v3491_v28  ;;  %6384 = vadd.xlane.f32.xlu0 %v6383_v59  ;;  %5773 = vmatmul.mubr.bf16.gmra.mrb[52].mxu1 %v8947_v39  ;;  %v8963_v57 = vld [vmem:[#allocation9 + $0xac] ss:$12 sps:$4 sm:$0xff]  }
 0x28b   :  { %v7643_v12 = vpack.c.bf16 %v3493_v0, %v3492_v56  ;;  %v6329_v13 = vmul.f32 %v9568_v5, %v3493_v0  ;;  %v3498_v14 = vmax.f32 %v3434_v1, 0.0  ;;  %v9627_v15 = vmul.f32 %v9571_v11, %v3494_v63  ;;  %5556 = vmatprep.mubr.bf16.mxu0 %v8954_v62  ;;  %5782 = vmatprep.mubr.bf16.mxu1 %v8954_v62 }
 0x28c   :  { %v7644_v16 = vpack.c.bf16 %v3495_v7, %v3494_v63  ;;  %v3496_v17 = vmax.f32 %v3432_v3, 0.0  ;;  %v3497_v18 = vmax.f32 %v3433_v8, 0.0  ;;  %v9630_v22 = vmul.f32 %v9584_v32, %v3495_v7  ;;  %v3051_v25 = vpop.f32.mrb[12].mxu0 }
 0x28d   :  { %6266 = vst [vmem:[#allocation18 + $0x40] sm:$0xff] %v7643_v12  ;;  %v6396_v19 = vadd.f32 %v6329_v13, %v6328_v6  ;;  %v3499_v23 = vmax.f32 %v3435_v9, 0.0  ;;  %v6386_v24 = vadd.f32 %v6321_v27, %v9601_v20  ;;  %v3436_v31 = vadd.f32 %v9547_v50, %v3051_v25  ;;  %v3277_v33 = vpop.f32.mrb[12].mxu1  ;;  %v3053_v34 = vpop.f32.mrb[13].mxu0 }
 0x28e   :  { %6267 = vst [vmem:[#allocation18 + $0x48] sm:$0xff] %v7644_v16  ;;  %v6332_v26 = vmul.f32 %v9563_v61, %v3496_v17  ;;  %v7645_v28 = vpack.c.bf16 %v3497_v18, %v3496_v17  ;;  %v6333_v30 = vmul.f32 %v9568_v5, %v3497_v18  ;;  %v6334_v36 = vmul.f32 %v9571_v11, %v3498_v14  ;;  %v3279_v20 = vpop.f32.mrb[13].mxu1  ;;  %v3055_v27 = vpop.f32.mrb[14].mxu0 }
 0x28f   :  { %v7646_v37 = vpack.c.bf16 %v3499_v23, %v3498_v14  ;;  %v6387_v38 = vadd.f32 %v6386_v24, %v9604_v21  ;;  %v3438_v39 = vadd.f32 %v9553_v53, %v3277_v33  ;;  %v3500_v48 = vmax.f32 %v3436_v31, 0.0  ;;  %v3281_v51 = vpop.f32.mrb[14].mxu1  ;;  %v3057_v56 = vpop.f32.mrb[15].mxu0 }
 0x290   :  { %6268 = vst [vmem:[#allocation18 + $0x50] sm:$0xff] %v7645_v28  ;;  %v6401_v47 = vadd.f32 %v6333_v30, %v6332_v26  ;;  %v3437_v45 = vadd.f32 %v9556_v54, %v3053_v34  ;;  %v3439_v49 = vadd.f32 %v9559_v55, %v3279_v20  ;;  %v9643_v21 = vadd.f32 %v9553_v53, %v3281_v51  ;;  %v3283_v62 = vpop.f32.mrb[15].mxu1  ;;  %v8965_v26 = vld [vmem:[#allocation9 + $0xa8] ss:$12 sps:$4 sm:$0xff]  }
 0x291   :  { %6269 = vst [vmem:[#allocation18 + $0x58] sm:$0xff] %v7646_v37  ;;  %v6388_v58 = vadd.f32 %v6387_v38, %v9611_v41  ;;  %v3502_v59 = vmax.f32 %v3438_v39, 0.0  ;;  %v6392_v60 = vadd.f32 %v6391_v52, %v9614_v42  ;;  %v6336_v63 = vmul.f32 %v9563_v61, %v3500_v48  ;;  %5557 = vmatmul.mubr.bf16.gmra.mrb[56].mxu0 %v8956_v35 }
 0x292   :  { %v3501_v0 = vmax.f32 %v3437_v45, 0.0  ;;  %v3503_v1 = vmax.f32 %v3439_v49, 0.0  ;;  %v3440_v3 = vadd.f32 %v9547_v50, %v3055_v27  ;;  %v6335_v4 = vmul.f32 %v9584_v32, %v3499_v23  ;;  %5783 = vmatmul.mubr.bf16.gmra.mrb[56].mxu1 %v8956_v35  ;;  %5566 = vmatprep.mubr.bf16.mxu0 %v8963_v57 }
 0x293   :  { %6389 = vadd.xlane.f32.xlu1 %v6388_v58  ;;  %v6393_v6 = vadd.f32 %v6392_v60, %v6327_v10  ;;  %v3441_v41 = vadd.f32 %v9556_v54, %v3057_v56  ;;  %v6338_v7 = vmul.f32 %v9571_v11, %v3502_v59  ;;  %v3506_v9 = vmax.f32 %v9643_v21, 0.0  ;;  %5792 = vmatprep.mubr.bf16.mxu1 %v8963_v57 }
 0x294   :  { %v7647_v8 = vpack.c.bf16 %v3501_v0, %v3500_v48  ;;  %v6337_v42 = vmul.f32 %v9568_v5, %v3501_v0  ;;  %v7648_v52 = vpack.c.bf16 %v3503_v1, %v3502_v59  ;;  %v3504_v12 = vmax.f32 %v3440_v3, 0.0  ;;  %v3061_v16 = vpop.f32.mrb[16].mxu0 }
 0x295   :  { %v3505_v13 = vmax.f32 %v3441_v41, 0.0  ;;  %v3443_v14 = vadd.f32 %v9559_v55, %v3283_v62  ;;  %v6397_v17 = vadd.f32 %v6396_v19, %v9627_v15  ;;  %v3287_v18 = vpop.f32.mrb[16].mxu1  ;;  %v6402_v23 = vadd.f32 %v6401_v47, %v6334_v36  ;;  %v3063_v25 = vpop.f32.mrb[17].mxu0 }
 0x296   :  { %6270 = vst [vmem:[#allocation18 + $0x60] sm:$0xff] %v7647_v8  ;;  %v6406_v10 = vadd.f32 %v6337_v42, %v6336_v63  ;;  %6271 = vst [vmem:[#allocation18 + $0x68] sm:$0xff] %v7648_v52  ;;  %v3444_v24 = vadd.f32 %v9547_v50, %v3061_v16  ;;  %v6340_v28 = vmul.f32 %v9563_v61, %v3504_v12  ;;  %v3289_v34 = vpop.f32.mrb[17].mxu1  ;;  %v3065_v35 = vpop.f32.mrb[18].mxu0 }
 0x297   :  { %6394 = vadd.xlane.f32.xlu1 %v6393_v6  ;;  %v7649_v30 = vpack.c.bf16 %v3505_v13, %v3504_v12  ;;  %v6341_v31 = vmul.f32 %v9568_v5, %v3505_v13  ;;  %v3507_v33 = vmax.f32 %v3443_v14, 0.0  ;;  %v6398_v37 = vadd.f32 %v6397_v17, %v9630_v22  ;;  %v3291_v36 = vpop.f32.mrb[18].mxu1  ;;  %v3067_v39 = vpop.f32.mrb[19].mxu0  ;;  %v8972_v14 = vld [vmem:[#allocation9 + $0x8] ss:$12 sps:$4 sm:$0xff]  }
 0x298   :  { %v3446_v38 = vadd.f32 %v9553_v53, %v3287_v18  ;;  %v6403_v15 = vadd.f32 %v6402_v23, %v6335_v4  ;;  %v3508_v19 = vmax.f32 %v3444_v24, 0.0  ;;  %v6339_v20 = vmul.f32 %v9584_v32, %v3503_v1  ;;  %v3293_v45 = vpop.f32.mrb[19].mxu1 }
 0x299   :  { %6272 = vst [vmem:[#allocation18 + $0x70] sm:$0xff] %v7649_v30  ;;  %v6411_v27 = vadd.f32 %v6341_v31, %v6340_v28  ;;  %v7650_v47 = vpack.c.bf16 %v3507_v33, %v3506_v9  ;;  %v3445_v48 = vadd.f32 %v9556_v54, %v3063_v25  ;;  %6399 = vadd.xlane.f32.xlu0 %v6398_v37 }
 0x29a   :  { %v3510_v49 = vmax.f32 %v3446_v38, 0.0  ;;  %v6344_v51 = vmul.f32 %v9563_v61, %v3508_v19  ;;  %v3447_v22 = vadd.f32 %v9559_v55, %v3289_v34  ;;  %v3448_v56 = vadd.f32 %v9547_v50, %v3065_v35  ;;  %5567 = vmatmul.mubr.bf16.gmra.mrb[60].mxu0 %v8965_v26  ;;  %5793 = vmatmul.mubr.bf16.gmra.mrb[60].mxu1 %v8965_v26 }
 0x29b   :  { %6273 = vst [vmem:[#allocation18 + $0x78] sm:$0xff] %v7650_v47  ;;  %6404 = vadd.xlane.f32.xlu1 %v6403_v15  ;;  %v3509_v57 = vmax.f32 %v3445_v48, 0.0  ;;  %v3450_v58 = vadd.f32 %v9553_v53, %v3291_v36  ;;  %v3449_v59 = vadd.f32 %v9556_v54, %v3067_v39  ;;  %v3451_v21 = vadd.f32 %v9559_v55, %v3293_v45 }
 0x29c   :  { %v6342_v60 = vmul.f32 %v9571_v11, %v3506_v9  ;;  %v3511_v62 = vmax.f32 %v3447_v22, 0.0  ;;  %v3512_v63 = vmax.f32 %v3448_v56, 0.0  ;;  %v6407_v0 = vadd.f32 %v6406_v10, %v6338_v7  ;;  %5609 = vmatprep.mubr.bf16.mxu0 %v9227_v2  ;;  %5835 = vmatprep.mubr.bf16.mxu1 %v9227_v2  ;;  %v3071_v41 = vpop.f32.mrb[20].mxu0 }
 0x29d   :  { %v7651_v1 = vpack.c.bf16 %v3509_v57, %v3508_v19  ;;  %v6345_v3 = vmul.f32 %v9568_v5, %v3509_v57  ;;  %v3514_v4 = vmax.f32 %v3450_v58, 0.0  ;;  %v3513_v6 = vmax.f32 %v3449_v59, 0.0  ;;  %v3297_v9 = vpop.f32.mrb[20].mxu1  ;;  %v3073_v13 = vpop.f32.mrb[21].mxu0 }
 0x29e   :  { %v6343_v8 = vmul.f32 %v9584_v32, %v3507_v33  ;;  %v7652_v42 = vpack.c.bf16 %v3511_v62, %v3510_v49  ;;  %v6348_v52 = vmul.f32 %v9563_v61, %v3512_v63  ;;  %v3515_v12 = vmax.f32 %v3451_v21, 0.0  ;;  %v3299_v18 = vpop.f32.mrb[21].mxu1  ;;  %v3075_v23 = vpop.f32.mrb[22].mxu0 }
 0x29f   :  { %v6346_v7 = vmul.f32 %v9571_v11, %v3510_v49  ;;  %6274 = vst [vmem:[#allocation18 + $0x80] sm:$0xff] %v7651_v1  ;;  %v6416_v16 = vadd.f32 %v6345_v3, %v6344_v51  ;;  %v7653_v10 = vpack.c.bf16 %v3513_v6, %v3512_v63  ;;  %v6349_v17 = vmul.f32 %v9568_v5, %v3513_v6  ;;  %v3301_v30 = vpop.f32.mrb[22].mxu1  ;;  %v3077_v31 = vpop.f32.mrb[23].mxu0 }
 0x2a0   :  { %6275 = vst [vmem:[#allocation18 + $0x88] sm:$0xff] %v7652_v42  ;;  %v9677_v24 = vmul.f32 %v9584_v32, %v3511_v62  ;;  %v7654_v25 = vpack.c.bf16 %v3515_v12, %v3514_v4  ;;  %v6408_v26 = vadd.f32 %v6407_v0, %v6339_v20  ;;  %v3454_v28 = vadd.f32 %v9553_v53, %v3297_v9  ;;  %v3303_v38 = vpop.f32.mrb[23].mxu1 }
 0x2a1   :  { %6276 = vst [vmem:[#allocation18 + $0x90] sm:$0xff] %v7653_v10  ;;  %v6421_v33 = vadd.f32 %v6349_v17, %v6348_v52  ;;  %v6412_v34 = vadd.f32 %v6411_v27, %v6342_v60  ;;  %v3452_v35 = vadd.f32 %v9547_v50, %v3071_v41  ;;  %v3453_v37 = vadd.f32 %v9556_v54, %v3073_v13 }
 0x2a2   :  { %6277 = vst [vmem:[#allocation18 + $0x98] sm:$0xff] %v7654_v25  ;;  %6409 = vadd.xlane.f32.xlu0 %v6408_v26  ;;  %v3518_v15 = vmax.f32 %v3454_v28, 0.0  ;;  %v3455_v19 = vadd.f32 %v9559_v55, %v3299_v18  ;;  %v3456_v36 = vadd.f32 %v9547_v50, %v3075_v23  ;;  %v3458_v39 = vadd.f32 %v9553_v53, %v3301_v30 }
 0x2a3   :  { %5610 = vmatmul.mubr.bf16.vlgmr.msra.gmra.mrb[32].mxu0 %v8972_v14  ;;  %v6413_v20 = vadd.f32 %v6412_v34, %v6343_v8  ;;  %v3516_v47 = vmax.f32 %v3452_v35, 0.0  ;;  %v3517_v48 = vmax.f32 %v3453_v37, 0.0  ;;  %v3457_v27 = vadd.f32 %v9556_v54, %v3077_v31  ;;  %5836 = vmatmul.mubr.bf16.vlgmr.msra.gmra.mrb[32].mxu1 %v8972_v14 }
 0x2a4   :  { %5619 = vmatprep.mubr.bf16.mxu0 %v9227_v2  ;;  %v6350_v45 = vmul.f32 %v9571_v11, %v3514_v4  ;;  %v6351_v49 = vmul.f32 %v9584_v32, %v3515_v12  ;;  %v3519_v51 = vmax.f32 %v3455_v19, 0.0  ;;  %v3520_v22 = vmax.f32 %v3456_v36, 0.0  ;;  %5845 = vmatprep.mubr.bf16.mxu1 %v9227_v2  ;;  %v3081_v21 = vpop.f32.mrb[24].mxu0  ;;  %v8973_v4 = vld [vmem:[#allocation9 + $0x20] ss:$12 sps:$4 sm:$0xff]  }
 0x2a5   :  { %6414 = vadd.xlane.f32.xlu1 %v6413_v20  ;;  %v6352_v56 = vmul.f32 %v9563_v61, %v3516_v47  ;;  %v7655_v57 = vpack.c.bf16 %v3517_v48, %v3516_v47  ;;  %v6353_v58 = vmul.f32 %v9568_v5, %v3517_v48  ;;  %v3521_v59 = vmax.f32 %v3457_v27, 0.0  ;;  %v3307_v1 = vpop.f32.mrb[24].mxu1  ;;  %v3083_v3 = vpop.f32.mrb[25].mxu0 }
 0x2a6   :  { %v6354_v60 = vmul.f32 %v9571_v11, %v3518_v15  ;;  %v7656_v62 = vpack.c.bf16 %v3519_v51, %v3518_v15  ;;  %v6356_v63 = vmul.f32 %v9563_v61, %v3520_v22  ;;  %v3522_v0 = vmax.f32 %v3458_v39, 0.0  ;;  %v3309_v52 = vpop.f32.mrb[25].mxu1  ;;  %v3085_v12 = vpop.f32.mrb[26].mxu0 }
 0x2a7   :  { %6278 = vst [vmem:[#allocation18 + $0xa0] sm:$0xff] %v7655_v57  ;;  %v6426_v6 = vadd.f32 %v6353_v58, %v6352_v56  ;;  %v7657_v41 = vpack.c.bf16 %v3521_v59, %v3520_v22  ;;  %v6357_v8 = vmul.f32 %v9568_v5, %v3521_v59  ;;  %v3459_v42 = vadd.f32 %v9559_v55, %v3303_v38  ;;  %v3311_v17 = vpop.f32.mrb[26].mxu1  ;;  %v3087_v18 = vpop.f32.mrb[27].mxu0  ;;  %v8974_v57 = vld [vmem:[#allocation9 + $0x38] ss:$12 sps:$4 sm:$0xff]  }
 0x2a8   :  { %6279 = vst [vmem:[#allocation18 + $0xa8] sm:$0xff] %v7656_v62  ;;  %v6417_v9 = vadd.f32 %v6416_v16, %v6346_v7  ;;  %v3462_v13 = vadd.f32 %v9553_v53, %v3307_v1  ;;  %v6422_v14 = vadd.f32 %v6421_v33, %v6350_v45  ;;  %v3460_v10 = vadd.f32 %v9547_v50, %v3081_v21  ;;  %v3313_v30 = vpop.f32.mrb[27].mxu1 }
 0x2a9   :  { %6280 = vst [vmem:[#allocation18 + $0xb0] sm:$0xff] %v7657_v41  ;;  %v6431_v23 = vadd.f32 %v6357_v8, %v6356_v63  ;;  %v3523_v25 = vmax.f32 %v3459_v42, 0.0  ;;  %v3461_v26 = vadd.f32 %v9556_v54, %v3083_v3  ;;  %v3463_v28 = vadd.f32 %v9559_v55, %v3309_v52 }
 0x2aa   :  { %v6418_v31 = vadd.f32 %v6417_v9, %v9677_v24  ;;  %v3526_v34 = vmax.f32 %v3462_v13, 0.0  ;;  %v6423_v35 = vadd.f32 %v6422_v14, %v6351_v49  ;;  %v3524_v7 = vmax.f32 %v3460_v10, 0.0 }
 0x2ab   :  { %5620 = vmatmul.mubr.bf16.gmra.mrb[36].mxu0 %v8973_v4  ;;  %v6355_v16 = vmul.f32 %v9584_v32, %v3519_v51  ;;  %v7658_v33 = vpack.c.bf16 %v3523_v25, %v3522_v0  ;;  %v3525_v37 = vmax.f32 %v3461_v26, 0.0  ;;  %v3527_v38 = vmax.f32 %v3463_v28, 0.0  ;;  %5846 = vmatmul.mubr.bf16.gmra.mrb[36].mxu1 %v8973_v4 }
 0x2ac   :  { %5629 = vmatprep.mubr.bf16.mxu0 %v9227_v2  ;;  %v6358_v15 = vmul.f32 %v9571_v11, %v3522_v0  ;;  %6419 = vadd.xlane.f32.xlu0 %v6418_v31  ;;  %v6360_v19 = vmul.f32 %v9563_v61, %v3524_v7  ;;  %v3464_v24 = vadd.f32 %v9547_v50, %v3085_v12  ;;  %v3091_v48 = vpop.f32.mrb[28].mxu0 }
 0x2ad   :  { %6424 = vadd.xlane.f32.xlu1 %v6423_v35  ;;  %6281 = vst [vmem:[#allocation18 + $0xb8] sm:$0xff] %v7658_v33  ;;  %v6359_v36 = vmul.f32 %v9584_v32, %v3523_v25  ;;  %v7659_v39 = vpack.c.bf16 %v3525_v37, %v3524_v7  ;;  %v6361_v20 = vmul.f32 %v9568_v5, %v3525_v37  ;;  %v3317_v22 = vpop.f32.mrb[28].mxu1  ;;  %v3093_v56 = vpop.f32.mrb[29].mxu0 }
 0x2ae   :  { %v7660_v47 = vpack.c.bf16 %v3527_v38, %v3526_v34  ;;  %5855 = vmatprep.mubr.bf16.mxu1 %v9227_v2  ;;  %v3528_v27 = vmax.f32 %v3464_v24, 0.0  ;;  %v3466_v45 = vadd.f32 %v9553_v53, %v3311_v17  ;;  %v3465_v49 = vadd.f32 %v9556_v54, %v3087_v18  ;;  %v3319_v63 = vpop.f32.mrb[29].mxu1  ;;  %v3095_v0 = vpop.f32.mrb[30].mxu0 }
 0x2af   :  { %v9712_v51 = vadd.f32 %v9559_v55, %v3313_v30  ;;  %6282 = vst [vmem:[#allocation18 + $0xc0] sm:$0xff] %v7659_v39  ;;  %v6436_v58 = vadd.f32 %v6361_v20, %v6360_v19  ;;  %v6427_v59 = vadd.f32 %v6426_v6, %v6354_v60  ;;  %v3470_v21 = vadd.f32 %v9553_v53, %v3317_v22  ;;  %v3321_v8 = vpop.f32.mrb[30].mxu1  ;;  %v3097_v42 = vpop.f32.mrb[31].mxu0  ;;  %v8975_v19 = vld [vmem:[#allocation9 + $0x50] ss:$12 sps:$4 sm:$0xff]  }
 0x2b0   :  { %6283 = vst [vmem:[#allocation18 + $0xc8] sm:$0xff] %v7660_v47  ;;  %v6432_v62 = vadd.f32 %v6431_v23, %v6358_v15  ;;  %v6364_v1 = vmul.f32 %v9563_v61, %v3528_v27  ;;  %v3530_v3 = vmax.f32 %v3466_v45, 0.0  ;;  %v3529_v4 = vmax.f32 %v3465_v49, 0.0  ;;  %v3323_v13 = vpop.f32.mrb[31].mxu1 }
 0x2b1   :  { %v3531_v41 = vmax.f32 %v9712_v51, 0.0  ;;  %v6428_v52 = vadd.f32 %v6427_v59, %v6355_v16  ;;  %v3468_v9 = vadd.f32 %v9547_v50, %v3091_v48  ;;  %v6362_v60 = vmul.f32 %v9571_v11, %v3526_v34 }
 0x2b2   :  { %v6433_v12 = vadd.f32 %v6432_v62, %v6359_v36  ;;  %v7661_v6 = vpack.c.bf16 %v3529_v4, %v3528_v27  ;;  %v6365_v14 = vmul.f32 %v9568_v5, %v3529_v4  ;;  %v6363_v17 = vmul.f32 %v9584_v32, %v3527_v38 }
 0x2b3   :  { %v7662_v10 = vpack.c.bf16 %v3531_v41, %v3530_v3  ;;  %5630 = vmatmul.mubr.bf16.gmra.mrb[40].mxu0 %v8974_v57  ;;  %6429 = vadd.xlane.f32.xlu0 %v6428_v52  ;;  %v3534_v18 = vmax.f32 %v3470_v21, 0.0  ;;  %v3532_v23 = vmax.f32 %v3468_v9, 0.0  ;;  %v3469_v25 = vadd.f32 %v9556_v54, %v3093_v56  ;;  %v5916_v52 = vld [vmem:[%s10083_s11] sm:$0xf]  ;;  %s9228_s11 = smov [#allocation18]  }
 0x2b4   :  { %6434 = vadd.xlane.f32.xlu1 %v6433_v12  ;;  %6284 = vst [vmem:[#allocation18 + $0xd0] sm:$0xff] %v7661_v6  ;;  %v6441_v26 = vadd.f32 %v6365_v14, %v6364_v1  ;;  %v3471_v28 = vadd.f32 %v9559_v55, %v3319_v63  ;;  %v3472_v30 = vadd.f32 %v9547_v50, %v3095_v0  ;;  %v8976_v63 = vld [vmem:[#allocation9 + $0x68] ss:$12 sps:$4 sm:$0xff]   ;;  %v8979_v1 = vld [vmem:[#allocation9 + $0xb0] ss:$12 sps:$4 sm:$0xff]  }
 0x2b5   :  { %6285 = vst [vmem:[#allocation18 + $0xd8] sm:$0xff] %v7662_v10  ;;  %v3474_v31 = vadd.f32 %v9553_v53, %v3321_v8  ;;  %5856 = vmatmul.mubr.bf16.gmra.mrb[40].mxu1 %v8974_v57  ;;  %v6368_v34 = vmul.f32 %v9563_v61, %v3532_v23  ;;  %v3533_v35 = vmax.f32 %v3469_v25, 0.0  ;;  %v3473_v7 = vadd.f32 %v9556_v54, %v3097_v42 }
 0x2b6   :  { %v3475_v16 = vadd.f32 %v9559_v55, %v3323_v13  ;;  %5639 = vmatprep.mubr.bf16.mxu0 %v9227_v2  ;;  %5865 = vmatprep.mubr.bf16.mxu1 %v9227_v2  ;;  %v3535_v33 = vmax.f32 %v3471_v28, 0.0  ;;  %v3536_v37 = vmax.f32 %v3472_v30, 0.0  ;;  %v6437_v15 = vadd.f32 %v6436_v58, %v6362_v60 }
 0x2b7   :  { %v3538_v38 = vmax.f32 %v3474_v31, 0.0  ;;  %v7663_v50 = vpack.c.bf16 %v3533_v35, %v3532_v23  ;;  %v6369_v53 = vmul.f32 %v9568_v5, %v3533_v35  ;;  %v3537_v24 = vmax.f32 %v3473_v7, 0.0 }
 0x2b8   :  { %v3539_v36 = vmax.f32 %v3475_v16, 0.0  ;;  %v6366_v39 = vmul.f32 %v9571_v11, %v3530_v3  ;;  %v6370_v54 = vmul.f32 %v9571_v11, %v3534_v18  ;;  %v7664_v20 = vpack.c.bf16 %v3535_v33, %v3534_v18  ;;  %v9747_v3 = vld [vmem:[#allocation2] ss:$0 sm:$0xff] }
 0x2b9   :  { %v6372_v55 = vmul.f32 %v9563_v61, %v3536_v37  ;;  %6286 = vst [vmem:[#allocation18 + $0xe0] sm:$0xff] %v7663_v50  ;;  %v6446_v47 = vadd.f32 %v6369_v53, %v6368_v34  ;;  %v7665_v48 = vpack.c.bf16 %v3537_v24, %v3536_v37  ;;  %v6373_v27 = vmul.f32 %v9568_v5, %v3537_v24 }
 0x2ba   :  { %v7666_v45 = vpack.c.bf16 %v3539_v36, %v3538_v38  ;;  %v6367_v49 = vmul.f32 %v9584_v32, %v3531_v41  ;;  %6287 = vst [vmem:[#allocation18 + $0xe8] sm:$0xff] %v7664_v20  ;;  %v6438_v51 = vadd.f32 %v6437_v15, %v6363_v17  ;;  %v6442_v22 = vadd.f32 %v6441_v26, %v6366_v39 }
 0x2bb   :  { %5640 = vmatmul.mubr.bf16.gmra.mrb[44].mxu0 %v8975_v19  ;;  %v6371_v56 = vmul.f32 %v9584_v32, %v3535_v33  ;;  %v6374_v57 = vmul.f32 %v9571_v11, %v3538_v38  ;;  %6288 = vst [vmem:[#allocation18 + $0xf0] sm:$0xff] %v7665_v48  ;;  %v6451_v58 = vadd.f32 %v6373_v27, %v6372_v55  ;;  %v8977_v11 = vld [vmem:[#allocation9 + $0x80] ss:$12 sps:$4 sm:$0xff]  }
 0x2bc   :  { %6289 = vst [vmem:[#allocation18 + $0xf8] sm:$0xff] %v7666_v45  ;;  %v6447_v61 = vadd.f32 %v6446_v47, %v6370_v54  ;;  %5649 = vmatprep.mubr.bf16.mxu0 %v9227_v2  ;;  %6439 = vadd.xlane.f32.xlu0 %v6438_v51  ;;  %v6443_v59 = vadd.f32 %v6442_v22, %v6367_v49 }
 0x2bd   :  { %5866 = vmatmul.mubr.bf16.gmra.mrb[44].mxu1 %v8975_v19  ;;  %v6375_v5 = vmul.f32 %v9584_v32, %v3539_v36  ;;  %v6452_v62 = vadd.f32 %v6451_v58, %v6374_v57  ;;  %v8978_v32 = vld [vmem:[#allocation9 + $0x98] ss:$12 sps:$4 sm:$0xff]   ;;  %v9754_v12 = vrot.slane %v5916_v52, %v9535_v40  ;;  %v9760_v9 = vrot.slane %v5916_v52, %v9540_v43 }
 0x2be   :  { %v6448_v21 = vadd.f32 %v6447_v61, %v6371_v56  ;;  %5875 = vmatprep.mubr.bf16.mxu1 %v9227_v2  ;;  %6444 = vadd.xlane.f32.xlu1 %v6443_v59  ;;  %v9763_v13 = vrot.slane %v5916_v52, %v9542_v44  ;;  %v9766_v60 = vrot.slane %v5916_v52, %v9544_v46 }
 0x2bf   :  { %v6453_v0 = vadd.f32 %v6452_v62, %v6375_v5 }
 0x2c0   :  { %6449 = vadd.xlane.f32.xlu0 %v6448_v21 }
 0x2c2   :  { %6454 = vadd.xlane.f32.xlu1 %v6453_v0 }
 0x2c3   :  { %5650 = vmatmul.mubr.bf16.gmra.mrb[48].mxu0 %v8976_v63 }
 0x2c4   :  { %5659 = vmatprep.mubr.bf16.mxu0 %v9227_v2 }
 0x2c5   :  { %5876 = vmatmul.mubr.bf16.gmra.mrb[48].mxu1 %v8976_v63 }
 0x2c6   :  { %5885 = vmatprep.mubr.bf16.mxu1 %v9227_v2 }
 0x2cb   :  { %5660 = vmatmul.mubr.bf16.gmra.mrb[52].mxu0 %v8977_v11 }
 0x2cc   :  { %5669 = vmatprep.mubr.bf16.mxu0 %v9227_v2 }
 0x2cd   :  { %5886 = vmatmul.mubr.bf16.gmra.mrb[52].mxu1 %v8977_v11 }
 0x2ce   :  { %5895 = vmatprep.mubr.bf16.mxu1 %v9227_v2 }
 0x2d3   :  { %5670 = vmatmul.mubr.bf16.gmra.mrb[56].mxu0 %v8978_v32 }
 0x2d4   :  { %5679 = vmatprep.mubr.bf16.mxu0 %v9227_v2 }
 0x2d5   :  { %5896 = vmatmul.mubr.bf16.gmra.mrb[56].mxu1 %v8978_v32 }
 0x2d6   :  { %5905 = vmatprep.mubr.bf16.mxu1 %v9227_v2  ;;  %v6479_v2 = vld [vmem:[%s10086_s14] sm:$0xf]  ;;  %s6981_s14 = sshll.u32 %s9228_s11, 4  ;;  %s6982_s14 = int_to_ptr.vmem [resolvable:$true] %s6981_s14 }
 0x2d7   :  { %v9770_v10 = vrot.slane %v6479_v2, %v9535_v40  ;;  %v9775_v26 = vrot.slane %v6479_v2, %v9542_v44  ;;  %v9778_v34 = vrot.slane %v6479_v2, %v9540_v43  ;;  %v9783_v38 = vrot.slane %v6479_v2, %v9544_v46  ;;  %s9157_s5 = scalar_lea.vmem %s6982_s14, 4096  ;;  %p9162_p9 = scmp.lt.s32.totalorder %s6982_s14, %s6982_s14 }
 0x2d8   :  { %p9158_p8 = scmp.ne.s32.totalorder %s6982_s14, %s9157_s5  ;;  %p9163_p10 = scmp.lt.s32.totalorder %s9157_s5, %s9157_s5 }
 0x2da   :  { %p9164_p11 = por %p9163_p10, %p9162_p9 }
 0x2db   :  { %5680 = vmatmul.mubr.bf16.gmra.mrb[60].mxu0 %v8979_v1 }
 0x2dc   :  { %p9165_p12 = pnand %p9164_p11, %p9158_p8 }
 0x2dd   :  { %5906 = vmatmul.mubr.bf16.gmra.mrb[60].mxu1 %v8979_v1 }
 0x313   :  { %v6380_v4 = vpop.xlane.xlu0 %6379 }
 0x314   :  { %v6463_v41 = vadd.f32 %v9747_v3, %v6380_v4 }
 0x316   :  { %v6684_v8 = vmul.f32 0.2, %v6463_v41  ;;  %vm6668_vm1 = vcmp.gt.f32.partialorder %v6463_v41, 0.0 }
 0x318   :  { %v6700_v42 = vsel %vm6668_vm1, %v6463_v41, %v6684_v8 }
 0x319   :  { %6866 = vperm.xlu1 %8132, %v6700_v42  }
 0x376   :  { %v5611_v6 = vpop.f32.mrb[32].mxu0  ;;  %v5837_v17 = vpop.f32.mrb[32].mxu1 }
 0x377   :  { %v5938_v14 = vadd.f32 %v9754_v12, %v5611_v6  ;;  %v5613_v18 = vpop.f32.mrb[33].mxu0  ;;  %v5940_v23 = vadd.f32 %v9760_v9, %v5837_v17  ;;  %v5839_v28 = vpop.f32.mrb[33].mxu1 }
 0x378   :  { %v5939_v25 = vadd.f32 %v9763_v13, %v5613_v18  ;;  %v5615_v30 = vpop.f32.mrb[34].mxu0  ;;  %v5941_v35 = vadd.f32 %v9766_v60, %v5839_v28  ;;  %v5841_v7 = vpop.f32.mrb[34].mxu1 }
 0x379   :  { %v6002_v31 = vmax.f32 %v5938_v14, 0.0  ;;  %v5942_v40 = vadd.f32 %v9754_v12, %v5615_v30  ;;  %v5617_v16 = vpop.f32.mrb[35].mxu0  ;;  %v6004_v33 = vmax.f32 %v5940_v23, 0.0  ;;  %v5843_v15 = vpop.f32.mrb[35].mxu1  ;;  %v5944_v43 = vadd.f32 %v9760_v9, %v5841_v7 }
 0x37a   :  { %v6003_v37 = vmax.f32 %v5939_v25, 0.0  ;;  %v5943_v44 = vadd.f32 %v9763_v13, %v5617_v16  ;;  %v6005_v50 = vmax.f32 %v5941_v35, 0.0  ;;  %v5945_v54 = vadd.f32 %v9766_v60, %v5843_v15 }
 0x37b   :  { %v6501_v19 = vmul.f32 %v9770_v10, %v6002_v31  ;;  %v6006_v53 = vmax.f32 %v5942_v40, 0.0  ;;  %v6503_v20 = vmul.f32 %v9778_v34, %v6004_v33  ;;  %v6008_v27 = vmax.f32 %v5944_v43, 0.0 }
 0x37c   :  { %v6502_v24 = vmul.f32 %v9775_v26, %v6003_v37  ;;  %v6007_v36 = vmax.f32 %v5943_v44, 0.0  ;;  %v6504_v48 = vmul.f32 %v9783_v38, %v6005_v50  ;;  %v6009_v5 = vmax.f32 %v5945_v54, 0.0 }
 0x37d   :  { %v6505_v39 = vmul.f32 %v9770_v10, %v6006_v53  ;;  %v6507_v14 = vmul.f32 %v9778_v34, %v6008_v27 }
 0x37e   :  { %v6565_v46 = vadd.f32 %v6502_v24, %v6501_v19  ;;  %v6506_v55 = vmul.f32 %v9775_v26, %v6007_v36  ;;  %v5621_v47 = vpop.f32.mrb[36].mxu0  ;;  %v5847_v49 = vpop.f32.mrb[36].mxu1  ;;  %v6508_v23 = vmul.f32 %v9783_v38, %v6009_v5 }
 0x37f   :  { %v5946_v45 = vadd.f32 %v9754_v12, %v5621_v47  ;;  %v5623_v51 = vpop.f32.mrb[37].mxu0  ;;  %v5948_v56 = vadd.f32 %v9760_v9, %v5847_v49  ;;  %v5849_v58 = vpop.f32.mrb[37].mxu1 }
 0x380   :  { %v6570_v22 = vadd.f32 %v6506_v55, %v6505_v39  ;;  %v5947_v57 = vadd.f32 %v9763_v13, %v5623_v51  ;;  %v5625_v61 = vpop.f32.mrb[38].mxu0  ;;  %v6566_v59 = vadd.f32 %v6565_v46, %v6503_v20  ;;  %v5949_v62 = vadd.f32 %v9766_v60, %v5849_v58  ;;  %v5851_v0 = vpop.f32.mrb[38].mxu1 }
 0x381   :  { %v6010_v21 = vmax.f32 %v5946_v45, 0.0  ;;  %v5950_v63 = vadd.f32 %v9754_v12, %v5625_v61  ;;  %v5627_v11 = vpop.f32.mrb[39].mxu0  ;;  %v6012_v32 = vmax.f32 %v5948_v56, 0.0  ;;  %v5952_v4 = vadd.f32 %v9760_v9, %v5851_v0  ;;  %v5853_v8 = vpop.f32.mrb[39].mxu1 }
 0x382   :  { %v6011_v1 = vmax.f32 %v5947_v57, 0.0  ;;  %v5951_v41 = vadd.f32 %v9763_v13, %v5627_v11  ;;  %v6013_v52 = vmax.f32 %v5949_v62, 0.0  ;;  %v5953_v6 = vadd.f32 %v9766_v60, %v5853_v8 }
 0x383   :  { %v6509_v42 = vmul.f32 %v9770_v10, %v6010_v21  ;;  %v6014_v2 = vmax.f32 %v5950_v63, 0.0  ;;  %v6016_v28 = vmax.f32 %v5952_v4, 0.0  ;;  %v6567_v30 = vadd.f32 %v6566_v59, %v6504_v48 }
 0x384   :  { %v6510_v17 = vmul.f32 %v9775_v26, %v6011_v1  ;;  %v6015_v18 = vmax.f32 %v5951_v41, 0.0  ;;  %v6511_v31 = vmul.f32 %v9778_v34, %v6012_v32  ;;  %v6571_v16 = vadd.f32 %v6570_v22, %v6507_v14 }
 0x385   :  { %v6513_v25 = vmul.f32 %v9770_v10, %v6014_v2  ;;  %v6512_v33 = vmul.f32 %v9783_v38, %v6013_v52  ;;  %v6017_v37 = vmax.f32 %v5953_v6, 0.0  ;;  %6568 = vadd.xlane.f32.xlu0 %v6567_v30  ;;  %v6515_v39 = vmul.f32 %v9778_v34, %v6016_v28 }
 0x386   :  { %v6575_v35 = vadd.f32 %v6510_v17, %v6509_v42  ;;  %v6514_v40 = vmul.f32 %v9775_v26, %v6015_v18  ;;  %v5631_v7 = vpop.f32.mrb[40].mxu0  ;;  %v6572_v53 = vadd.f32 %v6571_v16, %v6508_v23 }
 0x387   :  { %v5954_v44 = vadd.f32 %v9754_v12, %v5631_v7  ;;  %v5633_v15 = vpop.f32.mrb[41].mxu0  ;;  %v6516_v63 = vmul.f32 %v9783_v38, %v6017_v37 }
 0x388   :  { %v6580_v19 = vadd.f32 %v6514_v40, %v6513_v25  ;;  %v5857_v50 = vpop.f32.mrb[40].mxu1  ;;  %v5955_v43 = vadd.f32 %v9763_v13, %v5633_v15  ;;  %v5635_v24 = vpop.f32.mrb[42].mxu0  ;;  %v6576_v36 = vadd.f32 %v6575_v35, %v6511_v31  ;;  %6573 = vadd.xlane.f32.xlu1 %v6572_v53 }
 0x389   :  { %v6018_v54 = vmax.f32 %v5954_v44, 0.0  ;;  %v5956_v20 = vadd.f32 %v9760_v9, %v5857_v50  ;;  %v5859_v46 = vpop.f32.mrb[41].mxu1  ;;  %v5958_v55 = vadd.f32 %v9754_v12, %v5635_v24  ;;  %v5637_v47 = vpop.f32.mrb[43].mxu0 }
 0x38a   :  { %v6019_v48 = vmax.f32 %v5955_v43, 0.0  ;;  %v5957_v27 = vadd.f32 %v9766_v60, %v5859_v46  ;;  %v5861_v45 = vpop.f32.mrb[42].mxu1  ;;  %v5959_v49 = vadd.f32 %v9763_v13, %v5637_v47  ;;  %v6577_v51 = vadd.f32 %v6576_v36, %v6512_v33 }
 0x38b   :  { %v6517_v22 = vmul.f32 %v9770_v10, %v6018_v54  ;;  %v6020_v56 = vmax.f32 %v5956_v20, 0.0  ;;  %v6022_v57 = vmax.f32 %v5958_v55, 0.0  ;;  %v5960_v58 = vadd.f32 %v9760_v9, %v5861_v45  ;;  %v5863_v61 = vpop.f32.mrb[43].mxu1 }
 0x38c   :  { %v6518_v59 = vmul.f32 %v9775_v26, %v6019_v48  ;;  %v6021_v5 = vmax.f32 %v5957_v27, 0.0  ;;  %v6023_v21 = vmax.f32 %v5959_v49, 0.0  ;;  %v5961_v62 = vadd.f32 %v9766_v60, %v5863_v61  ;;  %6578 = vadd.xlane.f32.xlu0 %v6577_v51 }
 0x38d   :  { %v6521_v0 = vmul.f32 %v9770_v10, %v6022_v57  ;;  %v6024_v11 = vmax.f32 %v5960_v58, 0.0  ;;  %v6581_v32 = vadd.f32 %v6580_v19, %v6515_v39  ;;  %v6519_v1 = vmul.f32 %v9778_v34, %v6020_v56 }
 0x38e   :  { %v6585_v4 = vadd.f32 %v6518_v59, %v6517_v22  ;;  %v6522_v41 = vmul.f32 %v9775_v26, %v6023_v21  ;;  %v5641_v8 = vpop.f32.mrb[44].mxu0  ;;  %v6520_v42 = vmul.f32 %v9783_v38, %v6021_v5  ;;  %v6025_v17 = vmax.f32 %v5961_v62, 0.0 }
 0x38f   :  { %v5962_v52 = vadd.f32 %v9754_v12, %v5641_v8  ;;  %v6582_v2 = vadd.f32 %v6581_v32, %v6516_v63  ;;  %v5643_v6 = vpop.f32.mrb[45].mxu0  ;;  %v6523_v30 = vmul.f32 %v9778_v34, %v6024_v11 }
 0x390   :  { %v6590_v14 = vadd.f32 %v6522_v41, %v6521_v0  ;;  %v5867_v18 = vpop.f32.mrb[44].mxu1  ;;  %v5963_v23 = vadd.f32 %v9763_v13, %v5643_v6  ;;  %v5645_v25 = vpop.f32.mrb[46].mxu0  ;;  %v6586_v28 = vadd.f32 %v6585_v4, %v6519_v1  ;;  %v6524_v55 = vmul.f32 %v9783_v38, %v6025_v17 }
 0x391   :  { %v6026_v31 = vmax.f32 %v5962_v52, 0.0  ;;  %v5964_v35 = vadd.f32 %v9760_v9, %v5867_v18  ;;  %6583 = vadd.xlane.f32.xlu1 %v6582_v2  ;;  %v5869_v40 = vpop.f32.mrb[45].mxu1  ;;  %v5966_v7 = vadd.f32 %v9754_v12, %v5645_v25  ;;  %v5647_v16 = vpop.f32.mrb[47].mxu0 }
 0x392   :  { %v6027_v33 = vmax.f32 %v5963_v23, 0.0  ;;  %v5965_v37 = vadd.f32 %v9766_v60, %v5869_v40  ;;  %v5871_v44 = vpop.f32.mrb[46].mxu1  ;;  %v5967_v15 = vadd.f32 %v9763_v13, %v5647_v16  ;;  %v6587_v19 = vadd.f32 %v6586_v28, %v6520_v42 }
 0x393   :  { %v6525_v50 = vmul.f32 %v9770_v10, %v6026_v31  ;;  %v6028_v53 = vmax.f32 %v5964_v35, 0.0  ;;  %v6030_v43 = vmax.f32 %v5966_v7, 0.0  ;;  %v5968_v24 = vadd.f32 %v9760_v9, %v5871_v44  ;;  %v5873_v36 = vpop.f32.mrb[47].mxu1 }
 0x394   :  { %v6526_v39 = vmul.f32 %v9775_v26, %v6027_v33  ;;  %v6029_v54 = vmax.f32 %v5965_v37, 0.0  ;;  %v6031_v20 = vmax.f32 %v5967_v15, 0.0  ;;  %v5969_v46 = vadd.f32 %v9766_v60, %v5873_v36  ;;  %6588 = vadd.xlane.f32.xlu0 %v6587_v19 }
 0x395   :  { %v6529_v47 = vmul.f32 %v9770_v10, %v6030_v43  ;;  %v6032_v48 = vmax.f32 %v5968_v24, 0.0  ;;  %v6591_v27 = vadd.f32 %v6590_v14, %v6523_v30  ;;  %v6527_v45 = vmul.f32 %v9778_v34, %v6028_v53 }
 0x396   :  { %v6595_v49 = vadd.f32 %v6526_v39, %v6525_v50  ;;  %v6530_v51 = vmul.f32 %v9775_v26, %v6031_v20  ;;  %v5651_v22 = vpop.f32.mrb[48].mxu0  ;;  %v6528_v56 = vmul.f32 %v9783_v38, %v6029_v54  ;;  %v6033_v5 = vmax.f32 %v5969_v46, 0.0 }
 0x397   :  { %v5970_v57 = vadd.f32 %v9754_v12, %v5651_v22  ;;  %v6592_v58 = vadd.f32 %v6591_v27, %v6524_v55  ;;  %v5653_v61 = vpop.f32.mrb[49].mxu0  ;;  %v6531_v11 = vmul.f32 %v9778_v34, %v6032_v48 }
 0x398   :  { %v6600_v59 = vadd.f32 %v6530_v51, %v6529_v47  ;;  %v5877_v21 = vpop.f32.mrb[48].mxu1  ;;  %v5971_v62 = vadd.f32 %v9763_v13, %v5653_v61  ;;  %v5655_v63 = vpop.f32.mrb[50].mxu0  ;;  %v6596_v0 = vadd.f32 %v6595_v49, %v6527_v45  ;;  %v6532_v7 = vmul.f32 %v9783_v38, %v6033_v5 }
 0x399   :  { %v6034_v32 = vmax.f32 %v5970_v57, 0.0  ;;  %v5972_v1 = vadd.f32 %v9760_v9, %v5877_v21  ;;  %6593 = vadd.xlane.f32.xlu1 %v6592_v58  ;;  %v5879_v4 = vpop.f32.mrb[49].mxu1  ;;  %v5974_v41 = vadd.f32 %v9754_v12, %v5655_v63  ;;  %v5657_v8 = vpop.f32.mrb[51].mxu0 }
 0x39a   :  { %v6035_v42 = vmax.f32 %v5971_v62, 0.0  ;;  %v5973_v52 = vadd.f32 %v9766_v60, %v5879_v4  ;;  %v5881_v2 = vpop.f32.mrb[50].mxu1  ;;  %v5975_v6 = vadd.f32 %v9763_v13, %v5657_v8  ;;  %v6597_v14 = vadd.f32 %v6596_v0, %v6528_v56 }
 0x39b   :  { %v6533_v17 = vmul.f32 %v9770_v10, %v6034_v32  ;;  %v6036_v18 = vmax.f32 %v5972_v1, 0.0  ;;  %v6038_v23 = vmax.f32 %v5974_v41, 0.0  ;;  %v5976_v25 = vadd.f32 %v9760_v9, %v5881_v2  ;;  %v5883_v28 = vpop.f32.mrb[51].mxu1 }
 0x39c   :  { %v6534_v30 = vmul.f32 %v9775_v26, %v6035_v42  ;;  %v6037_v31 = vmax.f32 %v5973_v52, 0.0  ;;  %v6039_v35 = vmax.f32 %v5975_v6, 0.0  ;;  %v5977_v40 = vadd.f32 %v9766_v60, %v5883_v28  ;;  %6598 = vadd.xlane.f32.xlu0 %v6597_v14 }
 0x39d   :  { %v6537_v16 = vmul.f32 %v9770_v10, %v6038_v23  ;;  %v6040_v33 = vmax.f32 %v5976_v25, 0.0  ;;  %v6601_v37 = vadd.f32 %v6600_v59, %v6531_v11  ;;  %v6535_v44 = vmul.f32 %v9778_v34, %v6036_v18 }
 0x39e   :  { %v6605_v15 = vadd.f32 %v6534_v30, %v6533_v17  ;;  %v6538_v19 = vmul.f32 %v9775_v26, %v6039_v35  ;;  %v5661_v50 = vpop.f32.mrb[52].mxu0  ;;  %v6536_v53 = vmul.f32 %v9783_v38, %v6037_v31  ;;  %v6041_v54 = vmax.f32 %v5977_v40, 0.0 }
 0x39f   :  { %v5978_v43 = vadd.f32 %v9754_v12, %v5661_v50  ;;  %v6602_v24 = vadd.f32 %v6601_v37, %v6532_v7  ;;  %v5663_v36 = vpop.f32.mrb[53].mxu0  ;;  %v6539_v48 = vmul.f32 %v9778_v34, %v6040_v33 }
 0x3a0   :  { %v6610_v39 = vadd.f32 %v6538_v19, %v6537_v16  ;;  %v5887_v20 = vpop.f32.mrb[52].mxu1  ;;  %v5979_v46 = vadd.f32 %v9763_v13, %v5663_v36  ;;  %v5665_v55 = vpop.f32.mrb[54].mxu0  ;;  %v6606_v47 = vadd.f32 %v6605_v15, %v6535_v44  ;;  %v6540_v41 = vmul.f32 %v9783_v38, %v6041_v54 }
 0x3a1   :  { %v6042_v27 = vmax.f32 %v5978_v43, 0.0  ;;  %v5980_v45 = vadd.f32 %v9760_v9, %v5887_v20  ;;  %6603 = vadd.xlane.f32.xlu1 %v6602_v24  ;;  %v5889_v49 = vpop.f32.mrb[53].mxu1  ;;  %v5982_v51 = vadd.f32 %v9754_v12, %v5665_v55  ;;  %v5667_v22 = vpop.f32.mrb[55].mxu0 }
 0x3a2   :  { %v6043_v56 = vmax.f32 %v5979_v46, 0.0  ;;  %v5981_v57 = vadd.f32 %v9766_v60, %v5889_v49  ;;  %v5891_v58 = vpop.f32.mrb[54].mxu1  ;;  %v5983_v61 = vadd.f32 %v9763_v13, %v5667_v22  ;;  %v6607_v59 = vadd.f32 %v6606_v47, %v6536_v53 }
 0x3a3   :  { %v6541_v5 = vmul.f32 %v9770_v10, %v6042_v27  ;;  %v6044_v21 = vmax.f32 %v5980_v45, 0.0  ;;  %v6046_v62 = vmax.f32 %v5982_v51, 0.0  ;;  %v5984_v63 = vadd.f32 %v9760_v9, %v5891_v58  ;;  %v5893_v0 = vpop.f32.mrb[55].mxu1 }
 0x3a4   :  { %v6542_v11 = vmul.f32 %v9775_v26, %v6043_v56  ;;  %v6045_v32 = vmax.f32 %v5981_v57, 0.0  ;;  %v6047_v1 = vmax.f32 %v5983_v61, 0.0  ;;  %v5985_v4 = vadd.f32 %v9766_v60, %v5893_v0  ;;  %6608 = vadd.xlane.f32.xlu0 %v6607_v59 }
 0x3a5   :  { %v6545_v8 = vmul.f32 %v9770_v10, %v6046_v62  ;;  %v6048_v42 = vmax.f32 %v5984_v63, 0.0  ;;  %v6611_v52 = vadd.f32 %v6610_v39, %v6539_v48  ;;  %v6543_v2 = vmul.f32 %v9778_v34, %v6044_v21 }
 0x3a6   :  { %v6615_v6 = vadd.f32 %v6542_v11, %v6541_v5  ;;  %v6546_v14 = vmul.f32 %v9775_v26, %v6047_v1  ;;  %v5671_v17 = vpop.f32.mrb[56].mxu0  ;;  %v6544_v18 = vmul.f32 %v9783_v38, %v6045_v32  ;;  %v6049_v31 = vmax.f32 %v5985_v4, 0.0 }
 0x3a7   :  { %v5986_v23 = vadd.f32 %v9754_v12, %v5671_v17  ;;  %v6612_v25 = vadd.f32 %v6611_v52, %v6540_v41  ;;  %v5673_v28 = vpop.f32.mrb[57].mxu0  ;;  %v6547_v33 = vmul.f32 %v9778_v34, %v6048_v42 }
 0x3a8   :  { %v6620_v30 = vadd.f32 %v6546_v14, %v6545_v8  ;;  %v5897_v35 = vpop.f32.mrb[56].mxu1  ;;  %v5987_v40 = vadd.f32 %v9763_v13, %v5673_v28  ;;  %v5675_v7 = vpop.f32.mrb[58].mxu0  ;;  %v6616_v16 = vadd.f32 %v6615_v6, %v6543_v2  ;;  %v6548_v51 = vmul.f32 %v9783_v38, %v6049_v31 }
 0x3a9   :  { %v6050_v37 = vmax.f32 %v5986_v23, 0.0  ;;  %v5988_v44 = vadd.f32 %v9760_v9, %v5897_v35  ;;  %6613 = vadd.xlane.f32.xlu1 %v6612_v25  ;;  %v5899_v15 = vpop.f32.mrb[57].mxu1  ;;  %v5990_v19 = vadd.f32 %v9754_v12, %v5675_v7  ;;  %v5677_v50 = vpop.f32.mrb[59].mxu0 }
 0x3aa   :  { %v6051_v53 = vmax.f32 %v5987_v40, 0.0  ;;  %v5989_v43 = vadd.f32 %v9766_v60, %v5899_v15  ;;  %v5901_v24 = vpop.f32.mrb[58].mxu1  ;;  %v5991_v36 = vadd.f32 %v9763_v13, %v5677_v50  ;;  %v6617_v39 = vadd.f32 %v6616_v16, %v6544_v18 }
 0x3ab   :  { %v6549_v54 = vmul.f32 %v9770_v10, %v6050_v37  ;;  %v6052_v20 = vmax.f32 %v5988_v44, 0.0  ;;  %v6054_v46 = vmax.f32 %v5990_v19, 0.0  ;;  %v5992_v55 = vadd.f32 %v9760_v9, %v5901_v24  ;;  %v5903_v47 = vpop.f32.mrb[59].mxu1 }
 0x3ac   :  { %v6550_v48 = vmul.f32 %v9775_v26, %v6051_v53  ;;  %v6053_v27 = vmax.f32 %v5989_v43, 0.0  ;;  %v6055_v45 = vmax.f32 %v5991_v36, 0.0  ;;  %v5993_v49 = vadd.f32 %v9766_v60, %v5903_v47  ;;  %6618 = vadd.xlane.f32.xlu0 %v6617_v39 }
 0x3ad   :  { %v6553_v22 = vmul.f32 %v9770_v10, %v6054_v46  ;;  %v6056_v56 = vmax.f32 %v5992_v55, 0.0  ;;  %v6621_v57 = vadd.f32 %v6620_v30, %v6547_v33  ;;  %v6551_v58 = vmul.f32 %v9778_v34, %v6052_v20 }
 0x3ae   :  { %v6625_v61 = vadd.f32 %v6550_v48, %v6549_v54  ;;  %v6554_v59 = vmul.f32 %v9775_v26, %v6055_v45  ;;  %v5681_v5 = vpop.f32.mrb[60].mxu0  ;;  %v6552_v21 = vmul.f32 %v9783_v38, %v6053_v27  ;;  %v6057_v32 = vmax.f32 %v5993_v49, 0.0  ;;  %v6385_v48 = vpop.xlane.xlu0 %6384 }
 0x3af   :  { %v5994_v62 = vadd.f32 %v9754_v12, %v5681_v5  ;;  %v6622_v63 = vadd.f32 %v6621_v57, %v6548_v51  ;;  %v5683_v0 = vpop.f32.mrb[61].mxu0  ;;  %v6555_v42 = vmul.f32 %v9778_v34, %v6056_v56  ;;  %v6390_v27 = vpop.xlane.xlu1 %6389 }
 0x3b0   :  { %v6630_v11 = vadd.f32 %v6554_v59, %v6553_v22  ;;  %v5907_v1 = vpop.f32.mrb[60].mxu1  ;;  %v5995_v4 = vadd.f32 %v9763_v13, %v5683_v0  ;;  %v5685_v41 = vpop.f32.mrb[62].mxu0  ;;  %v6626_v8 = vadd.f32 %v6625_v61, %v6551_v58  ;;  %v6556_v15 = vmul.f32 %v9783_v38, %v6057_v32 }
 0x3b1   :  { %v6058_v52 = vmax.f32 %v5994_v62, 0.0  ;;  %v5996_v2 = vadd.f32 %v9760_v9, %v5907_v1  ;;  %6623 = vadd.xlane.f32.xlu1 %v6622_v63  ;;  %v5909_v6 = vpop.f32.mrb[61].mxu1  ;;  %v5998_v14 = vadd.f32 %v9754_v12, %v5685_v41  ;;  %v5687_v17 = vpop.f32.mrb[63].mxu0  ;;  %v6464_v22 = vadd.f32 %v9747_v3, %v6385_v48 }
 0x3b2   :  { %v6059_v18 = vmax.f32 %v5995_v4, 0.0  ;;  %v5997_v23 = vadd.f32 %v9766_v60, %v5909_v6  ;;  %v5911_v25 = vpop.f32.mrb[62].mxu1  ;;  %v5999_v28 = vadd.f32 %v9763_v13, %v5687_v17  ;;  %v6627_v30 = vadd.f32 %v6626_v8, %v6552_v21  ;;  %v6400_v45 = vpop.xlane.xlu0 %6399 }
 0x3b3   :  { %v6557_v31 = vmul.f32 %v9770_v10, %v6058_v52  ;;  %v6060_v35 = vmax.f32 %v5996_v2, 0.0  ;;  %v6062_v40 = vmax.f32 %v5998_v14, 0.0  ;;  %v6000_v7 = vadd.f32 %v9760_v9, %v5911_v25  ;;  %v5913_v16 = vpop.f32.mrb[63].mxu1 }
 0x3b4   :  { %v6558_v33 = vmul.f32 %v9775_v26, %v6059_v18  ;;  %v6061_v37 = vmax.f32 %v5997_v23, 0.0  ;;  %v6063_v44 = vmax.f32 %v5999_v28, 0.0  ;;  %v6001_v12 = vadd.f32 %v9766_v60, %v5913_v16  ;;  %6628 = vadd.xlane.f32.xlu0 %v6627_v30 }
 0x3b5   :  { %v6561_v19 = vmul.f32 %v9770_v10, %v6062_v40  ;;  %v6064_v13 = vmax.f32 %v6000_v7, 0.0  ;;  %v6631_v50 = vadd.f32 %v6630_v11, %v6555_v42  ;;  %v6559_v53 = vmul.f32 %v9778_v34, %v6060_v35 }
 0x3b6   :  { %v6635_v43 = vadd.f32 %v6558_v33, %v6557_v31  ;;  %v6562_v24 = vmul.f32 %v9775_v26, %v6063_v44  ;;  %v6065_v9 = vmax.f32 %v6001_v12, 0.0  ;;  %v6560_v54 = vmul.f32 %v9783_v38, %v6061_v37  ;;  %v6410_v51 = vpop.xlane.xlu0 %6409 }
 0x3b7   :  { %v6563_v36 = vmul.f32 %v9778_v34, %v6064_v13  ;;  %v6632_v39 = vadd.f32 %v6631_v50, %v6556_v15  ;;  %v6465_v26 = vadd.f32 %v9747_v3, %v6390_v27  ;;  %v6467_v34 = vadd.f32 %v9747_v3, %v6400_v45 }
 0x3b8   :  { %v6640_v20 = vadd.f32 %v6562_v24, %v6561_v19  ;;  %v6564_v60 = vmul.f32 %v9783_v38, %v6065_v9  ;;  %v6636_v46 = vadd.f32 %v6635_v43, %v6559_v53  ;;  %v6395_v38 = vpop.xlane.xlu1 %6394  ;;  %v6469_v57 = vadd.f32 %v9747_v3, %v6410_v51 }
 0x3b9   :  { %6633 = vadd.xlane.f32.xlu1 %v6632_v39  ;;  %v6686_v49 = vmul.f32 0.2, %v6465_v26  ;;  %vm6670_vm2 = vcmp.gt.f32.partialorder %v6465_v26, 0.0  ;;  %v6688_v56 = vmul.f32 0.2, %v6467_v34  ;;  %vm6672_vm3 = vcmp.gt.f32.partialorder %v6467_v34, 0.0 }
 0x3ba   :  { %v6637_v55 = vadd.f32 %v6636_v46, %v6560_v54  ;;  %v6641_v10 = vadd.f32 %v6640_v20, %v6563_v36  ;;  %v6420_v61 = vpop.xlane.xlu0 %6419  ;;  %v6685_v59 = vmul.f32 0.2, %v6464_v22  ;;  %v6466_v5 = vadd.f32 %v9747_v3, %v6395_v38  ;;  %v9928_v39 = vld [vmem:[#allocation3] ss:$0 sm:$0xff] }
 0x3bb   :  { %v6702_v58 = vsel %vm6670_vm2, %v6465_v26, %v6686_v49  ;;  %v6690_v62 = vmul.f32 0.2, %v6469_v57  ;;  %v6471_v63 = vadd.f32 %v9747_v3, %v6420_v61  ;;  %v6704_v0 = vsel %vm6672_vm3, %v6467_v34, %v6688_v56 }
 0x3bc   :  { %6638 = vadd.xlane.f32.xlu0 %v6637_v55  ;;  %v9908_v47 = vadd.f32 %v6641_v10, %v6564_v60  ;;  %v6405_v21 = vpop.xlane.xlu1 %6404  ;;  %vm6669_vm4 = vcmp.gt.f32.partialorder %v6464_v22, 0.0  ;;  %vm6674_vm5 = vcmp.gt.f32.partialorder %v6469_v57, 0.0  ;;  %v6687_v32 = vmul.f32 0.2, %v6466_v5 }
 0x3bd   :  { %v6468_v1 = vadd.f32 %v9747_v3, %v6405_v21  ;;  %v6701_v4 = vsel %vm6669_vm4, %v6464_v22, %v6685_v59  ;;  %v6692_v41 = vmul.f32 0.2, %v6471_v63  ;;  %v6706_v42 = vsel %vm6674_vm5, %v6469_v57, %v6690_v62 }
 0x3be   :  { %v6430_v11 = vpop.xlane.xlu0 %6429  ;;  %vm6671_vm6 = vcmp.gt.f32.partialorder %v6466_v5, 0.0  ;;  %vm6676_vm7 = vcmp.gt.f32.partialorder %v6471_v63, 0.0 }
 0x3bf   :  { %v6473_v8 = vadd.f32 %v9747_v3, %v6430_v11  ;;  %v6689_v6 = vmul.f32 0.2, %v6468_v1  ;;  %v6703_v14 = vsel %vm6671_vm6, %v6466_v5, %v6687_v32  ;;  %vm6673_vm8 = vcmp.gt.f32.partialorder %v6468_v1, 0.0 }
 0x3c0   :  { %v6415_v52 = vpop.xlane.xlu1 %6414  ;;  %v6708_v25 = vsel %vm6676_vm7, %v6471_v63, %v6692_v41 }
 0x3c1   :  { %v6470_v17 = vadd.f32 %v9747_v3, %v6415_v52  ;;  %v6694_v18 = vmul.f32 0.2, %v6473_v8  ;;  %vm6678_vm9 = vcmp.gt.f32.partialorder %v6473_v8, 0.0  ;;  %v6705_v30 = vsel %vm6673_vm8, %v6468_v1, %v6689_v6 }
 0x3c2   :  { %v6440_v2 = vpop.xlane.xlu0 %6439 }
 0x3c3   :  { %v6475_v23 = vadd.f32 %v9747_v3, %v6440_v2  ;;  %v6691_v31 = vmul.f32 0.2, %v6470_v17  ;;  %v6710_v7 = vsel %vm6678_vm9, %v6473_v8, %v6694_v18  ;;  %vm6675_vm11 = vcmp.gt.f32.partialorder %v6470_v17, 0.0 }
 0x3c4   :  { %v6425_v28 = vpop.xlane.xlu1 %6424 }
 0x3c5   :  { %v6472_v35 = vadd.f32 %v9747_v3, %v6425_v28  ;;  %v6696_v40 = vmul.f32 0.2, %v6475_v23  ;;  %vm6680_vm10 = vcmp.gt.f32.partialorder %v6475_v23, 0.0  ;;  %v6707_v12 = vsel %vm6675_vm11, %v6470_v17, %v6691_v31 }
 0x3c6   :  { %v9926_v36 = vpop.xlane.xlu0 %6449 }
 0x3c7   :  { %v6693_v33 = vmul.f32 0.2, %v6472_v35  ;;  %v6712_v44 = vsel %vm6680_vm10, %v6475_v23, %v6696_v40  ;;  %vm6677_vm12 = vcmp.gt.f32.partialorder %v6472_v35, 0.0 }
 0x3c8   :  { %v6435_v16 = vpop.xlane.xlu1 %6434 }
 0x3c9   :  { %v6474_v37 = vadd.f32 %v9747_v3, %v6435_v16  ;;  %v6709_v50 = vsel %vm6677_vm12, %v6472_v35, %v6693_v33 }
 0x3ca   :  { %6876 = vperm.xlu1 %8132, %v6702_v58  }
 0x3cb   :  { %v6695_v19 = vmul.f32 0.2, %v6474_v37  ;;  %vm6679_vm13 = vcmp.gt.f32.partialorder %v6474_v37, 0.0 }
 0x3cc   :  { %v6445_v15 = vpop.xlane.xlu1 %6444 }
 0x3cd   :  { %v6476_v13 = vadd.f32 %v9747_v3, %v6445_v15  ;;  %v6711_v43 = vsel %vm6679_vm13, %v6474_v37, %v6695_v19 }
 0x3ce   :  { %6886 = vperm.xlu1 %8132, %v6704_v0  }
 0x3cf   :  { %v6697_v53 = vmul.f32 0.2, %v6476_v13  ;;  %vm6681_vm14 = vcmp.gt.f32.partialorder %v6476_v13, 0.0 }
 0x3d0   :  { %v9924_v9 = vpop.xlane.xlu1 %6454 }
 0x3d1   :  { %v6713_v24 = vsel %vm6681_vm14, %v6476_v13, %v6697_v53 }
 0x3d2   :  { %6896 = vperm.xlu1 %8132, %v6706_v42   ;;  %6871 = vperm.xlu0 %8133, %v6701_v4  }
 0x3d4   :  { %v9930_v54 = vpop.permute.xlu1 %6866 }
 0x3d6   :  { %6906 = vperm.xlu1 %8132, %v6708_v25   ;;  %6881 = vperm.xlu0 %8133, %v6703_v14  }
 0x3da   :  { %6916 = vperm.xlu1 %8132, %v6710_v7   ;;  %6891 = vperm.xlu0 %8133, %v6705_v30  }
 0x3de   :  { %6926 = vperm.xlu1 %8132, %v6712_v44   ;;  %6901 = vperm.xlu0 %8133, %v6707_v12  }
 0x3e2   :  { %6911 = vperm.xlu0 %8133, %v6709_v50  }
 0x3e6   :  { %6921 = vperm.xlu0 %8133, %v6711_v43   ;;  %v6477_v43 = vadd.f32 %v9747_v3, %v9926_v36 }
 0x3e8   :  { %vm6682_vm14 = vcmp.gt.f32.partialorder %v6477_v43, 0.0 }
 0x3ea   :  { %6931 = vperm.xlu0 %8133, %v6713_v24  }
 0x402   :  { %6643 = vadd.xlane.f32.xlu1 %v9908_v47 }
 0x412   :  { %v6569_v20 = vpop.xlane.xlu0 %6568 }
 0x413   :  { %v6652_v60 = vadd.f32 %v9928_v39, %v6569_v20 }
 0x415   :  { %v6732_v46 = vmul.f32 0.2, %v6652_v60  ;;  %v6574_v55 = vpop.xlane.xlu1 %6573  ;;  %vm6716_vm15 = vcmp.gt.f32.partialorder %v6652_v60, 0.0 }
 0x416   :  { %v6653_v10 = vadd.f32 %v9928_v39, %v6574_v55 }
 0x417   :  { %v6748_v48 = vsel %vm6716_vm15, %v6652_v60, %v6732_v46  ;;  %v6698_v46 = vmul.f32 0.2, %v6477_v43 }
 0x418   :  { %v6733_v26 = vmul.f32 0.2, %v6653_v10  ;;  %6770 = vperm.xlu0 %8133, %v6748_v48   ;;  %vm6717_vm0 = vcmp.gt.f32.partialorder %v6653_v10, 0.0 }
 0x419   :  { %v6579_v27 = vpop.xlane.xlu0 %6578 }
 0x41a   :  { %v6654_v47 = vadd.f32 %v9928_v39, %v6579_v27  ;;  %v6749_v49 = vsel %vm6717_vm0, %v6653_v10, %v6733_v26  ;;  %v6714_v10 = vsel %vm6682_vm14, %v6477_v43, %v6698_v46 }
 0x41b   :  { %6775 = vperm.xlu1 %8132, %v6749_v49  }
 0x41c   :  { %v6734_v45 = vmul.f32 0.2, %v6654_v47  ;;  %vm6718_vm1 = vcmp.gt.f32.partialorder %v6654_v47, 0.0 }
 0x41e   :  { %v6584_v34 = vpop.xlane.xlu1 %6583  ;;  %v6750_v51 = vsel %vm6718_vm1, %v6654_v47, %v6734_v45 }
 0x41f   :  { %v6655_v22 = vadd.f32 %v9928_v39, %v6584_v34  ;;  %6780 = vperm.xlu1 %8132, %v6750_v51  }
 0x421   :  { %v6735_v38 = vmul.f32 0.2, %v6655_v22  ;;  %v6589_v56 = vpop.xlane.xlu0 %6588  ;;  %vm6719_vm2 = vcmp.gt.f32.partialorder %v6655_v22, 0.0 }
 0x422   :  { %v6656_v57 = vadd.f32 %v9928_v39, %v6589_v56 }
 0x423   :  { %v6751_v61 = vsel %vm6719_vm2, %v6655_v22, %v6735_v38 }
 0x424   :  { %v6736_v58 = vmul.f32 0.2, %v6656_v57  ;;  %vm6720_vm3 = vcmp.gt.f32.partialorder %v6656_v57, 0.0  ;;  %6785 = vperm.xlu1 %8132, %v6751_v61  }
 0x426   :  { %v6594_v59 = vpop.xlane.xlu1 %6593  ;;  %v6752_v5 = vsel %vm6720_vm3, %v6656_v57, %v6736_v58  ;;  %v8980_v57 = vld [vmem:[#allocation2] ss:$0 sm:$0xff] }
 0x427   :  { %v6657_v21 = vadd.f32 %v9928_v39, %v6594_v59  ;;  %v6478_v58 = vadd.f32 %v8980_v57, %v9924_v9 }
 0x428   :  { %6790 = vperm.xlu1 %8132, %v6752_v5   ;;  %v9966_v5 = vand.u32 127, %v3392_v29 }
 0x429   :  { %v6737_v62 = vmul.f32 0.2, %v6657_v21  ;;  %v6599_v63 = vpop.xlane.xlu0 %6598  ;;  %vm6721_vm4 = vcmp.gt.f32.partialorder %v6657_v21, 0.0  ;;  %vm6683_vm0 = vcmp.gt.f32.partialorder %v6478_v58, 0.0 }
 0x42a   :  { %v6658_v0 = vadd.f32 %v9928_v39, %v6599_v63  ;;  %vm6767_vm1 = vcmp.eq.s32.totalorder %v9966_v5, 1  ;;  %vm6766_vm2 = vcmp.eq.s32.totalorder %v9966_v5, 0 }
 0x42b   :  { %v6753_v32 = vsel %vm6721_vm4, %v6657_v21, %v6737_v62  ;;  %v6699_v21 = vmul.f32 0.2, %v6478_v58 }
 0x42c   :  { %v6738_v11 = vmul.f32 0.2, %v6658_v0  ;;  %vm6722_vm5 = vcmp.gt.f32.partialorder %v6658_v0, 0.0  ;;  %6795 = vperm.xlu1 %8132, %v6753_v32  }
 0x42e   :  { %v6604_v1 = vpop.xlane.xlu1 %6603  ;;  %v6754_v4 = vsel %vm6722_vm5, %v6658_v0, %v6738_v11  ;;  %v6715_v0 = vsel %vm6683_vm0, %v6478_v58, %v6699_v21 }
 0x42f   :  { %v6659_v41 = vadd.f32 %v9928_v39, %v6604_v1 }
 0x430   :  { %6800 = vperm.xlu1 %8132, %v6754_v4  }
 0x431   :  { %v6739_v8 = vmul.f32 0.2, %v6659_v41  ;;  %v6609_v42 = vpop.xlane.xlu0 %6608  ;;  %vm6723_vm6 = vcmp.gt.f32.partialorder %v6659_v41, 0.0 }
 0x432   :  { %v6660_v52 = vadd.f32 %v9928_v39, %v6609_v42 }
 0x433   :  { %v6755_v6 = vsel %vm6723_vm6, %v6659_v41, %v6739_v8 }
 0x434   :  { %v6740_v2 = vmul.f32 0.2, %v6660_v52  ;;  %vm6724_vm7 = vcmp.gt.f32.partialorder %v6660_v52, 0.0  ;;  %6805 = vperm.xlu1 %8132, %v6755_v6  }
 0x436   :  { %v6614_v14 = vpop.xlane.xlu1 %6613  ;;  %v6756_v17 = vsel %vm6724_vm7, %v6660_v52, %v6740_v2 }
 0x437   :  { %v6661_v18 = vadd.f32 %v9928_v39, %v6614_v14 }
 0x438   :  { %6810 = vperm.xlu1 %8132, %v6756_v17  }
 0x439   :  { %v6741_v23 = vmul.f32 0.2, %v6661_v18  ;;  %v6619_v25 = vpop.xlane.xlu0 %6618  ;;  %vm6725_vm8 = vcmp.gt.f32.partialorder %v6661_v18, 0.0 }
 0x43a   :  { %v6662_v28 = vadd.f32 %v9928_v39, %v6619_v25 }
 0x43b   :  { %v6757_v30 = vsel %vm6725_vm8, %v6661_v18, %v6741_v23 }
 0x43c   :  { %v6742_v31 = vmul.f32 0.2, %v6662_v28  ;;  %6815 = vperm.xlu0 %8133, %v6757_v30   ;;  %vm6726_vm9 = vcmp.gt.f32.partialorder %v6662_v28, 0.0 }
 0x43e   :  { %v6624_v35 = vpop.xlane.xlu1 %6623  ;;  %v6758_v40 = vsel %vm6726_vm9, %v6662_v28, %v6742_v31 }
 0x43f   :  { %v6663_v7 = vadd.f32 %v9928_v39, %v6624_v35  ;;  %6820 = vperm.xlu1 %8132, %v6758_v40  }
 0x441   :  { %v6743_v16 = vmul.f32 0.2, %v6663_v7  ;;  %v6629_v33 = vpop.xlane.xlu0 %6628  ;;  %vm6727_vm10 = vcmp.gt.f32.partialorder %v6663_v7, 0.0 }
 0x442   :  { %v6664_v37 = vadd.f32 %v9928_v39, %v6629_v33 }
 0x443   :  { %v6759_v44 = vsel %vm6727_vm10, %v6663_v7, %v6743_v16 }
 0x444   :  { %v6744_v12 = vmul.f32 0.2, %v6664_v37  ;;  %6825 = vperm.xlu0 %8133, %v6759_v44   ;;  %vm6728_vm11 = vcmp.gt.f32.partialorder %v6664_v37, 0.0 }
 0x446   :  { %v6634_v15 = vpop.xlane.xlu1 %6633  ;;  %v6760_v19 = vsel %vm6728_vm11, %v6664_v37, %v6744_v12 }
 0x447   :  { %v6665_v13 = vadd.f32 %v9928_v39, %v6634_v15  ;;  %6830 = vperm.xlu1 %8132, %v6760_v19  }
 0x449   :  { %v6745_v50 = vmul.f32 0.2, %v6665_v13  ;;  %v6639_v53 = vpop.xlane.xlu0 %6638  ;;  %vm6729_vm12 = vcmp.gt.f32.partialorder %v6665_v13, 0.0 }
 0x44a   :  { %v6666_v24 = vadd.f32 %v9928_v39, %v6639_v53  ;;  %v6877_v48 = vpop.permute.xlu1 %6876 }
 0x44b   :  { %v6761_v20 = vsel %vm6729_vm12, %v6665_v13, %v6745_v50 }
 0x44c   :  { %v6746_v60 = vmul.f32 0.2, %v6666_v24  ;;  %6835 = vperm.xlu0 %8133, %v6761_v20   ;;  %vm6730_vm13 = vcmp.gt.f32.partialorder %v6666_v24, 0.0 }
 0x44e   :  { %v6762_v55 = vsel %vm6730_vm13, %v6666_v24, %v6746_v60  ;;  %v6887_v26 = vpop.permute.xlu1 %6886 }
 0x44f   :  { %6840 = vperm.xlu1 %8132, %v6762_v55  }
 0x451   :  { %v6872_v27 = vpop.permute.xlu0 %6871 }
 0x452   :  { %v9949_v45 = vpop.permute.xlu1 %6896 }
 0x453   :  { %6936 = vperm.xlu1 %8132, %v6714_v10  }
 0x455   :  { %v6882_v47 = vpop.permute.xlu0 %6881 }
 0x456   :  { %v9951_v3 = vpop.permute.xlu1 %6906 }
 0x459   :  { %v6892_v49 = vpop.permute.xlu0 %6891 }
 0x45a   :  { %v9955_v34 = vpop.permute.xlu1 %6916 }
 0x45d   :  { %v9953_v36 = vpop.permute.xlu0 %6901 }
 0x45e   :  { %v9959_v22 = vpop.permute.xlu1 %6926 }
 0x461   :  { %v9957_v51 = vpop.permute.xlu0 %6911 }
 0x465   :  { %v9961_v38 = vpop.permute.xlu0 %6921 }
 0x469   :  { %v9968_v63 = vpop.permute.xlu0 %6931 }
 0x48f   :  { %v6644_v56 = vpop.xlane.xlu1 %6643 }
 0x490   :  { %v6667_v61 = vadd.f32 %v9928_v39, %v6644_v56 }
 0x492   :  { %v6747_v59 = vmul.f32 0.2, %v6667_v61  ;;  %vm6731_vm15 = vcmp.gt.f32.partialorder %v6667_v61, 0.0 }
 0x494   :  { %v6763_v62 = vsel %vm6731_vm15, %v6667_v61, %v6747_v59 }
 0x495   :  { %6845 = vperm.xlu0 %8133, %v6763_v62  }
 0x497   :  { %v6771_v11 = vpop.permute.xlu0 %6770 }
 0x498   :  { %v6848_v9 = vsel %vm6767_vm1, %v6771_v11, 0.0 }
 0x499   :  { %6941 = vperm.xlu0 %8133, %v6715_v0   ;;  %v6944_v29 = vsel %vm6766_vm2, %v9930_v54, %v6848_v9 }
 0x49a   :  { %6960 = vst [vmem:[#allocation19] sm:$0xff] %v6944_v29  ;;  %v6776_v39 = vpop.permute.xlu1 %6775 }
 0x49b   :  { %v6849_v32 = vsel %vm6767_vm1, %v6776_v39, 0.0 }
 0x49c   :  { %9168 = shalt.err (!%p9165_p12)
}
 0x49d   :  { %s9169_s6 = scalar_lea.hbm %s10087_s16, 4096 }
 0x49e   :  { %p9170_p13 = scmp.ne.s32.totalorder %s10087_s16, %s9169_s6  ;;  %p9173_p0 = scmp.lt.u32.totalorder %s9169_s6, %s10087_s16 }
 0x4a0   :  { %p9175_p1 = pnand %p9173_p0, %p9170_p13 }
 0x4a2   :  { %9178 = shalt.err (!%p9175_p1)
}
 0x4a3   :  { %6987 = dma.vmem_to_hbm [thread:$0]  %s6982_s14, 4096, %s10087_s16, [#allocation6], %s9216_s21, %s9216_s21, %s9217_s22   ;;  %v6945_v54 = vsel %vm6766_vm2, %v6872_v27, %v6849_v32  ;;  %v6781_v1 = vpop.permute.xlu1 %6780 }
 0x4a4   :  { %6961 = vst [vmem:[#allocation19 + $0x8] sm:$0xff] %v6945_v54  ;;  %v6850_v4 = vsel %vm6767_vm1, %v6781_v1, 0.0  ;;  %s9229_s16 = smov [#allocation19]  }
 0x4a5   :  { %v6946_v41 = vsel %vm6766_vm2, %v6877_v48, %v6850_v4  ;;  %s6993_s21 = sshll.u32 %s9229_s16, 4  ;;  %s6994_s21 = int_to_ptr.vmem [resolvable:$true] %s6993_s21 }
 0x4a6   :  { %6962 = vst [vmem:[#allocation19 + $0x10] sm:$0xff] %v6946_v41  ;;  %s9179_s22 = scalar_lea.vmem %s6994_s21, 2048  ;;  %p9184_p3 = scmp.lt.s32.totalorder %s6994_s21, %s6994_s21 }
 0x4a7   :  { %v6786_v8 = vpop.permute.xlu1 %6785  ;;  %p9180_p2 = scmp.ne.s32.totalorder %s6994_s21, %s9179_s22  ;;  %p9185_p4 = scmp.lt.s32.totalorder %s9179_s22, %s9179_s22 }
 0x4a8   :  { %v6851_v42 = vsel %vm6767_vm1, %v6786_v8, 0.0 }
 0x4a9   :  { %v6947_v52 = vsel %vm6766_vm2, %v6882_v47, %v6851_v42  ;;  %p9186_p5 = por %p9185_p4, %p9184_p3 }
 0x4aa   :  { %6963 = vst [vmem:[#allocation19 + $0x18] sm:$0xff] %v6947_v52 }
 0x4ab   :  { %v6791_v2 = vpop.permute.xlu1 %6790  ;;  %p9187_p6 = pnand %p9186_p5, %p9180_p2 }
 0x4ac   :  { %v6852_v6 = vsel %vm6767_vm1, %v6791_v2, 0.0 }
 0x4ad   :  { %v6948_v14 = vsel %vm6766_vm2, %v6887_v26, %v6852_v6 }
 0x4ae   :  { %6964 = vst [vmem:[#allocation19 + $0x20] sm:$0xff] %v6948_v14 }
 0x4af   :  { %v6796_v17 = vpop.permute.xlu1 %6795 }
 0x4b0   :  { %v6853_v18 = vsel %vm6767_vm1, %v6796_v17, 0.0 }
 0x4b1   :  { %v6949_v23 = vsel %vm6766_vm2, %v6892_v49, %v6853_v18 }
 0x4b2   :  { %6965 = vst [vmem:[#allocation19 + $0x28] sm:$0xff] %v6949_v23 }
 0x4b3   :  { %v6801_v25 = vpop.permute.xlu1 %6800 }
 0x4b4   :  { %v6854_v28 = vsel %vm6767_vm1, %v6801_v25, 0.0 }
 0x4b5   :  { %v6950_v30 = vsel %vm6766_vm2, %v9949_v45, %v6854_v28 }
 0x4b6   :  { %6966 = vst [vmem:[#allocation19 + $0x30] sm:$0xff] %v6950_v30 }
 0x4b7   :  { %v6806_v31 = vpop.permute.xlu1 %6805 }
 0x4b8   :  { %v6855_v35 = vsel %vm6767_vm1, %v6806_v31, 0.0 }
 0x4b9   :  { %v6951_v40 = vsel %vm6766_vm2, %v9953_v36, %v6855_v35 }
 0x4ba   :  { %6967 = vst [vmem:[#allocation19 + $0x38] sm:$0xff] %v6951_v40 }
 0x4bb   :  { %v6811_v7 = vpop.permute.xlu1 %6810  ;;  %v6816_v37 = vpop.permute.xlu0 %6815 }
 0x4bc   :  { %v6856_v16 = vsel %vm6767_vm1, %v6811_v7, 0.0  ;;  %v6857_v44 = vsel %vm6767_vm1, %v6816_v37, 0.0 }
 0x4bd   :  { %v6952_v33 = vsel %vm6766_vm2, %v9951_v3, %v6856_v16  ;;  %v6953_v12 = vsel %vm6766_vm2, %v9957_v51, %v6857_v44 }
 0x4be   :  { %6968 = vst [vmem:[#allocation19 + $0x40] sm:$0xff] %v6952_v33  ;;  %6969 = vst [vmem:[#allocation19 + $0x48] sm:$0xff] %v6953_v12 }
 0x4bf   :  { %v6821_v15 = vpop.permute.xlu1 %6820 }
 0x4c0   :  { %v6858_v19 = vsel %vm6767_vm1, %v6821_v15, 0.0 }
 0x4c1   :  { %v6954_v13 = vsel %vm6766_vm2, %v9955_v34, %v6858_v19 }
 0x4c2   :  { %6970 = vst [vmem:[#allocation19 + $0x50] sm:$0xff] %v6954_v13 }
 0x4c3   :  { %v6826_v50 = vpop.permute.xlu0 %6825 }
 0x4c4   :  { %v6859_v53 = vsel %vm6767_vm1, %v6826_v50, 0.0 }
 0x4c5   :  { %v6955_v43 = vsel %vm6766_vm2, %v9961_v38, %v6859_v53 }
 0x4c6   :  { %6971 = vst [vmem:[#allocation19 + $0x58] sm:$0xff] %v6955_v43  ;;  %v6831_v24 = vpop.permute.xlu1 %6830 }
 0x4c7   :  { %v6860_v20 = vsel %vm6767_vm1, %v6831_v24, 0.0 }
 0x4c8   :  { %v6956_v60 = vsel %vm6766_vm2, %v9959_v22, %v6860_v20 }
 0x4c9   :  { %6972 = vst [vmem:[#allocation19 + $0x60] sm:$0xff] %v6956_v60 }
 0x4cb   :  { %v6836_v46 = vpop.permute.xlu0 %6835 }
 0x4cc   :  { %v6861_v55 = vsel %vm6767_vm1, %v6836_v46, 0.0 }
 0x4cd   :  { %v6957_v10 = vsel %vm6766_vm2, %v9968_v63, %v6861_v55 }
 0x4ce   :  { %6973 = vst [vmem:[#allocation19 + $0x68] sm:$0xff] %v6957_v10  ;;  %v6841_v48 = vpop.permute.xlu1 %6840 }
 0x4cf   :  { %v6862_v27 = vsel %vm6767_vm1, %v6841_v48, 0.0 }
 0x4d2   :  { %v6937_v26 = vpop.permute.xlu1 %6936 }
 0x4d3   :  { %v6958_v47 = vsel %vm6766_vm2, %v6937_v26, %v6862_v27 }
 0x4d4   :  { %6974 = vst [vmem:[#allocation19 + $0x70] sm:$0xff] %v6958_v47 }
 0x514   :  { %v6846_v45 = vpop.permute.xlu0 %6845 }
 0x515   :  { %v6863_v49 = vsel %vm6767_vm1, %v6846_v45, 0.0 }
 0x518   :  { %v6942_v3 = vpop.permute.xlu0 %6941 }
 0x519   :  { %v6959_v36 = vsel %vm6766_vm2, %v6942_v3, %v6863_v49 }
 0x51a   :  { %6975 = vst [vmem:[#allocation19 + $0x78] sm:$0xff] %v6959_v36 }
 0x51b   :  { %9190 = shalt.err (!%p9187_p6)
}
 0x51c   :  { %s9191_s24 = scalar_lea.hbm %s10088_s17, 2048 }
 0x51d   :  { %p9192_p7 = scmp.ne.s32.totalorder %s10088_s17, %s9191_s24  ;;  %p9195_p8 = scmp.lt.u32.totalorder %s9191_s24, %s10088_s17 }
 0x51f   :  { %p9197_p9 = pnand %p9195_p8, %p9192_p7 }
 0x521   :  { %9200 = shalt.err (!%p9197_p9)
}
 0x522   :  { %s9230_s18 = smov 128   ;;  %s9231_s2 = smov 8  }
 0x523   :  { %6999 = dma.vmem_to_hbm [thread:$0]  %s6994_s21, 2048, %s10088_s17, [#allocation20], %s9230_s18, %s9230_s18, %s9231_s2  }
 0x524   :  { %9211 = dma.done.wait [#allocation6], 4096  }
 0x525   :  { %9212 = vsyncadd [#allocation6], 4294963200 }
 0x526   :  { %9213 = dma.done.wait [#allocation20], 2048  }
 0x527   :  { %9214 = vsyncadd [#allocation20], 4294965248 }
 0x528   :  { %7006 = vsyncpa [#allocation5], 1 }
 0x529   :  { %7007 = vsyncpa [#allocation8], 1 }
 0x52a   :  { %7008 = vsyncpa [#allocation11], 1 }
 0x52b   :  { %7009 = vsyncpa [#allocation14], 1 }
 0x52c   :  { %7010 = vsyncpa [#allocation17], 1 }
 0x52d   :  { %7011 = vsyncpa [#allocation6], 1 }
 0x52e   :  { %7012 = vsyncpa [#allocation20], 1 }

</bundles_post_ra>
